<compile_context>
chip_gen: v7x
topology: tpu7x:2x2x1
jax: 0.10.0
libtpu: 0.0.40
codegen_flags: <defaults>
</compile_context>

<pallas_src>
import functools

import jax
import jax.numpy as jnp
from jax.experimental import pallas as pl
from jax.experimental.pallas import tpu as pltpu

EPS_NORM = 1e-8            # clamp eps in _norm_no_nan
EPS_LN = 1e-5              # nn.LayerNorm default eps
MXU_DTYPE = jnp.bfloat16   # MXU operand dtype (f32 accumulation everywhere)


def _round_up(x, m):
    return ((x + m - 1) // m) * m


@functools.lru_cache(maxsize=None)
def _vmem_limit_bytes():
    # v5e/v6e have 128 MiB VMEM per TC, v7x only 64 MiB -> budget ~half, cap 64 MiB.
    try:
        info = pltpu.get_tpu_info()
        cap = int(getattr(info, "vmem_capacity_bytes", 128 * 1024 * 1024))
    except Exception:
        cap = 128 * 1024 * 1024
    return int(min(cap // 2, 64 * 1024 * 1024))


# ----------------------------------------------------------------------------
# Weight-slab packing: one lane-dense f32 slab per GVP chain, static slices
# ----------------------------------------------------------------------------
_GVP_MATS = ("wh", "ws", "bs", "wv")


def _chain_layout(chain):
    """Static (row_offset, rows, cols) per sub-matrix, derived from shapes only."""
    layouts, row, width = [], 0, 0
    for p in chain:
        lay = {}
        for name in _GVP_MATS:
            r, c = p[name].shape
            lay[name] = (row, r, c)
            row += _round_up(r, 8)          # keep every sub-matrix sublane-aligned
            width = max(width, c)
        layouts.append(lay)
    return layouts, row, width


def pack_gvp_chain(chain):
    """Pack one GVP chain (wh, ws=[Ws_s;Ws_h], bs, wv per GVP) into a single f32
    slab so the kernel gets one DMA instead of 4*n_gvp tiny ones."""
    layouts, rows, width = _chain_layout(chain)
    slab = jnp.zeros((rows, width), jnp.float32)
    for p, lay in zip(chain, layouts):
        for name in _GVP_MATS:
            off, r, c = lay[name]
            slab = slab.at[off:off + r, :c].set(p[name])
    return slab, layouts


def _slice_gvp_weights(slab, lay):
    def sl(name):
        off, r, c = lay[name]
        return slab[off:off + r, :c]        # static, sublane-aligned slices (free)
    return sl("wh"), sl("ws"), sl("bs"), sl("wv")


# ----------------------------------------------------------------------------
# In-kernel building blocks (jnp values only, never touch HBM)
# ----------------------------------------------------------------------------
def _gvp_compute(s, v, wh, ws, bs, wv, *, scalar_act, vector_act):
    """One Geometric Vector Perceptron (vi>0, vo>0, vector_gate=False).

    s: (R, si) f32, v: (3R, vi) f32 sublane-stacked, R % 8 == 0.
    ws is the stacked [Ws_s ; Ws_h] weight so [s | vn] needs a single dot.
    """
    r = v.shape[0] // 3
    vh = jnp.dot(v.astype(MXU_DTYPE), wh.astype(MXU_DTYPE),
                 preferred_element_type=jnp.float32)              # (3R, h), 1 MXU push
    vhx, vhy, vhz = vh[:r], vh[r:2 * r], vh[2 * r:]
    vn = jnp.sqrt(jnp.maximum(vhx * vhx + vhy * vhy + vhz * vhz, EPS_NORM))

    sv = jnp.concatenate([s, vn], axis=-1)                        # (R, si+h)
    s_out = jnp.dot(sv.astype(MXU_DTYPE), ws.astype(MXU_DTYPE),
                    preferred_element_type=jnp.float32) + bs      # (R, so), 1 MXU push

    v_out = jnp.dot(vh.astype(MXU_DTYPE), wv.astype(MXU_DTYPE),
                    preferred_element_type=jnp.float32)           # (3R, vo), 1 MXU push

    if vector_act:   # sigmoid gating on the per-channel spatial norm
        vx, vy, vz = v_out[:r], v_out[r:2 * r], v_out[2 * r:]
        nrm = jnp.sqrt(jnp.maximum(vx * vx + vy * vy + vz * vz, EPS_NORM))
        gate = jax.nn.sigmoid(nrm)                                # EUP
        v_out = v_out * jnp.concatenate([gate, gate, gate], axis=0)
    if scalar_act:   # relu
        s_out = jnp.maximum(s_out, 0.0)
    return s_out, v_out


def _layernorm_tuple(s, v, gamma, beta):
    """Combined LayerNorm for (s, V): scalar LN + vector RMS over channels."""
    r = v.shape[0] // 3
    mu = jnp.mean(s, axis=-1, keepdims=True)
    var = jnp.mean(jnp.square(s - mu), axis=-1, keepdims=True)
    s_out = (s - mu) * jax.lax.rsqrt(var + EPS_LN) * gamma + beta

    vx, vy, vz = v[:r], v[r:2 * r], v[2 * r:]
    vn2 = jnp.maximum(vx * vx + vy * vy + vz * vz, EPS_NORM)
    inv = jax.lax.rsqrt(jnp.mean(vn2, axis=-1, keepdims=True))    # EUP rsqrt, no divide
    v_out = v * jnp.concatenate([inv, inv, inv], axis=0)
    return s_out, v_out


# ----------------------------------------------------------------------------
# Fused dual-branch GVPConv kernel: 3-GVP chains + weighted scatter-mean,
# accumulated into a resident output block across the (branch, edge-tile) grid.
# ----------------------------------------------------------------------------
def _conv_kernel(ms_ref, mv_ref, dst_ref, inv_ref, w_ref, out_ref, *, layouts):
    te = ms_ref.shape[1]
    s = ms_ref[0]                                            # (TE, 2si+se)
    mv = mv_ref[...]                                         # (1, 3, TE, 2vi+ve)
    v = jnp.concatenate([mv[0, 0], mv[0, 1], mv[0, 2]], axis=0)   # (3TE, 2vi+ve)
    w = w_ref[0]                                             # (RW, CW) weight slab

    n_gvp = len(layouts)
    for li, lay in enumerate(layouts):
        last = li == n_gvp - 1        # last message GVP: activations=(None, None)
        s, v = _gvp_compute(s, v, *_slice_gvp_weights(w, lay),
                            scalar_act=not last, vector_act=not last)

    # Scatter-mean: per-edge 1/deg weights precomputed in the wrapper (0 on padded
    # edges), so the resident output accumulates a plain weighted sum over both
    # branches and all edge tiles.  Messages are lane-stacked (TE, so+3vo) so the
    # aggregation is ONE MXU dot with a lane-dense result.
    inv = inv_ref[0]                                         # (TE, 1) f32
    msg = jnp.concatenate([s, v[:te], v[te:2 * te], v[2 * te:]], axis=-1)
    msg = (msg * inv).astype(MXU_DTYPE)                      # scale in f32, cast once

    dst = dst_ref[0]                                         # (1, TE) int32, -1 on pad
    rows = jax.lax.broadcasted_iota(jnp.int32, (out_ref.shape[0], te), 0)
    a_mat = jnp.where(rows == dst, 1.0, 0.0).astype(MXU_DTYPE)   # exact 0/1 in bf16

    contrib = jnp.dot(a_mat, msg, preferred_element_type=jnp.float32)

    @pl.when((pl.program_id(0) == 0) & (pl.program_id(1) == 0))
    def _init():
        out_ref[...] = jnp.zeros_like(out_ref)

    out_ref[...] += contrib


def fused_conv_apply(knn_chain, sp_chain, x_s, x_v3, edge_index, edge_attr,
                     extra_edge_index, extra_edge_attr, n_pad):
    """Both GVPConv branches (mean aggregation, graph_cat='sum') in ONE pallas_call.

    x_s: (N_pad, ns) f32, x_v3: (3, N_pad, nv) f32.  Returns dh (N_pad, so + 3*vo).
    """
    e1 = edge_index.shape[1]
    e2 = extra_edge_index.shape[1]
    e_pad = _round_up(max(e1, e2), 8)
    if e_pad > 1024:                      # edge-tiled grid for large graphs
        te = 512                          # lane-dim constraint: multiple of 128
        e_pad = _round_up(e_pad, te)
    else:
        te = e_pad                        # single edge tile (demo-sized graphs)

    def build_branch(ei, ea):
        es, ev = ea                                           # (E, se), (E, ve, 3)
        src = ei[0].astype(jnp.int32)
        dst = ei[1].astype(jnp.int32)
        e = es.shape[0]
        ms = jnp.concatenate([x_s[src], es, x_s[dst]], axis=-1)            # (E, 2ns+se)
        ev3 = jnp.transpose(ev, (2, 0, 1))                                 # (3, E, ve)
        mv = jnp.concatenate([x_v3[:, src, :], ev3, x_v3[:, dst, :]], -1)  # (3, E, 2nv+ve)
        deg = jax.ops.segment_sum(jnp.ones((e,), jnp.float32), dst,
                                  num_segments=n_pad)
        inv = (1.0 / jnp.maximum(deg, 1.0))[dst]                           # scatter-mean
        pe = e_pad - e
        ms = jnp.pad(ms, ((0, pe), (0, 0)))
        mv = jnp.pad(mv, ((0, 0), (0, pe), (0, 0)))
        dstp = jnp.pad(dst, (0, pe), constant_values=-1).reshape(1, e_pad)
        invp = jnp.pad(inv, (0, pe)).reshape(e_pad, 1)
        return ms, mv, dstp, invp

    # TODO(synk): for production-scale E the gather/concat below should move
    # in-kernel (scalar-prefetched src/dst + DMA gather) to cut HBM traffic.
    b0 = build_branch(edge_index, edge_attr)
    b1 = build_branch(extra_edge_index, extra_edge_attr)
    ms = jnp.stack([b0[0], b1[0]])                 # (2, E_pad, 2ns+se)
    mv = jnp.stack([b0[1], b1[1]])                 # (2, 3, E_pad, 2nv+ve)
    dsts = jnp.stack([b0[2], b1[2]])               # (2, 1, E_pad)
    invs = jnp.stack([b0[3], b1[3]])               # (2, E_pad, 1)

    w_knn, layouts = pack_gvp_chain(knn_chain)
    w_sp, _ = pack_gvp_chain(sp_chain)             # identical layout (same dims)
    wsl = jnp.stack([w_knn, w_sp])                 # (2, RW, CW)

    s_in = ms.shape[-1]
    v_in = mv.shape[-1]
    so = knn_chain[-1]["ws"].shape[1]
    vo = knn_chain[-1]["wv"].shape[1]
    out_w = so + 3 * vo
    n_et = e_pad // te

    kern = functools.partial(_conv_kernel, layouts=layouts)
    return pl.pallas_call(
        kern,
        grid=(2, n_et),                            # (branch, edge-tile); output resident
        in_specs=[
            pl.BlockSpec((1, te, s_in), lambda b, e: (b, e, 0)),
            pl.BlockSpec((1, 3, te, v_in), lambda b, e: (b, 0, e, 0)),
            pl.BlockSpec((1, 1, te), lambda b, e: (b, 0, e)),
            pl.BlockSpec((1, te, 1), lambda b, e: (b, e, 0)),
            pl.BlockSpec((1,) + w_knn.shape, lambda b, e: (b, 0, 0)),
        ],
        out_specs=pl.BlockSpec((n_pad, out_w), lambda b, e: (0, 0)),
        out_shape=jax.ShapeDtypeStruct((n_pad, out_w), jnp.float32),
        compiler_params=pltpu.CompilerParams(
            dimension_semantics=("arbitrary", "arbitrary"),
            vmem_limit_bytes=_vmem_limit_bytes()),
    )(ms, mv, dsts, invs, wsl)


# ----------------------------------------------------------------------------
# Fused node-path kernel: residual + LN -> 2-GVP feed-forward -> residual + LN,
# node-tiled with a megacore-parallel grid.
# ----------------------------------------------------------------------------
def _node_kernel(xs_ref, xv_ref, dh_ref, g0_ref, b0_ref, wff_ref, g1_ref, b1_ref,
                 os_ref, ov_ref, *, ff_layouts, ns, nv):
    tn = xs_ref.shape[0]
    xv = xv_ref[...]                                          # (3, TN, nv)
    v0 = jnp.concatenate([xv[0], xv[1], xv[2]], axis=0)       # (3TN, nv)

    dh = dh_ref[...]                                          # (TN, ns+3nv) lane-dense
    ds = dh[:, :ns]
    dv = jnp.concatenate([dh[:, ns:ns + nv],
                          dh[:, ns + nv:ns + 2 * nv],
                          dh[:, ns + 2 * nv:]], axis=0)       # (3TN, nv)

    # graph_cat='sum' residual + LayerNorm (Dropout is identity in eval mode)
    s, v = _layernorm_tuple(xs_ref[...] + ds, v0 + dv, g0_ref[...], b0_ref[...])

    w = wff_ref[...]
    fs, fv = s, v
    n_gvp = len(ff_layouts)
    for li, lay in enumerate(ff_layouts):
        last = li == n_gvp - 1            # last FF GVP: activations=(None, None)
        fs, fv = _gvp_compute(fs, fv, *_slice_gvp_weights(w, lay),
                              scalar_act=not last, vector_act=not last)

    s, v = _layernorm_tuple(s + fs, v + fv, g1_ref[...], b1_ref[...])
    os_ref[...] = s
    ov_ref[0] = v[:tn]
    ov_ref[1] = v[tn:2 * tn]
    ov_ref[2] = v[2 * tn:]


def node_path_apply(params, x_s, x_v3, dh, tn):
    n_pad, ns = x_s.shape
    nv = x_v3.shape[-1]
    wff, ff_layouts = pack_gvp_chain(params["ff_func"])
    kern = functools.partial(_node_kernel, ff_layouts=ff_layouts, ns=ns, nv=nv)
    return pl.pallas_call(
        kern,
        grid=(n_pad // tn,),                   # node-tiled, megacore-parallel
        in_specs=[
            pl.BlockSpec((tn, ns), lambda i: (i, 0)),
            pl.BlockSpec((3, tn, nv), lambda i: (0, i, 0)),
            pl.BlockSpec((tn, ns + 3 * nv), lambda i: (i, 0)),
            pl.BlockSpec((1, ns), lambda i: (0, 0)),
            pl.BlockSpec((1, ns), lambda i: (0, 0)),
            pl.BlockSpec(wff.shape, lambda i: (0, 0)),
            pl.BlockSpec((1, ns), lambda i: (0, 0)),
            pl.BlockSpec((1, ns), lambda i: (0, 0)),
        ],
        out_specs=(pl.BlockSpec((tn, ns), lambda i: (i, 0)),
                   pl.BlockSpec((3, tn, nv), lambda i: (0, i, 0))),
        out_shape=(jax.ShapeDtypeStruct((n_pad, ns), jnp.float32),
                   jax.ShapeDtypeStruct((3, n_pad, nv), jnp.float32)),
        compiler_params=pltpu.CompilerParams(
            dimension_semantics=("parallel",),
            vmem_limit_bytes=_vmem_limit_bytes()),
    )(x_s, x_v3, dh, params["norm0"]["gamma"], params["norm0"]["beta"],
      wff, params["norm1"]["gamma"], params["norm1"]["beta"])


# ----------------------------------------------------------------------------
# Full MR_GVPConvLayer forward (graph_cat='sum', eval mode) — 2 kernel launches
# ----------------------------------------------------------------------------
def mr_gvp_conv_layer_forward(params, x, edge_index, edge_attr,
                              extra_edge_index, extra_edge_attr):
    x_s, x_v = x                                   # (N, ns), (N, nv, 3)
    n, _ = x_s.shape
    nv = x_v.shape[1]

    tn = 8 if n <= 64 else 128                     # node tile (sublane-aligned)
    n_pad = _round_up(n, tn)

    xs_p = jnp.pad(x_s, ((0, n_pad - n), (0, 0)))
    xv3 = jnp.transpose(x_v, (2, 0, 1))            # (3, N, nv) component-major
    xv3_p = jnp.pad(xv3, ((0, 0), (0, n_pad - n), (0, 0)))

    dh = fused_conv_apply(params["knn_conv"], params["spatial_conv"],
                          xs_p, xv3_p, edge_index, edge_attr,
                          extra_edge_index, extra_edge_attr, n_pad)

    os_p, ov_p = node_path_apply(params, xs_p, xv3_p, dh, tn)
    out_s = os_p[:n]
    out_v = jnp.transpose(ov_p[:, :n, :], (1, 2, 0))   # back to (N, nv, 3)
    return out_s, out_v


# ----------------------------------------------------------------------------
# Deterministic parameter construction (shapes dictated by the module __init__)
# ----------------------------------------------------------------------------
def init_gvp_params(key, in_dims, out_dims):
    si, vi = in_dims
    so, vo = out_dims
    h = max(vi, vo)
    k1, k2, k3, k4 = jax.random.split(key, 4)
    return dict(
        wh=jax.random.normal(k1, (vi, h), jnp.float32) / jnp.sqrt(float(vi)),
        # stacked [Ws_s ; Ws_h]: first si rows multiply s, next h rows multiply vn
        ws=jax.random.normal(k2, (si + h, so), jnp.float32) / jnp.sqrt(float(si + h)),
        bs=jax.random.normal(k3, (1, so), jnp.float32) * 0.1,
        wv=jax.random.normal(k4, (h, vo), jnp.float32) / jnp.sqrt(float(h)),
    )


def init_params(key, node_dims, edge_dims, n_message=3, n_feedforward=2):
    ns, nv = node_dims
    es, ev = edge_dims
    keys = iter(jax.random.split(key, 16))
    msg_in = (2 * ns + es, 2 * nv + ev)

    def message_chain():
        ps = [init_gvp_params(next(keys), msg_in, node_dims)]
        for _ in range(n_message - 2):
            ps.append(init_gvp_params(next(keys), node_dims, node_dims))
        ps.append(init_gvp_params(next(keys), node_dims, node_dims))
        return ps

    hid = (4 * ns, 2 * nv)
    ff = [init_gvp_params(next(keys), node_dims, hid)]
    for _ in range(n_feedforward - 2):
        ff.append(init_gvp_params(next(keys), hid, hid))
    ff.append(init_gvp_params(next(keys), hid, node_dims))

    def ln_params():
        return dict(gamma=jnp.ones((1, ns), jnp.float32),
                    beta=jnp.zeros((1, ns), jnp.float32))

    return dict(knn_conv=message_chain(), spatial_conv=message_chain(),
                ff_func=ff, norm0=ln_params(), norm1=ln_params())


# ----------------------------------------------------------------------------
if __name__ == "__main__":
    key = jax.random.PRNGKey(0)
    node_dims = (16, 4)       # (n_scalar, n_vector)
    edge_dims = (8, 2)
    num_nodes = 12

    ks = jax.random.split(key, 8)
    x_s = jax.random.normal(ks[0], (num_nodes, node_dims[0]), jnp.float32)
    x_v = jax.random.normal(ks[1], (num_nodes, node_dims[1], 3), jnp.float32)

    idx = jnp.arange(num_nodes)
    # knn graph: each node receives from neighbours +1 and +2 (24 edges)
    edge_index = jnp.stack([
        jnp.concatenate([(idx + 1) % num_nodes, (idx + 2) % num_nodes]),
        jnp.concatenate([idx, idx]),
    ]).astype(jnp.int32)
    # spatial graph: each node receives from neighbours +3 and +5 (24 edges)
    extra_edge_index = jnp.stack([
        jnp.concatenate([(idx + 3) % num_nodes, (idx + 5) % num_nodes]),
        jnp.concatenate([idx, idx]),
    ]).astype(jnp.int32)

    n_edges = edge_index.shape[1]
    e_s = jax.random.normal(ks[2], (n_edges, edge_dims[0]), jnp.float32)
    e_v = jax.random.normal(ks[3], (n_edges, edge_dims[1], 3), jnp.float32)
    ee_s = jax.random.normal(ks[4], (n_edges, edge_dims[0]), jnp.float32)
    ee_v = jax.random.normal(ks[5], (n_edges, edge_dims[1], 3), jnp.float32)

    params = init_params(ks[6], node_dims, edge_dims)

    fwd = jax.jit(mr_gvp_conv_layer_forward)
    out_s, out_v = fwd(params, (x_s, x_v), edge_index, (e_s, e_v),
                       extra_edge_index, (ee_s, ee_v))
    jax.block_until_ready((out_s, out_v))

    assert out_s.shape == (num_nodes, node_dims[0])
    assert out_v.shape == (num_nodes, node_dims[1], 3)
    assert bool(jnp.all(jnp.isfinite(out_s))) and bool(jnp.all(jnp.isfinite(out_v)))
    print("KERNEL_OK")
</pallas_src>

<mosaic_0001>
module attributes {stable_mosaic.version = 11 : i64} {
  func.func @_conv_kernel(%arg0: i32, %arg1: i32, %arg2: memref<1x24x40xf32, #tpu.memory_space<vmem>>, %arg3: memref<1x3x24x10xf32, #tpu.memory_space<vmem>>, %arg4: memref<1x1x24xi32, #tpu.memory_space<vmem>>, %arg5: memref<1x24x1xf32, #tpu.memory_space<vmem>>, %arg6: memref<1x192x16xf32, #tpu.memory_space<vmem>>, %arg7: memref<16x28xf32, #tpu.memory_space<vmem>>) attributes {dimension_semantics = [#tpu.dimension_semantics<arbitrary>, #tpu.dimension_semantics<arbitrary>], iteration_bounds = array<i64: 2, 1>, scalar_prefetch = 0 : i64, scratch_operands = 0 : i64, tpu.core_type = #tpu.core_type<tc>, window_params = [{transform_indices = @transform_0, window_bounds = array<i64: 1, 24, 40>}, {transform_indices = @transform_1, window_bounds = array<i64: 1, 3, 24, 10>}, {transform_indices = @transform_2, window_bounds = array<i64: 1, 1, 24>}, {transform_indices = @transform_3, window_bounds = array<i64: 1, 24, 1>}, {transform_indices = @transform_4, window_bounds = array<i64: 1, 192, 16>}, {pipeline_mode = #tpu.pipeline_mode<synchronous>, transform_indices = @transform_5, window_bounds = array<i64: 16, 28>}]} {
    %c0 = arith.constant 0 : index
    %c0_0 = arith.constant 0 : index
    %c0_1 = arith.constant 0 : index
    %0 = vector.load %arg2[%c0, %c0_0, %c0_1] : memref<1x24x40xf32, #tpu.memory_space<vmem>>, vector<1x24x40xf32>
    %1 = vector.shape_cast %0 : vector<1x24x40xf32> to vector<24x40xf32>
    %c0_2 = arith.constant 0 : index
    %c0_3 = arith.constant 0 : index
    %c0_4 = arith.constant 0 : index
    %c0_5 = arith.constant 0 : index
    %2 = vector.load %arg3[%c0_2, %c0_3, %c0_4, %c0_5] : memref<1x3x24x10xf32, #tpu.memory_space<vmem>>, vector<1x3x24x10xf32>
    %3 = vector.extract_strided_slice %2 {offsets = [0, 0, 0, 0], sizes = [1, 1, 24, 10], strides = [1, 1, 1, 1]} : vector<1x3x24x10xf32> to vector<1x1x24x10xf32>
    %4 = vector.shape_cast %3 : vector<1x1x24x10xf32> to vector<24x10xf32>
    %5 = vector.extract_strided_slice %2 {offsets = [0, 1, 0, 0], sizes = [1, 1, 24, 10], strides = [1, 1, 1, 1]} : vector<1x3x24x10xf32> to vector<1x1x24x10xf32>
    %6 = vector.shape_cast %5 : vector<1x1x24x10xf32> to vector<24x10xf32>
    %7 = vector.extract_strided_slice %2 {offsets = [0, 2, 0, 0], sizes = [1, 1, 24, 10], strides = [1, 1, 1, 1]} : vector<1x3x24x10xf32> to vector<1x1x24x10xf32>
    %8 = vector.shape_cast %7 : vector<1x1x24x10xf32> to vector<24x10xf32>
    %9 = tpu.concatenate %4, %6, %8 in 0 : vector<24x10xf32>, vector<24x10xf32>, vector<24x10xf32> -> vector<72x10xf32>
    %c0_6 = arith.constant 0 : index
    %c0_7 = arith.constant 0 : index
    %c0_8 = arith.constant 0 : index
    %10 = vector.load %arg6[%c0_6, %c0_7, %c0_8] : memref<1x192x16xf32, #tpu.memory_space<vmem>>, vector<1x192x16xf32>
    %11 = vector.shape_cast %10 : vector<1x192x16xf32> to vector<192x16xf32>
    %12 = vector.extract_strided_slice %11 {offsets = [0, 0], sizes = [10, 10], strides = [1, 1]} : vector<192x16xf32> to vector<10x10xf32>
    %13 = vector.extract_strided_slice %11 {offsets = [16, 0], sizes = [50, 16], strides = [1, 1]} : vector<192x16xf32> to vector<50x16xf32>
    %14 = vector.extract_strided_slice %11 {offsets = [72, 0], sizes = [1, 16], strides = [1, 1]} : vector<192x16xf32> to vector<1x16xf32>
    %15 = vector.extract_strided_slice %11 {offsets = [80, 0], sizes = [10, 4], strides = [1, 1]} : vector<192x16xf32> to vector<10x4xf32>
    %16 = arith.truncf %9 : vector<72x10xf32> to vector<72x10xbf16>
    %17 = arith.truncf %12 : vector<10x10xf32> to vector<10x10xbf16>
    %cst = arith.constant dense<0.000000e+00> : vector<72x10xf32>
    %18 = tpu.matmul %16, %17, %cst {dimension_numbers = #tpu.dot_dimension_numbers<[1], [0], [0], [1], [0, 0, 1, 1], [], []>} : vector<72x10xbf16>, vector<10x10xbf16>, vector<72x10xf32> -> vector<72x10xf32>
    %19 = vector.extract_strided_slice %18 {offsets = [0, 0], sizes = [24, 10], strides = [1, 1]} : vector<72x10xf32> to vector<24x10xf32>
    %20 = vector.extract_strided_slice %18 {offsets = [24, 0], sizes = [24, 10], strides = [1, 1]} : vector<72x10xf32> to vector<24x10xf32>
    %21 = vector.extract_strided_slice %18 {offsets = [48, 0], sizes = [24, 10], strides = [1, 1]} : vector<72x10xf32> to vector<24x10xf32>
    %22 = arith.mulf %19, %19 : vector<24x10xf32>
    %23 = arith.mulf %20, %20 : vector<24x10xf32>
    %24 = arith.addf %22, %23 : vector<24x10xf32>
    %25 = arith.mulf %21, %21 : vector<24x10xf32>
    %26 = arith.addf %24, %25 : vector<24x10xf32>
    %cst_9 = arith.constant 9.99999993E-9 : f32
    %27 = vector.broadcast %cst_9 : f32 to vector<24x10xf32>
    %28 = arith.maximumf %26, %27 : vector<24x10xf32>
    %29 = math.sqrt %28 : vector<24x10xf32>
    %30 = tpu.concatenate %1, %29 in 1 : vector<24x40xf32>, vector<24x10xf32> -> vector<24x50xf32>
    %31 = arith.truncf %30 : vector<24x50xf32> to vector<24x50xbf16>
    %32 = arith.truncf %13 : vector<50x16xf32> to vector<50x16xbf16>
    %cst_10 = arith.constant dense<0.000000e+00> : vector<24x16xf32>
    %33 = tpu.matmul %31, %32, %cst_10 {dimension_numbers = #tpu.dot_dimension_numbers<[1], [0], [0], [1], [0, 0, 1, 1], [], []>} : vector<24x50xbf16>, vector<50x16xbf16>, vector<24x16xf32> -> vector<24x16xf32>
    %34 = vector.broadcast %14 : vector<1x16xf32> to vector<24x16xf32>
    %35 = arith.addf %33, %34 : vector<24x16xf32>
    %36 = arith.truncf %18 : vector<72x10xf32> to vector<72x10xbf16>
    %37 = arith.truncf %15 : vector<10x4xf32> to vector<10x4xbf16>
    %cst_11 = arith.constant dense<0.000000e+00> : vector<72x4xf32>
    %38 = tpu.matmul %36, %37, %cst_11 {dimension_numbers = #tpu.dot_dimension_numbers<[1], [0], [0], [1], [0, 0, 1, 1], [], []>} : vector<72x10xbf16>, vector<10x4xbf16>, vector<72x4xf32> -> vector<72x4xf32>
    %39 = vector.extract_strided_slice %38 {offsets = [0, 0], sizes = [24, 4], strides = [1, 1]} : vector<72x4xf32> to vector<24x4xf32>
    %40 = vector.extract_strided_slice %38 {offsets = [24, 0], sizes = [24, 4], strides = [1, 1]} : vector<72x4xf32> to vector<24x4xf32>
    %41 = vector.extract_strided_slice %38 {offsets = [48, 0], sizes = [24, 4], strides = [1, 1]} : vector<72x4xf32> to vector<24x4xf32>
    %42 = arith.mulf %39, %39 : vector<24x4xf32>
    %43 = arith.mulf %40, %40 : vector<24x4xf32>
    %44 = arith.addf %42, %43 : vector<24x4xf32>
    %45 = arith.mulf %41, %41 : vector<24x4xf32>
    %46 = arith.addf %44, %45 : vector<24x4xf32>
    %cst_12 = arith.constant 9.99999993E-9 : f32
    %47 = vector.broadcast %cst_12 : f32 to vector<24x4xf32>
    %48 = arith.maximumf %46, %47 : vector<24x4xf32>
    %49 = math.sqrt %48 : vector<24x4xf32>
    %50 = arith.negf %49 : vector<24x4xf32>
    %51 = math.exp %50 : vector<24x4xf32>
    %cst_13 = arith.constant 1.000000e+00 : f32
    %52 = vector.broadcast %cst_13 : f32 to vector<24x4xf32>
    %53 = arith.addf %52, %51 : vector<24x4xf32>
    %54 = arith.divf %52, %53 : vector<24x4xf32>
    %55 = tpu.concatenate %54, %54, %54 in 0 : vector<24x4xf32>, vector<24x4xf32>, vector<24x4xf32> -> vector<72x4xf32>
    %56 = arith.mulf %38, %55 : vector<72x4xf32>
    %cst_14 = arith.constant 0.000000e+00 : f32
    %57 = vector.broadcast %cst_14 : f32 to vector<24x16xf32>
    %58 = arith.maximumf %35, %57 : vector<24x16xf32>
    %59 = vector.extract_strided_slice %11 {offsets = [96, 0], sizes = [4, 4], strides = [1, 1]} : vector<192x16xf32> to vector<4x4xf32>
    %60 = vector.extract_strided_slice %11 {offsets = [104, 0], sizes = [20, 16], strides = [1, 1]} : vector<192x16xf32> to vector<20x16xf32>
    %61 = vector.extract_strided_slice %11 {offsets = [128, 0], sizes = [1, 16], strides = [1, 1]} : vector<192x16xf32> to vector<1x16xf32>
    %62 = vector.extract_strided_slice %11 {offsets = [136, 0], sizes = [4, 4], strides = [1, 1]} : vector<192x16xf32> to vector<4x4xf32>
    %63 = arith.truncf %56 : vector<72x4xf32> to vector<72x4xbf16>
    %64 = arith.truncf %59 : vector<4x4xf32> to vector<4x4xbf16>
    %cst_15 = arith.constant dense<0.000000e+00> : vector<72x4xf32>
    %65 = tpu.matmul %63, %64, %cst_15 {dimension_numbers = #tpu.dot_dimension_numbers<[1], [0], [0], [1], [0, 0, 1, 1], [], []>} : vector<72x4xbf16>, vector<4x4xbf16>, vector<72x4xf32> -> vector<72x4xf32>
    %66 = vector.extract_strided_slice %65 {offsets = [0, 0], sizes = [24, 4], strides = [1, 1]} : vector<72x4xf32> to vector<24x4xf32>
    %67 = vector.extract_strided_slice %65 {offsets = [24, 0], sizes = [24, 4], strides = [1, 1]} : vector<72x4xf32> to vector<24x4xf32>
    %68 = vector.extract_strided_slice %65 {offsets = [48, 0], sizes = [24, 4], strides = [1, 1]} : vector<72x4xf32> to vector<24x4xf32>
    %69 = arith.mulf %66, %66 : vector<24x4xf32>
    %70 = arith.mulf %67, %67 : vector<24x4xf32>
    %71 = arith.addf %69, %70 : vector<24x4xf32>
    %72 = arith.mulf %68, %68 : vector<24x4xf32>
    %73 = arith.addf %71, %72 : vector<24x4xf32>
    %cst_16 = arith.constant 9.99999993E-9 : f32
    %74 = vector.broadcast %cst_16 : f32 to vector<24x4xf32>
    %75 = arith.maximumf %73, %74 : vector<24x4xf32>
    %76 = math.sqrt %75 : vector<24x4xf32>
    %77 = tpu.concatenate %58, %76 in 1 : vector<24x16xf32>, vector<24x4xf32> -> vector<24x20xf32>
    %78 = arith.truncf %77 : vector<24x20xf32> to vector<24x20xbf16>
    %79 = arith.truncf %60 : vector<20x16xf32> to vector<20x16xbf16>
    %cst_17 = arith.constant dense<0.000000e+00> : vector<24x16xf32>
    %80 = tpu.matmul %78, %79, %cst_17 {dimension_numbers = #tpu.dot_dimension_numbers<[1], [0], [0], [1], [0, 0, 1, 1], [], []>} : vector<24x20xbf16>, vector<20x16xbf16>, vector<24x16xf32> -> vector<24x16xf32>
    %81 = vector.broadcast %61 : vector<1x16xf32> to vector<24x16xf32>
    %82 = arith.addf %80, %81 : vector<24x16xf32>
    %83 = arith.truncf %65 : vector<72x4xf32> to vector<72x4xbf16>
    %84 = arith.truncf %62 : vector<4x4xf32> to vector<4x4xbf16>
    %cst_18 = arith.constant dense<0.000000e+00> : vector<72x4xf32>
    %85 = tpu.matmul %83, %84, %cst_18 {dimension_numbers = #tpu.dot_dimension_numbers<[1], [0], [0], [1], [0, 0, 1, 1], [], []>} : vector<72x4xbf16>, vector<4x4xbf16>, vector<72x4xf32> -> vector<72x4xf32>
    %86 = vector.extract_strided_slice %85 {offsets = [0, 0], sizes = [24, 4], strides = [1, 1]} : vector<72x4xf32> to vector<24x4xf32>
    %87 = vector.extract_strided_slice %85 {offsets = [24, 0], sizes = [24, 4], strides = [1, 1]} : vector<72x4xf32> to vector<24x4xf32>
    %88 = vector.extract_strided_slice %85 {offsets = [48, 0], sizes = [24, 4], strides = [1, 1]} : vector<72x4xf32> to vector<24x4xf32>
    %89 = arith.mulf %86, %86 : vector<24x4xf32>
    %90 = arith.mulf %87, %87 : vector<24x4xf32>
    %91 = arith.addf %89, %90 : vector<24x4xf32>
    %92 = arith.mulf %88, %88 : vector<24x4xf32>
    %93 = arith.addf %91, %92 : vector<24x4xf32>
    %cst_19 = arith.constant 9.99999993E-9 : f32
    %94 = vector.broadcast %cst_19 : f32 to vector<24x4xf32>
    %95 = arith.maximumf %93, %94 : vector<24x4xf32>
    %96 = math.sqrt %95 : vector<24x4xf32>
    %97 = arith.negf %96 : vector<24x4xf32>
    %98 = math.exp %97 : vector<24x4xf32>
    %cst_20 = arith.constant 1.000000e+00 : f32
    %99 = vector.broadcast %cst_20 : f32 to vector<24x4xf32>
    %100 = arith.addf %99, %98 : vector<24x4xf32>
    %101 = arith.divf %99, %100 : vector<24x4xf32>
    %102 = tpu.concatenate %101, %101, %101 in 0 : vector<24x4xf32>, vector<24x4xf32>, vector<24x4xf32> -> vector<72x4xf32>
    %103 = arith.mulf %85, %102 : vector<72x4xf32>
    %cst_21 = arith.constant 0.000000e+00 : f32
    %104 = vector.broadcast %cst_21 : f32 to vector<24x16xf32>
    %105 = arith.maximumf %82, %104 : vector<24x16xf32>
    %106 = vector.extract_strided_slice %11 {offsets = [144, 0], sizes = [4, 4], strides = [1, 1]} : vector<192x16xf32> to vector<4x4xf32>
    %107 = vector.extract_strided_slice %11 {offsets = [152, 0], sizes = [20, 16], strides = [1, 1]} : vector<192x16xf32> to vector<20x16xf32>
    %108 = vector.extract_strided_slice %11 {offsets = [176, 0], sizes = [1, 16], strides = [1, 1]} : vector<192x16xf32> to vector<1x16xf32>
    %109 = vector.extract_strided_slice %11 {offsets = [184, 0], sizes = [4, 4], strides = [1, 1]} : vector<192x16xf32> to vector<4x4xf32>
    %110 = arith.truncf %103 : vector<72x4xf32> to vector<72x4xbf16>
    %111 = arith.truncf %106 : vector<4x4xf32> to vector<4x4xbf16>
    %cst_22 = arith.constant dense<0.000000e+00> : vector<72x4xf32>
    %112 = tpu.matmul %110, %111, %cst_22 {dimension_numbers = #tpu.dot_dimension_numbers<[1], [0], [0], [1], [0, 0, 1, 1], [], []>} : vector<72x4xbf16>, vector<4x4xbf16>, vector<72x4xf32> -> vector<72x4xf32>
    %113 = vector.extract_strided_slice %112 {offsets = [0, 0], sizes = [24, 4], strides = [1, 1]} : vector<72x4xf32> to vector<24x4xf32>
    %114 = vector.extract_strided_slice %112 {offsets = [24, 0], sizes = [24, 4], strides = [1, 1]} : vector<72x4xf32> to vector<24x4xf32>
    %115 = vector.extract_strided_slice %112 {offsets = [48, 0], sizes = [24, 4], strides = [1, 1]} : vector<72x4xf32> to vector<24x4xf32>
    %116 = arith.mulf %113, %113 : vector<24x4xf32>
    %117 = arith.mulf %114, %114 : vector<24x4xf32>
    %118 = arith.addf %116, %117 : vector<24x4xf32>
    %119 = arith.mulf %115, %115 : vector<24x4xf32>
    %120 = arith.addf %118, %119 : vector<24x4xf32>
    %cst_23 = arith.constant 9.99999993E-9 : f32
    %121 = vector.broadcast %cst_23 : f32 to vector<24x4xf32>
    %122 = arith.maximumf %120, %121 : vector<24x4xf32>
    %123 = math.sqrt %122 : vector<24x4xf32>
    %124 = tpu.concatenate %105, %123 in 1 : vector<24x16xf32>, vector<24x4xf32> -> vector<24x20xf32>
    %125 = arith.truncf %124 : vector<24x20xf32> to vector<24x20xbf16>
    %126 = arith.truncf %107 : vector<20x16xf32> to vector<20x16xbf16>
    %cst_24 = arith.constant dense<0.000000e+00> : vector<24x16xf32>
    %127 = tpu.matmul %125, %126, %cst_24 {dimension_numbers = #tpu.dot_dimension_numbers<[1], [0], [0], [1], [0, 0, 1, 1], [], []>} : vector<24x20xbf16>, vector<20x16xbf16>, vector<24x16xf32> -> vector<24x16xf32>
    %128 = vector.broadcast %108 : vector<1x16xf32> to vector<24x16xf32>
    %129 = arith.addf %127, %128 : vector<24x16xf32>
    %130 = arith.truncf %112 : vector<72x4xf32> to vector<72x4xbf16>
    %131 = arith.truncf %109 : vector<4x4xf32> to vector<4x4xbf16>
    %cst_25 = arith.constant dense<0.000000e+00> : vector<72x4xf32>
    %132 = tpu.matmul %130, %131, %cst_25 {dimension_numbers = #tpu.dot_dimension_numbers<[1], [0], [0], [1], [0, 0, 1, 1], [], []>} : vector<72x4xbf16>, vector<4x4xbf16>, vector<72x4xf32> -> vector<72x4xf32>
    %c0_26 = arith.constant 0 : index
    %c0_27 = arith.constant 0 : index
    %c0_28 = arith.constant 0 : index
    %133 = vector.load %arg5[%c0_26, %c0_27, %c0_28] : memref<1x24x1xf32, #tpu.memory_space<vmem>>, vector<1x24x1xf32>
    %134 = vector.shape_cast %133 : vector<1x24x1xf32> to vector<24x1xf32>
    %135 = vector.extract_strided_slice %132 {offsets = [0, 0], sizes = [24, 4], strides = [1, 1]} : vector<72x4xf32> to vector<24x4xf32>
    %136 = vector.extract_strided_slice %132 {offsets = [24, 0], sizes = [24, 4], strides = [1, 1]} : vector<72x4xf32> to vector<24x4xf32>
    %137 = vector.extract_strided_slice %132 {offsets = [48, 0], sizes = [24, 4], strides = [1, 1]} : vector<72x4xf32> to vector<24x4xf32>
    %138 = tpu.concatenate %129, %135, %136, %137 in 1 : vector<24x16xf32>, vector<24x4xf32>, vector<24x4xf32>, vector<24x4xf32> -> vector<24x28xf32>
    %139 = vector.broadcast %134 : vector<24x1xf32> to vector<24x28xf32>
    %140 = arith.mulf %138, %139 : vector<24x28xf32>
    %141 = arith.truncf %140 : vector<24x28xf32> to vector<24x28xbf16>
    %c0_29 = arith.constant 0 : index
    %c0_30 = arith.constant 0 : index
    %c0_31 = arith.constant 0 : index
    %142 = vector.load %arg4[%c0_29, %c0_30, %c0_31] : memref<1x1x24xi32, #tpu.memory_space<vmem>>, vector<1x1x24xi32>
    %143 = vector.shape_cast %142 : vector<1x1x24xi32> to vector<1x24xi32>
    %144 = tpu.iota {dimensions = array<i32: 0>} : vector<16x24xi32>
    %145 = vector.broadcast %143 : vector<1x24xi32> to vector<16x24xi32>
    %146 = arith.cmpi eq, %144, %145 : vector<16x24xi32>
    %cst_32 = arith.constant 1.000000e+00 : f32
    %cst_33 = arith.constant 0.000000e+00 : f32
    %147 = vector.broadcast %cst_32 : f32 to vector<16x24xf32>
    %148 = vector.broadcast %cst_33 : f32 to vector<16x24xf32>
    %149 = arith.select %146, %147, %148 : vector<16x24xi1>, vector<16x24xf32>
    %150 = arith.truncf %149 : vector<16x24xf32> to vector<16x24xbf16>
    %cst_34 = arith.constant dense<0.000000e+00> : vector<16x28xf32>
    %151 = tpu.matmul %150, %141, %cst_34 {dimension_numbers = #tpu.dot_dimension_numbers<[1], [0], [0], [1], [0, 0, 1, 1], [], []>} : vector<16x24xbf16>, vector<24x28xbf16>, vector<16x28xf32> -> vector<16x28xf32>
    %c0_i32 = arith.constant 0 : i32
    %152 = arith.cmpi eq, %arg0, %c0_i32 : i32
    %c0_i32_35 = arith.constant 0 : i32
    %153 = arith.cmpi eq, %arg1, %c0_i32_35 : i32
    %154 = arith.andi %152, %153 : i1
    %155 = arith.extui %154 : i1 to i32
    %c0_i32_36 = arith.constant 0 : i32
    %156 = arith.cmpi ne, %155, %c0_i32_36 : i32
    scf.if %156 {
      %cst_41 = arith.constant 0.000000e+00 : f32
      %160 = vector.broadcast %cst_41 : f32 to vector<16x28xf32>
      %c0_42 = arith.constant 0 : index
      %c0_43 = arith.constant 0 : index
      %161 = vector.load %arg7[%c0_42, %c0_43] : memref<16x28xf32, #tpu.memory_space<vmem>>, vector<16x28xf32>
      tpu.vector_store %arg7[%c0_42, %c0_43], %160 {strides = array<i32>} : memref<16x28xf32, #tpu.memory_space<vmem>>, vector<16x28xf32>,
    } else {
    }
    %c0_37 = arith.constant 0 : index
    %c0_38 = arith.constant 0 : index
    %157 = vector.load %arg7[%c0_37, %c0_38] : memref<16x28xf32, #tpu.memory_space<vmem>>, vector<16x28xf32>
    %158 = arith.addf %157, %151 : vector<16x28xf32>
    %c0_39 = arith.constant 0 : index
    %c0_40 = arith.constant 0 : index
    %159 = vector.load %arg7[%c0_39, %c0_40] : memref<16x28xf32, #tpu.memory_space<vmem>>, vector<16x28xf32>
    tpu.vector_store %arg7[%c0_39, %c0_40], %158 {strides = array<i32>} : memref<16x28xf32, #tpu.memory_space<vmem>>, vector<16x28xf32>,
    return
  }
  func.func @transform_0(%arg0: i32, %arg1: i32) -> (i32, i32, i32) {
    %c0_i32 = arith.constant 0 : i32
    %c0_i32_0 = arith.constant 0 : i32
    return %arg0, %arg1, %c0_i32 : i32, i32, i32
  }
  func.func @transform_1(%arg0: i32, %arg1: i32) -> (i32, i32, i32, i32) {
    %c0_i32 = arith.constant 0 : i32
    %c0_i32_0 = arith.constant 0 : i32
    %c0_i32_1 = arith.constant 0 : i32
    return %arg0, %c0_i32, %arg1, %c0_i32_0 : i32, i32, i32, i32
  }
  func.func @transform_2(%arg0: i32, %arg1: i32) -> (i32, i32, i32) {
    %c0_i32 = arith.constant 0 : i32
    %c0_i32_0 = arith.constant 0 : i32
    return %arg0, %c0_i32, %arg1 : i32, i32, i32
  }
  func.func @transform_3(%arg0: i32, %arg1: i32) -> (i32, i32, i32) {
    %c0_i32 = arith.constant 0 : i32
    %c0_i32_0 = arith.constant 0 : i32
    return %arg0, %arg1, %c0_i32 : i32, i32, i32
  }
  func.func @transform_4(%arg0: i32, %arg1: i32) -> (i32, i32, i32) {
    %c0_i32 = arith.constant 0 : i32
    %c0_i32_0 = arith.constant 0 : i32
    %c0_i32_1 = arith.constant 0 : i32
    return %arg0, %c0_i32, %c0_i32_0 : i32, i32, i32
  }
  func.func @transform_5(%arg0: i32, %arg1: i32) -> (i32, i32) {
    %c0_i32 = arith.constant 0 : i32
    %c0_i32_0 = arith.constant 0 : i32
    %c0_i32_1 = arith.constant 0 : i32
    return %c0_i32, %c0_i32_0 : i32, i32
  }
}

module attributes {stable_mosaic.version = 11 : i64} {
  func.func @_node_kernel(%arg0: i32, %arg1: memref<8x16xf32, #tpu.memory_space<vmem>>, %arg2: memref<3x8x4xf32, #tpu.memory_space<vmem>>, %arg3: memref<8x28xf32, #tpu.memory_space<vmem>>, %arg4: memref<1x16xf32, #tpu.memory_space<vmem>>, %arg5: memref<1x16xf32, #tpu.memory_space<vmem>>, %arg6: memref<144x64xf32, #tpu.memory_space<vmem>>, %arg7: memref<1x16xf32, #tpu.memory_space<vmem>>, %arg8: memref<1x16xf32, #tpu.memory_space<vmem>>, %arg9: memref<8x16xf32, #tpu.memory_space<vmem>>, %arg10: memref<3x8x4xf32, #tpu.memory_space<vmem>>) attributes {dimension_semantics = [#tpu.dimension_semantics<parallel>], iteration_bounds = array<i64: 2>, scalar_prefetch = 0 : i64, scratch_operands = 0 : i64, tpu.core_type = #tpu.core_type<tc>, window_params = [{transform_indices = @transform_0, window_bounds = array<i64: 8, 16>}, {transform_indices = @transform_1, window_bounds = array<i64: 3, 8, 4>}, {transform_indices = @transform_2, window_bounds = array<i64: 8, 28>}, {pipeline_mode = #tpu.pipeline_mode<synchronous>, transform_indices = @transform_3, window_bounds = array<i64: 1, 16>}, {pipeline_mode = #tpu.pipeline_mode<synchronous>, transform_indices = @transform_4, window_bounds = array<i64: 1, 16>}, {pipeline_mode = #tpu.pipeline_mode<synchronous>, transform_indices = @transform_5, window_bounds = array<i64: 144, 64>}, {pipeline_mode = #tpu.pipeline_mode<synchronous>, transform_indices = @transform_6, window_bounds = array<i64: 1, 16>}, {pipeline_mode = #tpu.pipeline_mode<synchronous>, transform_indices = @transform_7, window_bounds = array<i64: 1, 16>}, {transform_indices = @transform_8, window_bounds = array<i64: 8, 16>}, {transform_indices = @transform_9, window_bounds = array<i64: 3, 8, 4>}]} {
    %c0 = arith.constant 0 : index
    %c0_0 = arith.constant 0 : index
    %c0_1 = arith.constant 0 : index
    %0 = vector.load %arg2[%c0, %c0_0, %c0_1] : memref<3x8x4xf32, #tpu.memory_space<vmem>>, vector<3x8x4xf32>
    %1 = vector.extract_strided_slice %0 {offsets = [0, 0, 0], sizes = [1, 8, 4], strides = [1, 1, 1]} : vector<3x8x4xf32> to vector<1x8x4xf32>
    %2 = vector.shape_cast %1 : vector<1x8x4xf32> to vector<8x4xf32>
    %3 = vector.extract_strided_slice %0 {offsets = [1, 0, 0], sizes = [1, 8, 4], strides = [1, 1, 1]} : vector<3x8x4xf32> to vector<1x8x4xf32>
    %4 = vector.shape_cast %3 : vector<1x8x4xf32> to vector<8x4xf32>
    %5 = vector.extract_strided_slice %0 {offsets = [2, 0, 0], sizes = [1, 8, 4], strides = [1, 1, 1]} : vector<3x8x4xf32> to vector<1x8x4xf32>
    %6 = vector.shape_cast %5 : vector<1x8x4xf32> to vector<8x4xf32>
    %7 = tpu.concatenate %2, %4, %6 in 0 : vector<8x4xf32>, vector<8x4xf32>, vector<8x4xf32> -> vector<24x4xf32>
    %c0_2 = arith.constant 0 : index
    %c0_3 = arith.constant 0 : index
    %8 = vector.load %arg3[%c0_2, %c0_3] : memref<8x28xf32, #tpu.memory_space<vmem>>, vector<8x28xf32>
    %9 = vector.extract_strided_slice %8 {offsets = [0, 0], sizes = [8, 16], strides = [1, 1]} : vector<8x28xf32> to vector<8x16xf32>
    %10 = vector.extract_strided_slice %8 {offsets = [0, 16], sizes = [8, 4], strides = [1, 1]} : vector<8x28xf32> to vector<8x4xf32>
    %11 = vector.extract_strided_slice %8 {offsets = [0, 20], sizes = [8, 4], strides = [1, 1]} : vector<8x28xf32> to vector<8x4xf32>
    %12 = vector.extract_strided_slice %8 {offsets = [0, 24], sizes = [8, 4], strides = [1, 1]} : vector<8x28xf32> to vector<8x4xf32>
    %13 = tpu.concatenate %10, %11, %12 in 0 : vector<8x4xf32>, vector<8x4xf32>, vector<8x4xf32> -> vector<24x4xf32>
    %c0_4 = arith.constant 0 : index
    %c0_5 = arith.constant 0 : index
    %14 = vector.load %arg1[%c0_4, %c0_5] : memref<8x16xf32, #tpu.memory_space<vmem>>, vector<8x16xf32>
    %15 = arith.addf %14, %9 : vector<8x16xf32>
    %16 = arith.addf %7, %13 : vector<24x4xf32>
    %c0_6 = arith.constant 0 : index
    %c0_7 = arith.constant 0 : index
    %17 = vector.load %arg4[%c0_6, %c0_7] : memref<1x16xf32, #tpu.memory_space<vmem>>, vector<1x16xf32>
    %c0_8 = arith.constant 0 : index
    %c0_9 = arith.constant 0 : index
    %18 = vector.load %arg5[%c0_8, %c0_9] : memref<1x16xf32, #tpu.memory_space<vmem>>, vector<1x16xf32>
    %cst = arith.constant dense<0.000000e+00> : vector<8xf32>
    %19 = vector.multi_reduction <add>, %15, %cst [1] : vector<8x16xf32> to vector<8xf32>
    %20 = vector.shape_cast %19 : vector<8xf32> to vector<8x1xf32>
    %cst_10 = arith.constant 1.600000e+01 : f32
    %21 = vector.broadcast %cst_10 : f32 to vector<8x1xf32>
    %22 = arith.divf %20, %21 : vector<8x1xf32>
    %23 = vector.broadcast %22 : vector<8x1xf32> to vector<8x16xf32>
    %24 = arith.subf %15, %23 : vector<8x16xf32>
    %25 = arith.mulf %24, %24 : vector<8x16xf32>
    %cst_11 = arith.constant dense<0.000000e+00> : vector<8xf32>
    %26 = vector.multi_reduction <add>, %25, %cst_11 [1] : vector<8x16xf32> to vector<8xf32>
    %27 = vector.shape_cast %26 : vector<8xf32> to vector<8x1xf32>
    %cst_12 = arith.constant 1.600000e+01 : f32
    %28 = vector.broadcast %cst_12 : f32 to vector<8x1xf32>
    %29 = arith.divf %27, %28 : vector<8x1xf32>
    %30 = vector.broadcast %22 : vector<8x1xf32> to vector<8x16xf32>
    %31 = arith.subf %15, %30 : vector<8x16xf32>
    %cst_13 = arith.constant 9.99999974E-6 : f32
    %32 = vector.broadcast %cst_13 : f32 to vector<8x1xf32>
    %33 = arith.addf %29, %32 : vector<8x1xf32>
    %34 = math.rsqrt %33 : vector<8x1xf32>
    %35 = vector.broadcast %34 : vector<8x1xf32> to vector<8x16xf32>
    %36 = arith.mulf %31, %35 : vector<8x16xf32>
    %37 = vector.broadcast %17 : vector<1x16xf32> to vector<8x16xf32>
    %38 = arith.mulf %36, %37 : vector<8x16xf32>
    %39 = vector.broadcast %18 : vector<1x16xf32> to vector<8x16xf32>
    %40 = arith.addf %38, %39 : vector<8x16xf32>
    %41 = vector.extract_strided_slice %16 {offsets = [0, 0], sizes = [8, 4], strides = [1, 1]} : vector<24x4xf32> to vector<8x4xf32>
    %42 = vector.extract_strided_slice %16 {offsets = [8, 0], sizes = [8, 4], strides = [1, 1]} : vector<24x4xf32> to vector<8x4xf32>
    %43 = vector.extract_strided_slice %16 {offsets = [16, 0], sizes = [8, 4], strides = [1, 1]} : vector<24x4xf32> to vector<8x4xf32>
    %44 = arith.mulf %41, %41 : vector<8x4xf32>
    %45 = arith.mulf %42, %42 : vector<8x4xf32>
    %46 = arith.addf %44, %45 : vector<8x4xf32>
    %47 = arith.mulf %43, %43 : vector<8x4xf32>
    %48 = arith.addf %46, %47 : vector<8x4xf32>
    %cst_14 = arith.constant 9.99999993E-9 : f32
    %49 = vector.broadcast %cst_14 : f32 to vector<8x4xf32>
    %50 = arith.maximumf %48, %49 : vector<8x4xf32>
    %cst_15 = arith.constant dense<0.000000e+00> : vector<8xf32>
    %51 = vector.multi_reduction <add>, %50, %cst_15 [1] : vector<8x4xf32> to vector<8xf32>
    %52 = vector.shape_cast %51 : vector<8xf32> to vector<8x1xf32>
    %cst_16 = arith.constant 4.000000e+00 : f32
    %53 = vector.broadcast %cst_16 : f32 to vector<8x1xf32>
    %54 = arith.divf %52, %53 : vector<8x1xf32>
    %55 = math.rsqrt %54 : vector<8x1xf32>
    %56 = tpu.concatenate %55, %55, %55 in 0 : vector<8x1xf32>, vector<8x1xf32>, vector<8x1xf32> -> vector<24x1xf32>
    %57 = vector.broadcast %56 : vector<24x1xf32> to vector<24x4xf32>
    %58 = arith.mulf %16, %57 : vector<24x4xf32>
    %c0_17 = arith.constant 0 : index
    %c0_18 = arith.constant 0 : index
    %59 = vector.load %arg6[%c0_17, %c0_18] : memref<144x64xf32, #tpu.memory_space<vmem>>, vector<144x64xf32>
    %60 = vector.extract_strided_slice %59 {offsets = [0, 0], sizes = [4, 8], strides = [1, 1]} : vector<144x64xf32> to vector<4x8xf32>
    %61 = vector.extract_strided_slice %59 {offsets = [8, 0], sizes = [24, 64], strides = [1, 1]} : vector<144x64xf32> to vector<24x64xf32>
    %62 = vector.extract_strided_slice %59 {offsets = [32, 0], sizes = [1, 64], strides = [1, 1]} : vector<144x64xf32> to vector<1x64xf32>
    %63 = vector.extract_strided_slice %59 {offsets = [40, 0], sizes = [8, 8], strides = [1, 1]} : vector<144x64xf32> to vector<8x8xf32>
    %64 = arith.truncf %58 : vector<24x4xf32> to vector<24x4xbf16>
    %65 = arith.truncf %60 : vector<4x8xf32> to vector<4x8xbf16>
    %cst_19 = arith.constant dense<0.000000e+00> : vector<24x8xf32>
    %66 = tpu.matmul %64, %65, %cst_19 {dimension_numbers = #tpu.dot_dimension_numbers<[1], [0], [0], [1], [0, 0, 1, 1], [], []>} : vector<24x4xbf16>, vector<4x8xbf16>, vector<24x8xf32> -> vector<24x8xf32>
    %67 = vector.extract_strided_slice %66 {offsets = [0, 0], sizes = [8, 8], strides = [1, 1]} : vector<24x8xf32> to vector<8x8xf32>
    %68 = vector.extract_strided_slice %66 {offsets = [8, 0], sizes = [8, 8], strides = [1, 1]} : vector<24x8xf32> to vector<8x8xf32>
    %69 = vector.extract_strided_slice %66 {offsets = [16, 0], sizes = [8, 8], strides = [1, 1]} : vector<24x8xf32> to vector<8x8xf32>
    %70 = arith.mulf %67, %67 : vector<8x8xf32>
    %71 = arith.mulf %68, %68 : vector<8x8xf32>
    %72 = arith.addf %70, %71 : vector<8x8xf32>
    %73 = arith.mulf %69, %69 : vector<8x8xf32>
    %74 = arith.addf %72, %73 : vector<8x8xf32>
    %cst_20 = arith.constant 9.99999993E-9 : f32
    %75 = vector.broadcast %cst_20 : f32 to vector<8x8xf32>
    %76 = arith.maximumf %74, %75 : vector<8x8xf32>
    %77 = math.sqrt %76 : vector<8x8xf32>
    %78 = tpu.concatenate %40, %77 in 1 : vector<8x16xf32>, vector<8x8xf32> -> vector<8x24xf32>
    %79 = arith.truncf %78 : vector<8x24xf32> to vector<8x24xbf16>
    %80 = arith.truncf %61 : vector<24x64xf32> to vector<24x64xbf16>
    %cst_21 = arith.constant dense<0.000000e+00> : vector<8x64xf32>
    %81 = tpu.matmul %79, %80, %cst_21 {dimension_numbers = #tpu.dot_dimension_numbers<[1], [0], [0], [1], [0, 0, 1, 1], [], []>} : vector<8x24xbf16>, vector<24x64xbf16>, vector<8x64xf32> -> vector<8x64xf32>
    %82 = vector.broadcast %62 : vector<1x64xf32> to vector<8x64xf32>
    %83 = arith.addf %81, %82 : vector<8x64xf32>
    %84 = arith.truncf %66 : vector<24x8xf32> to vector<24x8xbf16>
    %85 = arith.truncf %63 : vector<8x8xf32> to vector<8x8xbf16>
    %cst_22 = arith.constant dense<0.000000e+00> : vector<24x8xf32>
    %86 = tpu.matmul %84, %85, %cst_22 {dimension_numbers = #tpu.dot_dimension_numbers<[1], [0], [0], [1], [0, 0, 1, 1], [], []>} : vector<24x8xbf16>, vector<8x8xbf16>, vector<24x8xf32> -> vector<24x8xf32>
    %87 = vector.extract_strided_slice %86 {offsets = [0, 0], sizes = [8, 8], strides = [1, 1]} : vector<24x8xf32> to vector<8x8xf32>
    %88 = vector.extract_strided_slice %86 {offsets = [8, 0], sizes = [8, 8], strides = [1, 1]} : vector<24x8xf32> to vector<8x8xf32>
    %89 = vector.extract_strided_slice %86 {offsets = [16, 0], sizes = [8, 8], strides = [1, 1]} : vector<24x8xf32> to vector<8x8xf32>
    %90 = arith.mulf %87, %87 : vector<8x8xf32>
    %91 = arith.mulf %88, %88 : vector<8x8xf32>
    %92 = arith.addf %90, %91 : vector<8x8xf32>
    %93 = arith.mulf %89, %89 : vector<8x8xf32>
    %94 = arith.addf %92, %93 : vector<8x8xf32>
    %cst_23 = arith.constant 9.99999993E-9 : f32
    %95 = vector.broadcast %cst_23 : f32 to vector<8x8xf32>
    %96 = arith.maximumf %94, %95 : vector<8x8xf32>
    %97 = math.sqrt %96 : vector<8x8xf32>
    %98 = arith.negf %97 : vector<8x8xf32>
    %99 = math.exp %98 : vector<8x8xf32>
    %cst_24 = arith.constant 1.000000e+00 : f32
    %100 = vector.broadcast %cst_24 : f32 to vector<8x8xf32>
    %101 = arith.addf %100, %99 : vector<8x8xf32>
    %102 = arith.divf %100, %101 : vector<8x8xf32>
    %103 = tpu.concatenate %102, %102, %102 in 0 : vector<8x8xf32>, vector<8x8xf32>, vector<8x8xf32> -> vector<24x8xf32>
    %104 = arith.mulf %86, %103 : vector<24x8xf32>
    %cst_25 = arith.constant 0.000000e+00 : f32
    %105 = vector.broadcast %cst_25 : f32 to vector<8x64xf32>
    %106 = arith.maximumf %83, %105 : vector<8x64xf32>
    %107 = vector.extract_strided_slice %59 {offsets = [48, 0], sizes = [8, 8], strides = [1, 1]} : vector<144x64xf32> to vector<8x8xf32>
    %108 = vector.extract_strided_slice %59 {offsets = [56, 0], sizes = [72, 16], strides = [1, 1]} : vector<144x64xf32> to vector<72x16xf32>
    %109 = vector.extract_strided_slice %59 {offsets = [128, 0], sizes = [1, 16], strides = [1, 1]} : vector<144x64xf32> to vector<1x16xf32>
    %110 = vector.extract_strided_slice %59 {offsets = [136, 0], sizes = [8, 4], strides = [1, 1]} : vector<144x64xf32> to vector<8x4xf32>
    %111 = arith.truncf %104 : vector<24x8xf32> to vector<24x8xbf16>
    %112 = arith.truncf %107 : vector<8x8xf32> to vector<8x8xbf16>
    %cst_26 = arith.constant dense<0.000000e+00> : vector<24x8xf32>
    %113 = tpu.matmul %111, %112, %cst_26 {dimension_numbers = #tpu.dot_dimension_numbers<[1], [0], [0], [1], [0, 0, 1, 1], [], []>} : vector<24x8xbf16>, vector<8x8xbf16>, vector<24x8xf32> -> vector<24x8xf32>
    %114 = vector.extract_strided_slice %113 {offsets = [0, 0], sizes = [8, 8], strides = [1, 1]} : vector<24x8xf32> to vector<8x8xf32>
    %115 = vector.extract_strided_slice %113 {offsets = [8, 0], sizes = [8, 8], strides = [1, 1]} : vector<24x8xf32> to vector<8x8xf32>
    %116 = vector.extract_strided_slice %113 {offsets = [16, 0], sizes = [8, 8], strides = [1, 1]} : vector<24x8xf32> to vector<8x8xf32>
    %117 = arith.mulf %114, %114 : vector<8x8xf32>
    %118 = arith.mulf %115, %115 : vector<8x8xf32>
    %119 = arith.addf %117, %118 : vector<8x8xf32>
    %120 = arith.mulf %116, %116 : vector<8x8xf32>
    %121 = arith.addf %119, %120 : vector<8x8xf32>
    %cst_27 = arith.constant 9.99999993E-9 : f32
    %122 = vector.broadcast %cst_27 : f32 to vector<8x8xf32>
    %123 = arith.maximumf %121, %122 : vector<8x8xf32>
    %124 = math.sqrt %123 : vector<8x8xf32>
    %125 = tpu.concatenate %106, %124 in 1 : vector<8x64xf32>, vector<8x8xf32> -> vector<8x72xf32>
    %126 = arith.truncf %125 : vector<8x72xf32> to vector<8x72xbf16>
    %127 = arith.truncf %108 : vector<72x16xf32> to vector<72x16xbf16>
    %cst_28 = arith.constant dense<0.000000e+00> : vector<8x16xf32>
    %128 = tpu.matmul %126, %127, %cst_28 {dimension_numbers = #tpu.dot_dimension_numbers<[1], [0], [0], [1], [0, 0, 1, 1], [], []>} : vector<8x72xbf16>, vector<72x16xbf16>, vector<8x16xf32> -> vector<8x16xf32>
    %129 = vector.broadcast %109 : vector<1x16xf32> to vector<8x16xf32>
    %130 = arith.addf %128, %129 : vector<8x16xf32>
    %131 = arith.truncf %113 : vector<24x8xf32> to vector<24x8xbf16>
    %132 = arith.truncf %110 : vector<8x4xf32> to vector<8x4xbf16>
    %cst_29 = arith.constant dense<0.000000e+00> : vector<24x4xf32>
    %133 = tpu.matmul %131, %132, %cst_29 {dimension_numbers = #tpu.dot_dimension_numbers<[1], [0], [0], [1], [0, 0, 1, 1], [], []>} : vector<24x8xbf16>, vector<8x4xbf16>, vector<24x4xf32> -> vector<24x4xf32>
    %134 = arith.addf %40, %130 : vector<8x16xf32>
    %135 = arith.addf %58, %133 : vector<24x4xf32>
    %c0_30 = arith.constant 0 : index
    %c0_31 = arith.constant 0 : index
    %136 = vector.load %arg7[%c0_30, %c0_31] : memref<1x16xf32, #tpu.memory_space<vmem>>, vector<1x16xf32>
    %c0_32 = arith.constant 0 : index
    %c0_33 = arith.constant 0 : index
    %137 = vector.load %arg8[%c0_32, %c0_33] : memref<1x16xf32, #tpu.memory_space<vmem>>, vector<1x16xf32>
    %cst_34 = arith.constant dense<0.000000e+00> : vector<8xf32>
    %138 = vector.multi_reduction <add>, %134, %cst_34 [1] : vector<8x16xf32> to vector<8xf32>
    %139 = vector.shape_cast %138 : vector<8xf32> to vector<8x1xf32>
    %cst_35 = arith.constant 1.600000e+01 : f32
    %140 = vector.broadcast %cst_35 : f32 to vector<8x1xf32>
    %141 = arith.divf %139, %140 : vector<8x1xf32>
    %142 = vector.broadcast %141 : vector<8x1xf32> to vector<8x16xf32>
    %143 = arith.subf %134, %142 : vector<8x16xf32>
    %144 = arith.mulf %143, %143 : vector<8x16xf32>
    %cst_36 = arith.constant dense<0.000000e+00> : vector<8xf32>
    %145 = vector.multi_reduction <add>, %144, %cst_36 [1] : vector<8x16xf32> to vector<8xf32>
    %146 = vector.shape_cast %145 : vector<8xf32> to vector<8x1xf32>
    %cst_37 = arith.constant 1.600000e+01 : f32
    %147 = vector.broadcast %cst_37 : f32 to vector<8x1xf32>
    %148 = arith.divf %146, %147 : vector<8x1xf32>
    %149 = vector.broadcast %141 : vector<8x1xf32> to vector<8x16xf32>
    %150 = arith.subf %134, %149 : vector<8x16xf32>
    %cst_38 = arith.constant 9.99999974E-6 : f32
    %151 = vector.broadcast %cst_38 : f32 to vector<8x1xf32>
    %152 = arith.addf %148, %151 : vector<8x1xf32>
    %153 = math.rsqrt %152 : vector<8x1xf32>
    %154 = vector.broadcast %153 : vector<8x1xf32> to vector<8x16xf32>
    %155 = arith.mulf %150, %154 : vector<8x16xf32>
    %156 = vector.broadcast %136 : vector<1x16xf32> to vector<8x16xf32>
    %157 = arith.mulf %155, %156 : vector<8x16xf32>
    %158 = vector.broadcast %137 : vector<1x16xf32> to vector<8x16xf32>
    %159 = arith.addf %157, %158 : vector<8x16xf32>
    %160 = vector.extract_strided_slice %135 {offsets = [0, 0], sizes = [8, 4], strides = [1, 1]} : vector<24x4xf32> to vector<8x4xf32>
    %161 = vector.extract_strided_slice %135 {offsets = [8, 0], sizes = [8, 4], strides = [1, 1]} : vector<24x4xf32> to vector<8x4xf32>
    %162 = vector.extract_strided_slice %135 {offsets = [16, 0], sizes = [8, 4], strides = [1, 1]} : vector<24x4xf32> to vector<8x4xf32>
    %163 = arith.mulf %160, %160 : vector<8x4xf32>
    %164 = arith.mulf %161, %161 : vector<8x4xf32>
    %165 = arith.addf %163, %164 : vector<8x4xf32>
    %166 = arith.mulf %162, %162 : vector<8x4xf32>
    %167 = arith.addf %165, %166 : vector<8x4xf32>
    %cst_39 = arith.constant 9.99999993E-9 : f32
    %168 = vector.broadcast %cst_39 : f32 to vector<8x4xf32>
    %169 = arith.maximumf %167, %168 : vector<8x4xf32>
    %cst_40 = arith.constant dense<0.000000e+00> : vector<8xf32>
    %170 = vector.multi_reduction <add>, %169, %cst_40 [1] : vector<8x4xf32> to vector<8xf32>
    %171 = vector.shape_cast %170 : vector<8xf32> to vector<8x1xf32>
    %cst_41 = arith.constant 4.000000e+00 : f32
    %172 = vector.broadcast %cst_41 : f32 to vector<8x1xf32>
    %173 = arith.divf %171, %172 : vector<8x1xf32>
    %174 = math.rsqrt %173 : vector<8x1xf32>
    %175 = tpu.concatenate %174, %174, %174 in 0 : vector<8x1xf32>, vector<8x1xf32>, vector<8x1xf32> -> vector<24x1xf32>
    %176 = vector.broadcast %175 : vector<24x1xf32> to vector<24x4xf32>
    %177 = arith.mulf %135, %176 : vector<24x4xf32>
    %c0_42 = arith.constant 0 : index
    %c0_43 = arith.constant 0 : index
    %178 = vector.load %arg9[%c0_42, %c0_43] : memref<8x16xf32, #tpu.memory_space<vmem>>, vector<8x16xf32>
    tpu.vector_store %arg9[%c0_42, %c0_43], %159 {strides = array<i32>} : memref<8x16xf32, #tpu.memory_space<vmem>>, vector<8x16xf32>,
    %179 = vector.extract_strided_slice %177 {offsets = [0, 0], sizes = [8, 4], strides = [1, 1]} : vector<24x4xf32> to vector<8x4xf32>
    %c0_44 = arith.constant 0 : index
    %c0_45 = arith.constant 0 : index
    %c0_46 = arith.constant 0 : index
    %180 = vector.load %arg10[%c0_44, %c0_45, %c0_46] : memref<3x8x4xf32, #tpu.memory_space<vmem>>, vector<1x8x4xf32>
    %181 = vector.shape_cast %180 : vector<1x8x4xf32> to vector<8x4xf32>
    %182 = vector.shape_cast %179 : vector<8x4xf32> to vector<1x8x4xf32>
    tpu.vector_store %arg10[%c0_44, %c0_45, %c0_46], %182 {strides = array<i32>} : memref<3x8x4xf32, #tpu.memory_space<vmem>>, vector<1x8x4xf32>,
    %183 = vector.extract_strided_slice %177 {offsets = [8, 0], sizes = [8, 4], strides = [1, 1]} : vector<24x4xf32> to vector<8x4xf32>
    %c1 = arith.constant 1 : index
    %c0_47 = arith.constant 0 : index
    %c0_48 = arith.constant 0 : index
    %184 = vector.load %arg10[%c1, %c0_47, %c0_48] : memref<3x8x4xf32, #tpu.memory_space<vmem>>, vector<1x8x4xf32>
    %185 = vector.shape_cast %184 : vector<1x8x4xf32> to vector<8x4xf32>
    %186 = vector.shape_cast %183 : vector<8x4xf32> to vector<1x8x4xf32>
    tpu.vector_store %arg10[%c1, %c0_47, %c0_48], %186 {strides = array<i32>} : memref<3x8x4xf32, #tpu.memory_space<vmem>>, vector<1x8x4xf32>,
    %187 = vector.extract_strided_slice %177 {offsets = [16, 0], sizes = [8, 4], strides = [1, 1]} : vector<24x4xf32> to vector<8x4xf32>
    %c2 = arith.constant 2 : index
    %c0_49 = arith.constant 0 : index
    %c0_50 = arith.constant 0 : index
    %188 = vector.load %arg10[%c2, %c0_49, %c0_50] : memref<3x8x4xf32, #tpu.memory_space<vmem>>, vector<1x8x4xf32>
    %189 = vector.shape_cast %188 : vector<1x8x4xf32> to vector<8x4xf32>
    %190 = vector.shape_cast %187 : vector<8x4xf32> to vector<1x8x4xf32>
    tpu.vector_store %arg10[%c2, %c0_49, %c0_50], %190 {strides = array<i32>} : memref<3x8x4xf32, #tpu.memory_space<vmem>>, vector<1x8x4xf32>,
    return
  }
  func.func @transform_0(%arg0: i32) -> (i32, i32) {
    %c0_i32 = arith.constant 0 : i32
    %c0_i32_0 = arith.constant 0 : i32
    return %arg0, %c0_i32 : i32, i32
  }
  func.func @transform_1(%arg0: i32) -> (i32, i32, i32) {
    %c0_i32 = arith.constant 0 : i32
    %c0_i32_0 = arith.constant 0 : i32
    %c0_i32_1 = arith.constant 0 : i32
    return %c0_i32, %arg0, %c0_i32_0 : i32, i32, i32
  }
  func.func @transform_2(%arg0: i32) -> (i32, i32) {
    %c0_i32 = arith.constant 0 : i32
    %c0_i32_0 = arith.constant 0 : i32
    return %arg0, %c0_i32 : i32, i32
  }
  func.func @transform_3(%arg0: i32) -> (i32, i32) {
    %c0_i32 = arith.constant 0 : i32
    %c0_i32_0 = arith.constant 0 : i32
    %c0_i32_1 = arith.constant 0 : i32
    return %c0_i32, %c0_i32_0 : i32, i32
  }
  func.func @transform_4(%arg0: i32) -> (i32, i32) {
    %c0_i32 = arith.constant 0 : i32
    %c0_i32_0 = arith.constant 0 : i32
    %c0_i32_1 = arith.constant 0 : i32
    return %c0_i32, %c0_i32_0 : i32, i32
  }
  func.func @transform_5(%arg0: i32) -> (i32, i32) {
    %c0_i32 = arith.constant 0 : i32
    %c0_i32_0 = arith.constant 0 : i32
    %c0_i32_1 = arith.constant 0 : i32
    return %c0_i32, %c0_i32_0 : i32, i32
  }
  func.func @transform_6(%arg0: i32) -> (i32, i32) {
    %c0_i32 = arith.constant 0 : i32
    %c0_i32_0 = arith.constant 0 : i32
    %c0_i32_1 = arith.constant 0 : i32
    return %c0_i32, %c0_i32_0 : i32, i32
  }
  func.func @transform_7(%arg0: i32) -> (i32, i32) {
    %c0_i32 = arith.constant 0 : i32
    %c0_i32_0 = arith.constant 0 : i32
    %c0_i32_1 = arith.constant 0 : i32
    return %c0_i32, %c0_i32_0 : i32, i32
  }
  func.func @transform_8(%arg0: i32) -> (i32, i32) {
    %c0_i32 = arith.constant 0 : i32
    %c0_i32_0 = arith.constant 0 : i32
    return %arg0, %c0_i32 : i32, i32
  }
  func.func @transform_9(%arg0: i32) -> (i32, i32, i32) {
    %c0_i32 = arith.constant 0 : i32
    %c0_i32_0 = arith.constant 0 : i32
    %c0_i32_1 = arith.constant 0 : i32
    return %c0_i32, %arg0, %c0_i32_0 : i32, i32, i32
  }
}

</mosaic_0001>

<bundles_post_ra>
// kernel: mr_gvp_conv_layer_forward.2
= control target key start
LH: loop header
LB: loop body
LE: loop exit
PB: predicated region body
PF: predicated region fallthrough
CT: control target
= control target key end

     0   :  { %s3288_s0 = inlined_call_operand.hbm [shape: f32[2,24,40], index: 0, kind: input, shape index: {}]   ;;  %s3289_s1 = inlined_call_operand.hbm [shape: f32[2,3,24,10], index: 1, kind: input, shape index: {}]   ;;  %s3290_s2 = inlined_call_operand.hbm [shape: s32[2,1,24], index: 2, kind: input, shape index: {}]   ;;  %s3291_s3 = inlined_call_operand.hbm [shape: f32[2,24,1], index: 3, kind: input, shape index: {}]   ;;  %s3292_s4 = inlined_call_operand.hbm [shape: f32[2,192,16], index: 4, kind: input, shape index: {}]   ;;  %s3293_s5 = inlined_call_operand.hbm [shape: f32[16,28], index: 5, kind: output, shape index: {}]  }
   0x1   :  { %3302 = sst [smem:[#allocation18_spill]] %s3289_s1 }
   0x2   :  { %3303 = sst [smem:[#allocation19_spill]] %s3291_s3 }
   0x3   :  { %10 = vsyncpa [#allocation3], 0 }
   0x4   :  { %12 = vsyncpa [#allocation3 + $0x1], 0 }
   0x5   :  { %13 = vsyncpa [#allocation6], 0 }
   0x6   :  { %15 = vsyncpa [#allocation6 + $0x1], 0 }
   0x7   :  { %16 = vsyncpa [#allocation9], 0 }
   0x8   :  { %18 = vsyncpa [#allocation9 + $0x1], 0 }
   0x9   :  { %19 = vsyncpa [#allocation4], 0  ;;  %s2582_s18 = smov 0   ;;  %s2584_s19 = smov 0  }
   0xa   :  { %s2586_s20 = smov 0   ;;  %s2588_s21 = smov 0  }
   0xb   :  { %s2590_s22 = smov 0   ;;  %s2592_s23 = smov 0  }
   0xc LB: > { %s2611_s24 = sadd.s32 4294967295, %s2532_s23   ;;  %s37_s25 = sadd.s32 1, %s2528_s22  ;;  %s2532_s23 = sphi %s2592_s23, %s25_s23   ;;  %s2528_s22 = sphi %s2590_s22, %s3324_s22   ;;  %s2524_s21 = sphi %s2588_s21, %s3323_s21   ;;  %s2520_s20 = sphi %s2586_s20, %s3322_s20   ;;  %s2516_s19 = sphi %s2584_s19, %s3321_s19   ;;  %s2512_s18 = sphi %s2582_s18, %s3320_s18  }
   0xd   : > { %p39_p0 = scmp.ge.s32.totalorder %s37_s25, 2  ;;  %s46_s26 = sadd.s32 1, %s2520_s20 }
   0xe   : > { %p53_p1 = scmp.ne.s32.totalorder %s2520_s20, %s2516_s19  ;;  %p54_p2 = scmp.eq.s32.totalorder %s2532_s23, 0 }
   0xf   : > { %s3326_s25 = smov (%p39_p0, %s37_s25), 0  ;;  %p59_p4 = scmp.ne.s32.totalorder %s2516_s19, %s2512_s18 }
  0x10   : > { %3304 = sst [smem:[#allocation16_spill]] %s3326_s25  ;;  %p55_p3 = por %p54_p2, %p53_p1 }
  0x11   : > { %s41_s27 = ssub.s32 %s2528_s22, %s3326_s25  ;;  %p60_p5 = scmp.eq.s32.totalorder %s2611_s24, 0 }
  0x12   : > { %p44_p6 = scmp.eq.s32.totalorder %s41_s27, 0  ;;  %p2159_p8 = scmp.lt.s32.totalorder %s2532_s23, 2 }
  0x13   : > { %p2624_p7 = por %p60_p5, %p59_p4  ;;  %s2633_s30 = sand.u32 1, %s2520_s20  }
  0x14   : > { %s2630_s29 = scalar_select %p44_p6, %s2520_s20, %s46_s26  }
  0x15   : > { %s3305_s28 = scalar_select %p2624_p7, 1, 0 }
  0x16   : > { %3306 = sst [smem:[#allocation17_spill]] %s2630_s29  ;;  %p2635_p9 = pnand %p2159_p8, %p55_p3 }
  0x17   : > { %s3295_s7 = sand.u32 1, %s2532_s23   ;;  %s2120_s8 = smul.u32 72, %s2633_s30 }
  0x18   : > { %s3307_s6 = scalar_select %p2635_p9, 1, 0 }
  0x19   : > { %s2121_s9 = smul.u32 1152, %s2528_s22  ;;  %p1843_p10 = scmp.ge.s32.totalorder %s2532_s23, 1 }
  0x1a   : > { %p320_p11 = scmp.lt.s32.totalorder %s2532_s23, 3  ;;  %s3308_s1 = sld [smem:[#allocation18_spill]] }
  0x1b   : > { %s241_s13 = scalar_lea.vmem [#allocation5], %s2120_s8  ;;  %s2657_s16 = scalar_lea.sflag [#allocation6], %s3295_s7 }
  0x1c   : > { %s250_s14 = sshll.u32 %s241_s13, 4  ;;  %p2651_p12 = pnand %p1843_p10, %p320_p11  ;;  %s2649_s14 = int_to_ptr.vmem [resolvable:$true] %s250_s14 }
  0x1d   : > { %p2663_p0 = pneg %p2635_p9 }
  0x1e   : > { %s3309_s15 = scalar_select %p2651_p12, 1, 0 }
  0x20   : > { %s2647_s12 = scalar_lea.hbm %s3308_s1, %s2121_s9  ;;  %s2299_s8 = scalar_lea.hbm %s3308_s1, 2304 }
  0x21   : > { %s2294_s17 = scalar_lea.hbm %s2647_s12, 1152  ;;  %p2300_p3 = scmp.lt.u32.totalorder %s2647_s12, %s3308_s1 }
  0x22   : > { %p2295_p13 = scmp.ne.s32.totalorder %s2647_s12, %s2294_s17  ;;  %p2301_p4 = scmp.lt.u32.totalorder %s2299_s8, %s2294_s17 }
  0x23   : > { %p2303_p6 = scmp.lt.u32.totalorder %s2294_s17, %s2647_s12 }
  0x24   : > { %p2297_p1 = pnand %p2663_p0, %p2295_p13  ;;  %p2302_p5 = por %p2301_p4, %p2300_p3 }
  0x26   : > { %p2298_p2 = pneg %p2297_p1  ;;  %p2304_p8 = por %p2303_p6, %p2302_p5 }
  0x28   : > { %p2305_p10 = pnand %p2304_p8, %p2298_p2 }
  0x2a   : > { %2308 = shalt.err (!%p2305_p10)
}
  0x2b   : > { %s2309_s11 = scalar_lea.vmem %s2649_s14, 1152  ;;  %s2534_s13 = smov [#allocation5]  }
  0x2c   : > { %p2310_p11 = scmp.ne.s32.totalorder %s2649_s14, %s2309_s11  ;;  %s2314_s26 = sshll.u32 %s2534_s13, 4  ;;  %s2315_s26 = int_to_ptr.vmem [resolvable:$false] %s2314_s26 }
  0x2d   : > { %s2316_s27 = scalar_lea.vmem %s2315_s26, 2304  ;;  %p2317_p7 = scmp.lt.s32.totalorder %s2649_s14, %s2315_s26 }
  0x2e   : > { %p2312_p13 = pnand %p2310_p11, %p2663_p0  ;;  %p2318_p12 = scmp.lt.s32.totalorder %s2316_s27, %s2309_s11 }
  0x30   : > { %p2313_p1 = pneg %p2312_p13  ;;  %p2319_p3 = por %p2318_p12, %p2317_p7 }
  0x32   : > { %p2320_p4 = pnand %p2319_p3, %p2313_p1 }
  0x34   : > { %2323 = shalt.err (!%p2320_p4)
}
  0x35   : > { %s3298_s17 = smov 128   ;;  %s2536_s8 = smov 8  }
  0x36   : > { %2149 = dma.hbm_to_vmem [thread:$0]  (!%p2635_p9), %s2647_s12, 1152, %s2649_s14, %s2657_s16, %s3298_s17, %s3298_s17, %s2536_s8  }
  0x37   : > { %s2118_s9 = smul.u32 24, %s2633_s30  ;;  %s3311_s3 = sld [smem:[#allocation19_spill]] }
  0x38   : > { %s3297_s10 = smul.u32 384, %s2528_s22  ;;  %s3312_s1 = sand.u32 1, %s2532_s23  }
  0x39   : > { %s282_s27 = scalar_lea.vmem [#allocation8], %s2118_s9  ;;  %s2705_s25 = scalar_lea.sflag [#allocation9], %s3312_s1 }
  0x3a   : > { %s291_s7 = sshll.u32 %s282_s27, 4  ;;  %s2701_s7 = int_to_ptr.vmem [resolvable:$true] %s291_s7 }
  0x3d   : > { %s2697_s26 = scalar_lea.hbm %s3311_s3, %s3297_s10  ;;  %s2329_s13 = scalar_lea.hbm %s3311_s3, 768 }
  0x3e   : > { %s2324_s12 = scalar_lea.hbm %s2697_s26, 384  ;;  %p2330_p5 = scmp.lt.u32.totalorder %s2697_s26, %s3311_s3 }
  0x3f   : > { %p2325_p7 = scmp.ne.s32.totalorder %s2697_s26, %s2324_s12  ;;  %p2331_p6 = scmp.lt.u32.totalorder %s2329_s13, %s2324_s12 }
  0x40   : > { %p2333_p10 = scmp.lt.u32.totalorder %s2324_s12, %s2697_s26 }
  0x41   : > { %p2327_p12 = pnand %p2325_p7, %p2663_p0  ;;  %p2332_p8 = por %p2331_p6, %p2330_p5 }
  0x43   : > { %p2328_p2 = pneg %p2327_p12  ;;  %p2334_p11 = por %p2333_p10, %p2332_p8 }
  0x45   : > { %p2335_p13 = pnand %p2334_p11, %p2328_p2 }
  0x47   : > { %2338 = shalt.err (!%p2335_p13)
}
  0x48   : > { %s2339_s1 = scalar_lea.vmem %s2701_s7, 384  ;;  %s2537_s27 = smov [#allocation8]  }
  0x49   : > { %p2340_p1 = scmp.ne.s32.totalorder %s2701_s7, %s2339_s1  ;;  %s2344_s14 = sshll.u32 %s2537_s27, 4  ;;  %s2345_s14 = int_to_ptr.vmem [resolvable:$false] %s2344_s14 }
  0x4a   : > { %s2346_s17 = scalar_lea.vmem %s2345_s14, 768  ;;  %p2347_p7 = scmp.lt.s32.totalorder %s2701_s7, %s2345_s14 }
  0x4b   : > { %p2342_p3 = pnand %p2340_p1, %p2663_p0  ;;  %p2348_p12 = scmp.lt.s32.totalorder %s2346_s17, %s2339_s1 }
  0x4d   : > { %p2343_p4 = pneg %p2342_p3  ;;  %p2349_p5 = por %p2348_p12, %p2347_p7 }
  0x4f   : > { %p2350_p6 = pnand %p2349_p5, %p2343_p4 }
  0x51   : > { %2353 = shalt.err (!%p2350_p6)
}
  0x52   : > { %s3313_s10 = smov 128   ;;  %s3314_s12 = smul.u32 384, %s2528_s22 }
  0x53   : > { %2155 = dma.hbm_to_vmem [thread:$0]  (!%p2635_p9), %s2697_s26, 384, %s2701_s7, %s2705_s25, %s3313_s10, %s3313_s10, %s2536_s8  }
  0x54   : > { %s2737_s1 = scalar_lea.hbm %s3288_s0, %s3314_s12  ;;  %s218_s27 = scalar_lea.vmem [#allocation2], %s2118_s9 }
  0x55   : > { %s227_s14 = sshll.u32 %s218_s27, 4  ;;  %s1840_s17 = sshll.u32 %s2528_s22, 4  ;;  %s2741_s14 = int_to_ptr.vmem [resolvable:$true] %s227_s14 }
  0x56   : > { %s215_s3 = scalar_lea.sflag [#allocation3], %s2633_s30  ;;  %s2354_s29 = scalar_lea.hbm %s2737_s1, 384 }
  0x57   : > { %p2355_p2 = scmp.ne.s32.totalorder %s2737_s1, %s2354_s29  ;;  %s2359_s12 = scalar_lea.hbm %s3288_s0, 768 }
  0x58   : > { %p2360_p11 = scmp.lt.u32.totalorder %s2737_s1, %s3288_s0  ;;  %p2361_p13 = scmp.lt.u32.totalorder %s2359_s12, %s2354_s29 }
  0x59   : > { %p2357_p8 = pnand %p2355_p2, %p2663_p0  ;;  %p2363_p3 = scmp.lt.u32.totalorder %s2354_s29, %s2737_s1 }
  0x5a   : > { %p2362_p1 = por %p2361_p13, %p2360_p11 }
  0x5b   : > { %p2358_p10 = pneg %p2357_p8 }
  0x5c   : > { %p2364_p4 = por %p2363_p3, %p2362_p1 }
  0x5e   : > { %p2365_p7 = pnand %p2364_p4, %p2358_p10 }
  0x60   : > { %2368 = shalt.err (!%p2365_p7)
}
  0x61   : > { %s2369_s9 = scalar_lea.vmem %s2741_s14, 384  ;;  %s2538_s27 = smov [#allocation2]  }
  0x62   : > { %p2370_p12 = scmp.ne.s32.totalorder %s2741_s14, %s2369_s9  ;;  %s2374_s7 = sshll.u32 %s2538_s27, 4  ;;  %s2375_s7 = int_to_ptr.vmem [resolvable:$false] %s2374_s7 }
  0x63   : > { %s2376_s26 = scalar_lea.vmem %s2375_s7, 768  ;;  %p2377_p2 = scmp.lt.s32.totalorder %s2741_s14, %s2375_s7 }
  0x64   : > { %p2372_p5 = pnand %p2370_p12, %p2663_p0  ;;  %p2378_p8 = scmp.lt.s32.totalorder %s2376_s26, %s2369_s9 }
  0x66   : > { %p2373_p6 = pneg %p2372_p5  ;;  %p2379_p11 = por %p2378_p8, %p2377_p2 }
  0x68   : > { %p2380_p13 = pnand %p2379_p11, %p2373_p6 }
  0x6a   : > { %2383 = shalt.err (!%p2380_p13)
}
  0x6b   : > { %2146 = dma.hbm_to_vmem [thread:$0]  (!%p2635_p9), %s2737_s1, 384, %s2741_s14, %s215_s3, %s3313_s10, %s3313_s10, %s2536_s8  }
  0x6c   : > { %s2776_s11 = scalar_lea.hbm %s3290_s2, %s1840_s17  ;;  %s263_s13 = scalar_lea.vmem [#allocation7], %s2633_s30 }
  0x6d   : > { %s271_s9 = sshll.u32 %s263_s13, 4  ;;  %s2124_s27 = smul.u32 192, %s2633_s30  ;;  %s272_s9 = int_to_ptr.vmem [resolvable:$true] %s271_s9 }
  0x6e   : > { %s2384_s7 = scalar_lea.hbm %s2776_s11, 16  ;;  %s2389_s14 = scalar_lea.hbm %s3290_s2, 32 }
  0x6f   : > { %p2385_p10 = scmp.ne.s32.totalorder %s2776_s11, %s2384_s7  ;;  %p2390_p4 = scmp.lt.u32.totalorder %s2776_s11, %s3290_s2 }
  0x70   : > { %p2391_p7 = scmp.lt.u32.totalorder %s2389_s14, %s2384_s7  ;;  %p2393_p5 = scmp.lt.u32.totalorder %s2384_s7, %s2776_s11 }
  0x71   : > { %p2387_p1 = pnand %p2385_p10, %p2663_p0 }
  0x72   : > { %p2392_p12 = por %p2391_p7, %p2390_p4 }
  0x73   : > { %p2388_p3 = pneg %p2387_p1 }
  0x74   : > { %p2394_p6 = por %p2393_p5, %p2392_p12 }
  0x76   : > { %p2395_p2 = pnand %p2394_p6, %p2388_p3 }
  0x78   : > { %2398 = shalt.err (!%p2395_p2)
}
  0x79   : > { %s2399_s30 = scalar_lea.vmem %s272_s9, 16  ;;  %s2539_s29 = smov [#allocation7]  }
  0x7a   : > { %p2400_p8 = scmp.ne.s32.totalorder %s272_s9, %s2399_s30  ;;  %s2404_s12 = sshll.u32 %s2539_s29, 4  ;;  %s2405_s12 = int_to_ptr.vmem [resolvable:$false] %s2404_s12 }
  0x7b   : > { %s2406_s13 = scalar_lea.vmem %s2405_s12, 32  ;;  %p2407_p10 = scmp.lt.s32.totalorder %s272_s9, %s2405_s12 }
  0x7c   : > { %p2402_p11 = pnand %p2400_p8, %p2663_p0  ;;  %p2408_p1 = scmp.lt.s32.totalorder %s2406_s13, %s2399_s30 }
  0x7e   : > { %p2403_p13 = pneg %p2402_p11  ;;  %p2409_p9 = por %p2408_p1, %p2407_p10 }
  0x80   : > { %p2410_p4 = pnand %p2409_p9, %p2403_p13 }
  0x82   : > { %2413 = shalt.err (!%p2410_p4)
}
  0x83   : > { %p3315_p7 = scmp.ne.s32.totalorder %s3307_s6, 0  ;;  %s2125_s7 = smul.u32 3072, %s2528_s22 }
  0x84   : > { %s305_s3 = scalar_lea.vmem [#allocation10], %s2124_s27 }
  0x85   : > { %2152 = dma.hbm_to_vmem [thread:$0]  (!%p3315_p7), %s2776_s11, 16, %s272_s9, %s2657_s16  }
  0x86   : > { %s312_s1 = sshll.u32 %s305_s3, 4  ;;  %s2802_s17 = scalar_lea.hbm %s3292_s4, %s2125_s7  ;;  %s2804_s1 = int_to_ptr.vmem [resolvable:$true] %s312_s1 }
  0x87   : > { %s2414_s30 = scalar_lea.hbm %s2802_s17, 3072  ;;  %s2419_s9 = scalar_lea.hbm %s3292_s4, 6144 }
  0x88   : > { %p2415_p9 = scmp.ne.s32.totalorder %s2802_s17, %s2414_s30  ;;  %p2420_p5 = scmp.lt.u32.totalorder %s2802_s17, %s3292_s4 }
  0x89   : > { %p2421_p6 = scmp.lt.u32.totalorder %s2419_s9, %s2414_s30  ;;  %p2423_p8 = scmp.lt.u32.totalorder %s2414_s30, %s2802_s17 }
  0x8a   : > { %p2417_p3 = pnand %p2415_p9, %p2663_p0 }
  0x8b   : > { %p2422_p2 = por %p2421_p6, %p2420_p5 }
  0x8c   : > { %p2418_p12 = pneg %p2417_p3 }
  0x8d   : > { %p2424_p11 = por %p2423_p8, %p2422_p2 }
  0x8f   : > { %p2425_p13 = pnand %p2424_p11, %p2418_p12 }
  0x91   : > { %2428 = shalt.err (!%p2425_p13)
}
  0x92   : > { %s2429_s12 = scalar_lea.vmem %s2804_s1, 3072  ;;  %s2540_s13 = smov [#allocation10]  }
  0x93   : > { %p2430_p10 = scmp.ne.s32.totalorder %s2804_s1, %s2429_s12  ;;  %s2434_s7 = sshll.u32 %s2540_s13, 4  ;;  %s2435_s7 = int_to_ptr.vmem [resolvable:$false] %s2434_s7 }
  0x94   : > { %s2436_s3 = scalar_lea.vmem %s2435_s7, 6144  ;;  %p2437_p9 = scmp.lt.s32.totalorder %s2804_s1, %s2435_s7 }
  0x95   : > { %p2432_p1 = pnand %p2430_p10, %p2663_p0  ;;  %p2438_p3 = scmp.lt.s32.totalorder %s2436_s3, %s2429_s12 }
  0x97   : > { %p2433_p4 = pneg %p2432_p1  ;;  %p2439_p5 = por %p2438_p3, %p2437_p9 }
  0x99   : > { %p2440_p6 = pnand %p2439_p5, %p2433_p4 }
  0x9b   : > { %2443 = shalt.err (!%p2440_p6)
}
  0x9c   : > { %2158 = dma.hbm_to_vmem [thread:$0]  (!%p3315_p7), %s2802_s17, 3072, %s2804_s1, %s2705_s25, %s3313_s10, %s3313_s10, %s2536_s8  }
  0x9d   : > { %p3316_p0 = scmp.ne.s32.totalorder %s3309_s15, 0 }
  0x9e   : > { %s2834_s18 = sand.u32 (!%p3316_p0), 1, %s2516_s19   ;;  %p3317_p12 = scmp.ne.s32.totalorder (!%p3316_p0), %s3305_s28, 0 }
  0x9f   : > { %324 = sbr.rel (%p3316_p0) target bundleno = 2369 (0x941), region = 40  ;;  %s327_s26 = scalar_lea.sflag (!%p3316_p0), [#allocation3], %s2834_s18 }
  0xa0   : > { %s2126_s14 = smul.u32 (!%p3316_p0), 24, %s2834_s18 }
  0xa2   : > { %s2838_s30 = scalar_lea.vmem (!%p3316_p0), [#allocation2], %s2126_s14 }
  0xa6   : > { %2495 = dma.done.wait (%p3317_p12), %s327_s26, 384  }
  0xa7   : > { %2497 = vsyncadd (%p3317_p12), %s327_s26, 4294966912  ;;  %s335_s25 = sand.u32 1, %s2611_s24   ;;  %s2127_s6 = smul.u32 72, %s2834_s18 }
  0xa8   : > { %s336_s15 = scalar_lea.sflag [#allocation6], %s335_s25 }
  0xa9   : > { %s2846_s8 = scalar_lea.vmem [#allocation5], %s2127_s6 }
  0xaa   : > { %2499 = dma.done.wait (%p3317_p12), %s336_s15, 1168  }
  0xab   : > { %2501 = vsyncadd (%p3317_p12), %s336_s15, 4294966128  ;;  %s347_s10 = scalar_lea.vmem [#allocation7], %s2834_s18  ;;  %s353_s1 = scalar_lea.sflag [#allocation9], %s335_s25 }
  0xac   : > { %s2853_s17 = scalar_lea.vmem [#allocation8], %s2126_s14 }
  0xad   : > { %2503 = dma.done.wait (%p3317_p12), %s353_s1, 3456  }
  0xae   : > { %2505 = vsyncadd (%p3317_p12), %s353_s1, 4294963840  ;;  %s2128_s16 = smul.u32 192, %s2834_s18  ;;  %v2541_v0 = vmov 0.0   ;;  %vm2542_vm0 = vmmov 0   ;;  %vm468_vm1 = vcmask 1044480   ;;  %v413_v3 = vld [vmem:[%s2846_s8] sm:$0xff] }
  0xaf   : > { %1947 = vmatprep.subr.bf16.mxu0 %v2541_v0  ;;  %1949 = vmatprep.mubr.msk.bf16.mxu0 %vm2542_vm0, %v2541_v0  ;;  %v414_v5 = vld [vmem:[%s2846_s8 + $0x8] sm:$0xff]  ;;  %vm452_vm2 = vcmask 80896   ;;  %v415_v8 = vld [vmem:[%s2846_s8 + $0x10] sm:$0xff]  ;;  %v416_v9 = vld [vmem:[%s2846_s8 + $0x18] sm:$0xff]  ;;  %vm616_vm3 = vcmask 1040384   ;;  %s2543_s11 = smov 40  }
  0xb0   : > { %1981 = vmatprep.subr.bf16.mxu1 %v2541_v0  ;;  %1983 = vmatprep.mubr.msk.bf16.mxu1 %vm2542_vm0, %v2541_v0  ;;  %s2866_s28 = scalar_lea.vmem [#allocation10], %s2128_s16  ;;  %v446_v7 = vpack.c.bf16 %v414_v5, %v413_v3  ;;  %v447_v10 = vpack.c.bf16 %v416_v9, %v415_v8  ;;  %v417_v11 = vld [vmem:[%s2846_s8 + $0x20] sm:$0xff]  ;;  %v418_v12 = vld [vmem:[%s2846_s8 + $0x28] sm:$0xff]  ;;  %v419_v14 = vld [vmem:[%s2846_s8 + $0x30] sm:$0xff]  ;;  %vm595_vm10 = vcmask 326656   ;;  %vm609_vm11 = vcmask 408576  }
  0xb1   : > { %v422_v1 = vld [vmem:[%s2866_s28] sm:$0xff]  ;;  %v423_v2 = vld [vmem:[%s2866_s28 + $0x8] sm:$0xff]  ;;  %v448_v13 = vpack.c.bf16 %v418_v12, %v417_v11  ;;  %v432_v19 = vld [vmem:[%s2866_s28 + $0x50] sm:$0xff]  ;;  %vm855_vm12 = vcmask 1041408   ;;  %s2544_s9 = smov 16   ;;  %s2546_s27 = smov 20  }
  0xb2   : > { %v451_v4 = vpack.c.bf16 %v423_v2, %v422_v1  ;;  %v420_v15 = vld [vmem:[%s2846_s8 + $0x38] sm:$0xff]  ;;  %v421_v17 = vld [vmem:[%s2846_s8 + $0x40] sm:$0xff]  ;;  %s2547_s29 = smov 24   ;;  %p1658_p7 = scmp.eq.s32.totalorder %s2524_s21, 0 }
  0xb3   : > { %v449_v16 = vpack.c.bf16 %v420_v15, %v419_v14  ;;  %v450_v18 = vpack.c.bf16 %v421_v17, %v421_v17  ;;  %v433_v20 = vld [vmem:[%s2866_s28 + $0x58] sm:$0xff]  ;;  %v424_v23 = vld [vmem:[%s2866_s28 + $0x10] sm:$0xff]  ;;  %v426_v25 = vld [vmem:[%s2866_s28 + $0x20] sm:$0xff] }
  0xb4   : > { %v470_v6 = vsel %vm468_vm1, %v451_v4, 0  ;;  %v673_v21 = vpack.c.bf16 %v433_v20, %v432_v19  ;;  %v425_v24 = vld [vmem:[%s2866_s28 + $0x18] sm:$0xff]  ;;  %v427_v27 = vld [vmem:[%s2866_s28 + $0x28] sm:$0xff]  ;;  %v428_v29 = vld [vmem:[%s2866_s28 + $0x30] sm:$0xff] }
  0xb5   : > { %1948 = vmatpush3.bf16.msra.mxu0 %v470_v6  ;;  %v601_v26 = vpack.c.bf16 %v425_v24, %v424_v23  ;;  %v602_v28 = vpack.c.bf16 %v427_v27, %v426_v25  ;;  %v429_v30 = vld [vmem:[%s2866_s28 + $0x38] sm:$0xff]  ;;  %v430_v12 = vld [vmem:[%s2866_s28 + $0x40] sm:$0xff] }
  0xb6   : > { %v690_v22 = vsel %vm468_vm1, %v673_v21, 0  ;;  %v603_v31 = vpack.c.bf16 %v429_v30, %v428_v29 }
  0xb7   : > { %1982 = vmatpush3.bf16.msra.mxu1 %v690_v22  ;;  %1969 = vmatprep.subr.bf16.mxu0 %v601_v26 }
  0xb8   : > { %1950 = vmatmul.mubr.msk.bf16.vlgmr.msra.gmra.mrb[0].mxu0 %vm452_vm2, %v446_v7 }
  0xb9   : > { %1953 = vmatprep.mubr.msk.bf16.mxu0 %vm2542_vm0, %v2541_v0  ;;  %1970 = vmatpush3.bf16.msra.mxu0 %v601_v26 }
  0xba   : > { %1971 = vmatprep.subr.bf16.mxu0 %v602_v28 }
  0xbd   : > { %1972 = vmatpush3.bf16.msra.mxu0 %v602_v28 }
  0xbe   : > { %1973 = vmatprep.subr.bf16.mxu0 %v603_v31 }
  0xc0   : > { %1954 = vmatmul.mubr.msk.bf16.gmra.mrb[4].mxu0 %vm452_vm2, %v447_v10 }
  0xc1   : > { %1957 = vmatprep.mubr.msk.bf16.mxu0 %vm2542_vm0, %v2541_v0  ;;  %1974 = vmatpush3.bf16.msra.mxu0 %v603_v31  ;;  %v434_v31 = vld [vmem:[%s2866_s28 + $0x60] sm:$0xff] }
  0xc8   : > { %1958 = vmatmul.mubr.msk.bf16.gmra.mrb[8].mxu0 %vm452_vm2, %v448_v13  ;;  %v604_v13 = vpack.c.bf16 %v430_v12, %v430_v12 }
  0xc9   : > { %1961 = vmatprep.mubr.msk.bf16.mxu0 %vm2542_vm0, %v2541_v0 }
  0xca   : > { %2115 = vmatprep.subr.msk.bf16.mxu0 %vm616_vm3, %v604_v13  ;;  %v618_v15 = vsel %vm616_vm3, %v604_v13, 0 }
  0xcb   : > { %1976 = vmatpush3.bf16.msra.mxu0 %v618_v15 }
  0xcc   : > { %2003 = vmatprep.subr.bf16.mxu0 %v2541_v0 }
  0xd0   : > { %1962 = vmatmul.mubr.msk.bf16.gmra.mrb[12].mxu0 %vm452_vm2, %v449_v16 }
  0xd1   : > { %1965 = vmatprep.mubr.msk.bf16.mxu0 %vm2542_vm0, %v2541_v0 }
  0xd8   : > { %1966 = vmatmul.mubr.msk.bf16.gmra.mrb[16].mxu0 %vm452_vm2, %v450_v18 }
 0x18b   : > { %v506_v32 = vpop.f32.mrb[0].mxu0 }
 0x18c   : > { %v1951_v33 = vpop.f32.mrb[1].mxu0  ;;  %v544_v40 = vmul.f32 %v506_v32, %v506_v32 }
 0x18d   : > { %v509_v34 = vpop.f32.mrb[2].mxu0  ;;  %v410_v33 = vld [vmem:[%s2838_s30] sm:$0xff] }
 0x18e   : > { %v668_v35 = vpack.c.bf16 %v509_v34, %v506_v32  ;;  %v1952_v36 = vpop.f32.mrb[3].mxu0  ;;  %v545_v46 = vmul.f32 %v509_v34, %v509_v34  ;;  %v411_v34 = vld [vmem:[%s2838_s30 + $0x8] sm:$0xff] }
 0x190   : > { %1984 = vmatmul.mubr.msk.bf16.vlgmr.msra.gmra.mrb[0].mxu1 %vm452_vm2, %v668_v35 }
 0x191   : > { %1987 = vmatprep.mubr.msk.bf16.mxu1 %vm2542_vm0, %v2541_v0 }
 0x193   : > { %v514_v37 = vpop.f32.mrb[4].mxu0 }
 0x194   : > { %v1955_v38 = vpop.f32.mrb[5].mxu0  ;;  %v546_v50 = vmul.f32 %v514_v37, %v514_v37 }
 0x195   : > { %v517_v39 = vpop.f32.mrb[6].mxu0  ;;  %v838_v38 = vpack.c.bf16 %v434_v31, %v434_v31 }
 0x196   : > { %v547_v41 = vmul.f32 %v517_v39, %v517_v39  ;;  %v669_v42 = vpack.c.bf16 %v517_v39, %v514_v37  ;;  %v1956_v43 = vpop.f32.mrb[7].mxu0  ;;  %v412_v37 = vld [vmem:[%s2838_s30 + $0x10] sm:$0xff] }
 0x198   : > { %v550_v44 = vadd.f32 %v547_v41, %v544_v40  ;;  %1988 = vmatmul.mubr.msk.bf16.gmra.mrb[4].mxu1 %vm452_vm2, %v669_v42 }
 0x199   : > { %1991 = vmatprep.mubr.msk.bf16.mxu1 %vm2542_vm0, %v2541_v0 }
 0x19b   : > { %v522_v45 = vpop.f32.mrb[8].mxu0 }
 0x19c   : > { %v548_v47 = vmul.f32 %v522_v45, %v522_v45  ;;  %v1959_v48 = vpop.f32.mrb[9].mxu0 }
 0x19d   : > { %v525_v49 = vpop.f32.mrb[10].mxu0 }
 0x19e   : > { %v551_v51 = vadd.f32 %v548_v47, %v545_v46  ;;  %v549_v52 = vmul.f32 %v525_v49, %v525_v49  ;;  %v670_v53 = vpack.c.bf16 %v525_v49, %v522_v45  ;;  %v1960_v54 = vpop.f32.mrb[11].mxu0  ;;  %v857_v45 = vsel %vm855_vm12, %v838_v38, 0 }
 0x1a0   : > { %v552_v55 = vadd.f32 %v549_v52, %v546_v50  ;;  %1992 = vmatmul.mubr.msk.bf16.gmra.mrb[8].mxu1 %vm452_vm2, %v670_v53 }
 0x1a1   : > { %1995 = vmatprep.mubr.msk.bf16.mxu1 %vm2542_vm0, %v2541_v0 }
 0x1a3   : > { %v530_v56 = vpop.f32.mrb[12].mxu0 }
 0x1a4   : > { %v553_v57 = vmul.f32 %v530_v56, %v530_v56  ;;  %v1963_v58 = vpop.f32.mrb[13].mxu0 }
 0x1a5   : > { %v533_v59 = vpop.f32.mrb[14].mxu0 }
 0x1a6   : > { %v556_v60 = vadd.f32 %v553_v57, %v550_v44  ;;  %v554_v61 = vmul.f32 %v533_v59, %v533_v59  ;;  %v671_v62 = vpack.c.bf16 %v533_v59, %v530_v56  ;;  %v1964_v63 = vpop.f32.mrb[15].mxu0 }
 0x1a8   : > { %v559_v1 = vmax.f32 %v556_v60, 1e-08  ;;  %v557_v2 = vadd.f32 %v554_v61, %v551_v51  ;;  %1996 = vmatmul.mubr.msk.bf16.gmra.mrb[12].mxu1 %vm452_vm2, %v671_v62 }
 0x1a9   : > { %1999 = vmatprep.mubr.msk.bf16.mxu1 %vm2542_vm0, %v2541_v0 }
 0x1aa   : > { %v560_v3 = vmax.f32 %v557_v2, 1e-08  ;;  %2240 = vrsqrt.f32 %v559_v1  ;;  %vm564_vm4 = vcmp.eq.f32.partialorder %v559_v1, inf  ;;  %v567_v20 = vand.u32 2147483648, %v559_v1 }
 0x1ab   : > { %v538_v4 = vpop.f32.mrb[16].mxu0  ;;  %vm566_vm6 = vcmp.eq.f32.partialorder %v559_v1, 0.0 }
 0x1ac   : > { %v555_v5 = vmul.f32 %v538_v4, %v538_v4  ;;  %v672_v6 = vpack.c.bf16 %v538_v4, %v538_v4  ;;  %v1967_v7 = vpop.f32.mrb[17].mxu0  ;;  %2242 = vrsqrt.f32 %v560_v3  ;;  %vm571_vm5 = vcmp.eq.f32.partialorder %v560_v3, inf }
 0x1ad   : > { %v541_v8 = vpop.f32.mrb[18].mxu0  ;;  %v574_v21 = vand.u32 2147483648, %v560_v3  ;;  %vm573_vm7 = vcmp.eq.f32.partialorder %v560_v3, 0.0 }
 0x1ae   : > { %v558_v9 = vadd.f32 %v555_v5, %v552_v55  ;;  %v1968_v10 = vpop.f32.mrb[19].mxu0 }
 0x1b0   : > { %v561_v11 = vmax.f32 %v558_v9, 1e-08  ;;  %2000 = vmatmul.mubr.msk.bf16.gmra.mrb[16].mxu1 %vm452_vm2, %v672_v6 }
 0x1b2   : > { %2244 = vrsqrt.f32 %v561_v11  ;;  %vm578_vm8 = vcmp.eq.f32.partialorder %v561_v11, inf  ;;  %v581_v28 = vand.u32 2147483648, %v561_v11  ;;  %vm580_vm9 = vcmp.eq.f32.partialorder %v561_v11, 0.0 }
 0x1b4   : > { %v2241_v14 = vpop.eup %2240 }
 0x1b5   : > { %v563_v16 = vmul.f32 %v2241_v14, %v559_v1 }
 0x1b6   : > { %v2243_v17 = vpop.eup %2242 }
 0x1b7   : > { %v565_v18 = vsel %vm564_vm4, %v559_v1, %v563_v16  ;;  %v570_v19 = vmul.f32 %v2243_v17, %v560_v3  ;;  %vm839_vm4 = vcmask 31744  }
 0x1b8   : > { %v568_v23 = vsel %vm566_vm6, %v567_v20, %v565_v18 }
 0x1b9   : > { %v572_v22 = vsel %vm571_vm5, %v560_v3, %v570_v19 }
 0x1ba   : > { %v575_v24 = vsel %vm573_vm7, %v574_v21, %v572_v22 }
 0x1bb   : > { %v2223_v25 = vpack.i.bf16 %v575_v24, %v568_v23 }
 0x1bc   : > { %v2245_v26 = vpop.eup %2244 }
 0x1bd   : > { %2224 = vrot.lane.b32.xlu0 %v2223_v25, %s2543_s11  ;;  %v577_v27 = vmul.f32 %v2245_v26, %v561_v11 }
 0x1bf   : > { %v579_v29 = vsel %vm578_vm8, %v561_v11, %v577_v27 }
 0x1c0   : > { %v582_v30 = vsel %vm580_vm9, %v581_v28, %v579_v29 }
 0x1c1   : > { %590 = vrot.lane.b32.xlu0 %v582_v30, %s2543_s11 }
 0x22f   : > { %v2225_v32 = vpop.permute.xlu0 %2224 }
 0x230   : > { %v2227_v35 = vunpack.i.h.bf16 %v2225_v32  ;;  %v2226_v36 = vunpack.i.l.bf16 %v2225_v32 }
 0x232   : > { %v596_v39 = vsel %vm595_vm10, %v410_v33, %v2226_v36  ;;  %v597_v40 = vsel %vm595_vm10, %v411_v34, %v2227_v35 }
 0x233   : > { %v591_v41 = vpop.permute.xlu0 %590  ;;  %v599_v42 = vpack.c.bf16 %v597_v40, %v596_v39 }
 0x234   : > { %v598_v43 = vsel %vm595_vm10, %v412_v37, %v591_v41 }
 0x235   : > { %v600_v44 = vpack.c.bf16 %v598_v43, %v598_v43  ;;  %1977 = vmatprep.mubr.msk.bf16.mxu0 %vm609_vm11, %v599_v42 }
 0x237   : > { %1978 = vmatmul.mubr.msk.bf16.vlgmr.msra.gmra.mrb[20].mxu0 %vm609_vm11, %v600_v44  ;;  %vm982_vm11 = vcmask 130048  }
 0x238   : > { %2004 = vmatpush3.bf16.msra.mxu0 %v857_v45  ;;  %2005 = vmatprep.mubr.msk.bf16.mxu0 %vm2542_vm0, %v2541_v0 }
 0x239   : > { %2055 = vmatprep.subr.bf16.mxu0 %v2541_v0 }
 0x263   : > { %v2925_v46 = vpop.f32.mrb[0].mxu1 }
 0x264   : > { %v1985_v47 = vpop.f32.mrb[1].mxu1  ;;  %v764_v53 = vmul.f32 %v2925_v46, %v2925_v46 }
 0x265   : > { %v2927_v48 = vpop.f32.mrb[2].mxu1 }
 0x266   : > { %v1986_v49 = vpop.f32.mrb[3].mxu1  ;;  %v765_v58 = vmul.f32 %v2927_v48, %v2927_v48 }
 0x26b   : > { %v2929_v50 = vpop.f32.mrb[4].mxu1 }
 0x26c   : > { %v1989_v51 = vpop.f32.mrb[5].mxu1  ;;  %v766_v62 = vmul.f32 %v2929_v50, %v2929_v50 }
 0x26d   : > { %v2931_v52 = vpop.f32.mrb[6].mxu1 }
 0x26e   : > { %v767_v54 = vmul.f32 %v2931_v52, %v2931_v52  ;;  %v1990_v55 = vpop.f32.mrb[7].mxu1 }
 0x270   : > { %v770_v56 = vadd.f32 %v767_v54, %v764_v53 }
 0x273   : > { %v2937_v57 = vpop.f32.mrb[8].mxu1 }
 0x274   : > { %v768_v59 = vmul.f32 %v2937_v57, %v2937_v57  ;;  %v1993_v60 = vpop.f32.mrb[9].mxu1 }
 0x275   : > { %v2943_v61 = vpop.f32.mrb[10].mxu1 }
 0x276   : > { %v771_v63 = vadd.f32 %v768_v59, %v765_v58  ;;  %v769_v1 = vmul.f32 %v2943_v61, %v2943_v61  ;;  %v1994_v2 = vpop.f32.mrb[11].mxu1 }
 0x278   : > { %v772_v3 = vadd.f32 %v769_v1, %v766_v62 }
 0x27b   : > { %v750_v4 = vpop.f32.mrb[12].mxu1 }
 0x27c   : > { %v773_v5 = vmul.f32 %v750_v4, %v750_v4  ;;  %v1997_v6 = vpop.f32.mrb[13].mxu1 }
 0x27d   : > { %v753_v7 = vpop.f32.mrb[14].mxu1 }
 0x27e   : > { %v776_v8 = vadd.f32 %v773_v5, %v770_v56  ;;  %v774_v9 = vmul.f32 %v753_v7, %v753_v7  ;;  %v1998_v10 = vpop.f32.mrb[15].mxu1 }
 0x280   : > { %v779_v11 = vmax.f32 %v776_v8, 1e-08  ;;  %v777_v12 = vadd.f32 %v774_v9, %v771_v63 }
 0x282   : > { %2246 = vrsqrt.f32 %v779_v11  ;;  %v780_v13 = vmax.f32 %v777_v12, 1e-08  ;;  %vm784_vm13 = vcmp.eq.f32.partialorder %v779_v11, inf  ;;  %v787_v23 = vand.u32 2147483648, %v779_v11 }
 0x283   : > { %v758_v14 = vpop.f32.mrb[16].mxu1  ;;  %vm786_vm14 = vcmp.eq.f32.partialorder %v779_v11, 0.0 }
 0x284   : > { %v775_v15 = vmul.f32 %v758_v14, %v758_v14  ;;  %v2001_v16 = vpop.f32.mrb[17].mxu1  ;;  %2248 = vrsqrt.f32 %v780_v13  ;;  %vm791_vm15 = vcmp.eq.f32.partialorder %v780_v13, inf  ;;  %v794_v29 = vand.u32 2147483648, %v780_v13 }
 0x285   : > { %v761_v17 = vpop.f32.mrb[18].mxu1  ;;  %vm793_vm1 = vcmp.eq.f32.partialorder %v780_v13, 0.0 }
 0x286   : > { %v778_v18 = vadd.f32 %v775_v15, %v772_v3  ;;  %v2002_v19 = vpop.f32.mrb[19].mxu1  ;;  %v435_v3 = vld [vmem:[%s2866_s28 + $0x68] sm:$0xff] }
 0x288   : > { %v781_v20 = vmax.f32 %v778_v18, 1e-08 }
 0x28a   : > { %2250 = vrsqrt.f32 %v781_v20  ;;  %vm798_vm2 = vcmp.eq.f32.partialorder %v781_v20, inf  ;;  %v801_v35 = vand.u32 2147483648, %v781_v20  ;;  %vm800_vm3 = vcmp.eq.f32.partialorder %v781_v20, 0.0 }
 0x28c   : > { %v2247_v21 = vpop.eup %2246 }
 0x28d   : > { %v783_v22 = vmul.f32 %v2247_v21, %v779_v11 }
 0x28e   : > { %v2249_v24 = vpop.eup %2248 }
 0x28f   : > { %v785_v25 = vsel %vm784_vm13, %v779_v11, %v783_v22  ;;  %v790_v27 = vmul.f32 %v2249_v24, %v780_v13  ;;  %vm994_vm13 = vcmask 162816  }
 0x290   : > { %v788_v26 = vsel %vm786_vm14, %v787_v23, %v785_v25 }
 0x291   : > { %v1856_v28 = vmul.f32 -1.442695, %v788_v26  ;;  %v792_v30 = vsel %vm791_vm15, %v780_v13, %v790_v27 }
 0x292   : > { %v795_v31 = vsel %vm793_vm1, %v794_v29, %v792_v30 }
 0x293   : > { %2252 = vpow2.f32 %v1856_v28  ;;  %v1857_v33 = vmul.f32 -1.442695, %v795_v31 }
 0x294   : > { %v2251_v32 = vpop.eup %2250 }
 0x295   : > { %v797_v34 = vmul.f32 %v2251_v32, %v781_v20  ;;  %2254 = vpow2.f32 %v1857_v33 }
 0x297   : > { %v799_v36 = vsel %vm798_vm2, %v781_v20, %v797_v34 }
 0x298   : > { %v802_v37 = vsel %vm800_vm3, %v801_v35, %v799_v36 }
 0x299   : > { %v1858_v38 = vmul.f32 -1.442695, %v802_v37 }
 0x29b   : > { %2256 = vpow2.f32 %v1858_v38 }
 0x29d   : > { %v2253_v39 = vpop.eup %2252 }
 0x29e   : > { %v812_v40 = vadd.f32 1.0, %v2253_v39 }
 0x29f   : > { %v2255_v41 = vpop.eup %2254 }
 0x2a0   : > { %2258 = vrcp.f32 %v812_v40  ;;  %v813_v42 = vadd.f32 1.0, %v2255_v41 }
 0x2a2   : > { %2260 = vrcp.f32 %v813_v42 }
 0x2a5   : > { %v2257_v43 = vpop.eup %2256 }
 0x2a6   : > { %v814_v44 = vadd.f32 1.0, %v2257_v43 }
 0x2a8   : > { %2262 = vrcp.f32 %v814_v44 }
 0x2aa   : > { %v2259_v45 = vpop.eup %2258 }
 0x2ab   : > { %v827_v47 = vmul.f32 %v2259_v45, %v750_v4  ;;  %v821_v49 = vmul.f32 %v2259_v45, %v2925_v46  ;;  %v824_v51 = vmul.f32 %v2259_v45, %v2931_v52  ;;  %v436_v4 = vld [vmem:[%s2866_s28 + $0x70] sm:$0xff] }
 0x2ac   : > { %v2261_v53 = vpop.eup %2260  ;;  %v988_v5 = vpack.c.bf16 %v436_v4, %v435_v3 }
 0x2ad   : > { %v828_v54 = vmul.f32 %v2261_v53, %v753_v7  ;;  %v822_v55 = vmul.f32 %v2261_v53, %v2927_v48  ;;  %v825_v56 = vmul.f32 %v2261_v53, %v2937_v57 }
 0x2ae   : > { %2025 = vmatprep.subr.bf16.mxu1 %v988_v5 }
 0x2af   : > { %v836_v58 = vpack.c.bf16 %v828_v54, %v827_v47  ;;  %v833_v59 = vpack.c.bf16 %v822_v55, %v821_v49  ;;  %2026 = vmatpush3.bf16.msra.mxu1 %v988_v5 }
 0x2b1   : > { %2006 = vmatmul.mubr.msk.bf16.vlgmr.msra.gmra.mrb[24].mxu0 %vm839_vm4, %v833_v59 }
 0x2b2   : > { %v2263_v60 = vpop.eup %2262  ;;  %2009 = vmatprep.mubr.msk.bf16.mxu0 %vm2542_vm0, %v2541_v0 }
 0x2b3   : > { %v829_v62 = vmul.f32 %v2263_v60, %v758_v14  ;;  %v823_v46 = vmul.f32 %v2263_v60, %v2929_v50  ;;  %v826_v52 = vmul.f32 %v2263_v60, %v2943_v61 }
 0x2b5   : > { %v834_v63 = vpack.c.bf16 %v824_v51, %v823_v46  ;;  %v835_v48 = vpack.c.bf16 %v826_v52, %v825_v56  ;;  %v837_v50 = vpack.c.bf16 %v829_v62, %v829_v62  ;;  %v437_v51 = vld [vmem:[%s2866_s28 + $0x78] sm:$0xff] }
 0x2b6   : > { %v989_v53 = vpack.c.bf16 %v437_v51, %v437_v51 }
 0x2b8   : > { %2116 = vmatprep.subr.msk.bf16.mxu1 %vm855_vm12, %v989_v53  ;;  %v1002_v56 = vsel %vm855_vm12, %v989_v53, 0 }
 0x2b9   : > { %2010 = vmatmul.mubr.msk.bf16.gmra.mrb[28].mxu0 %vm839_vm4, %v834_v63  ;;  %2028 = vmatpush3.bf16.msra.mxu1 %v1002_v56 }
 0x2ba   : > { %2013 = vmatprep.mubr.msk.bf16.mxu0 %vm2542_vm0, %v2541_v0  ;;  %2033 = vmatprep.subr.bf16.mxu1 %v2541_v0 }
 0x2c1   : > { %2014 = vmatmul.mubr.msk.bf16.gmra.mrb[32].mxu0 %vm839_vm4, %v835_v48 }
 0x2c2   : > { %2017 = vmatprep.mubr.msk.bf16.mxu0 %vm2542_vm0, %v2541_v0 }
 0x2c9   : > { %2018 = vmatmul.mubr.msk.bf16.gmra.mrb[36].mxu0 %vm839_vm4, %v836_v58 }
 0x2ca   : > { %2021 = vmatprep.mubr.msk.bf16.mxu0 %vm2542_vm0, %v2541_v0 }
 0x2d1   : > { %2022 = vmatmul.mubr.msk.bf16.gmra.mrb[40].mxu0 %vm839_vm4, %v837_v50 }
 0x2d2   : > { %2057 = vmatprep.mubr.msk.bf16.mxu0 %vm2542_vm0, %v2541_v0 }
 0x30a   : > { %v2970_v57 = vpop.f32.mrb[20].mxu0 }
 0x30b   : > { %v2972_v61 = vpop.f32.mrb[21].mxu0 }
 0x30c   : > { %v1980_v1 = vpop.f32.mrb[22].mxu0 }
 0x30d   : > { %v2974_v2 = vpop.f32.mrb[23].mxu0 }
 0x384   : > { %v2978_v6 = vpop.f32.mrb[24].mxu0 }
 0x385   : > { %v2007_v7 = vpop.f32.mrb[25].mxu0  ;;  %v931_v14 = vmul.f32 %v2978_v6, %v2978_v6 }
 0x386   : > { %v2980_v8 = vpop.f32.mrb[26].mxu0 }
 0x387   : > { %v1052_v9 = vpack.c.bf16 %v2980_v8, %v2978_v6  ;;  %v2008_v10 = vpop.f32.mrb[27].mxu0  ;;  %v932_v20 = vmul.f32 %v2980_v8, %v2980_v8  ;;  %v440_v8 = vld [vmem:[%s2866_s28 + $0x90] sm:$0xff] }
 0x388   : > { %v605_v10 = vlaneseq }
 0x38c   : > { %v2984_v11 = vpop.f32.mrb[28].mxu0 }
 0x38d   : > { %v2011_v12 = vpop.f32.mrb[29].mxu0  ;;  %v933_v24 = vmul.f32 %v2984_v11, %v2984_v11 }
 0x38e   : > { %v2986_v13 = vpop.f32.mrb[30].mxu0  ;;  %v3028_v12 = vshrl.u32 %v605_v10, 7 }
 0x38f   : > { %v934_v15 = vmul.f32 %v2986_v13, %v2986_v13  ;;  %v1053_v16 = vpack.c.bf16 %v2986_v13, %v2984_v11  ;;  %v2012_v17 = vpop.f32.mrb[31].mxu0 }
 0x391   : > { %v937_v18 = vadd.f32 %v934_v15, %v931_v14  ;;  %v3031_v14 = vsub.s32 0, %v3028_v12  ;;  %v431_v15 = vld [vmem:[%s2866_s28 + $0x48] sm:$0xff] }
 0x393   : > { %v608_v17 = vrot.slane %v431_v15, %v3031_v14 }
 0x394   : > { %v2994_v19 = vpop.f32.mrb[32].mxu0 }
 0x395   : > { %v935_v21 = vmul.f32 %v2994_v19, %v2994_v19  ;;  %v2015_v22 = vpop.f32.mrb[33].mxu0 }
 0x396   : > { %v3000_v23 = vpop.f32.mrb[34].mxu0  ;;  %v439_v22 = vld [vmem:[%s2866_s28 + $0x88] sm:$0xff] }
 0x397   : > { %v938_v25 = vadd.f32 %v935_v21, %v932_v20  ;;  %v936_v26 = vmul.f32 %v3000_v23, %v3000_v23  ;;  %v1054_v27 = vpack.c.bf16 %v3000_v23, %v2994_v19  ;;  %v2016_v28 = vpop.f32.mrb[35].mxu0  ;;  %v658_v20 = vadd.f32 %v2974_v2, %v608_v17 }
 0x398   : > { %v663_v21 = vadd.f32 %v2970_v57, %v608_v17 }
 0x399   : > { %v939_v29 = vadd.f32 %v936_v26, %v933_v24  ;;  %v831_v26 = vmax.f32 %v658_v20, 0.0 }
 0x39c   : > { %v3008_v30 = vpop.f32.mrb[36].mxu0 }
 0x39d   : > { %v940_v31 = vmul.f32 %v3008_v30, %v3008_v30  ;;  %v2019_v32 = vpop.f32.mrb[37].mxu0 }
 0x39e   : > { %v3012_v33 = vpop.f32.mrb[38].mxu0  ;;  %v832_v32 = vmax.f32 %v663_v21, 0.0 }
 0x39f   : > { %v943_v34 = vadd.f32 %v940_v31, %v937_v18  ;;  %v941_v35 = vmul.f32 %v3012_v33, %v3012_v33  ;;  %v1055_v36 = vpack.c.bf16 %v3012_v33, %v3008_v30  ;;  %v2020_v37 = vpop.f32.mrb[39].mxu0  ;;  %v655_v18 = vadd.f32 %v2972_v61, %v608_v17 }
 0x3a0   : > { %v1057_v31 = vpack.c.bf16 %v439_v22, %v439_v22 }
 0x3a1   : > { %v946_v38 = vmax.f32 %v943_v34, 1e-08  ;;  %v944_v39 = vadd.f32 %v941_v35, %v938_v25  ;;  %v830_v25 = vmax.f32 %v655_v18, 0.0 }
 0x3a2   : > { %v1074_v57 = vsel %vm855_vm12, %v1057_v31, 0 }
 0x3a3   : > { %v947_v40 = vmax.f32 %v944_v39, 1e-08  ;;  %2264 = vrsqrt.f32 %v946_v38  ;;  %vm951_vm5 = vcmp.eq.f32.partialorder %v946_v38, inf  ;;  %v954_v62 = vand.u32 2147483648, %v946_v38 }
 0x3a4   : > { %v3018_v41 = vpop.f32.mrb[40].mxu0  ;;  %vm953_vm7 = vcmp.eq.f32.partialorder %v946_v38, 0.0 }
 0x3a5   : > { %v942_v42 = vmul.f32 %v3018_v41, %v3018_v41  ;;  %v2023_v43 = vpop.f32.mrb[41].mxu0  ;;  %2266 = vrsqrt.f32 %v947_v40  ;;  %vm958_vm6 = vcmp.eq.f32.partialorder %v947_v40, inf  ;;  %v961_v46 = vand.u32 2147483648, %v947_v40 }
 0x3a6   : > { %v928_v44 = vpop.f32.mrb[42].mxu0  ;;  %vm960_vm8 = vcmp.eq.f32.partialorder %v947_v40, 0.0  ;;  %v1056_v6 = vpack.c.bf16 %v3018_v41, %v3018_v41 }
 0x3a7   : > { %v945_v45 = vadd.f32 %v942_v42, %v939_v29  ;;  %v2024_v47 = vpop.f32.mrb[43].mxu0 }
 0x3a9   : > { %v948_v49 = vmax.f32 %v945_v45, 1e-08 }
 0x3ab   : > { %2268 = vrsqrt.f32 %v948_v49  ;;  %vm965_vm9 = vcmp.eq.f32.partialorder %v948_v49, inf  ;;  %v968_v4 = vand.u32 2147483648, %v948_v49  ;;  %vm967_vm10 = vcmp.eq.f32.partialorder %v948_v49, 0.0 }
 0x3ad   : > { %v2265_v54 = vpop.eup %2264 }
 0x3ae   : > { %v950_v55 = vmul.f32 %v2265_v54, %v946_v38 }
 0x3af   : > { %v2267_v58 = vpop.eup %2266 }
 0x3b0   : > { %v952_v59 = vsel %vm951_vm5, %v946_v38, %v950_v55  ;;  %v957_v60 = vmul.f32 %v2267_v58, %v947_v40 }
 0x3b1   : > { %v955_v63 = vsel %vm953_vm7, %v954_v62, %v952_v59 }
 0x3b2   : > { %v959_v52 = vsel %vm958_vm6, %v947_v40, %v957_v60 }
 0x3b3   : > { %v962_v48 = vsel %vm960_vm8, %v961_v46, %v959_v52 }
 0x3b4   : > { %v2228_v50 = vpack.i.bf16 %v962_v48, %v955_v63 }
 0x3b5   : > { %v2269_v1 = vpop.eup %2268 }
 0x3b6   : > { %2229 = vrot.lane.b32.xlu1 %v2228_v50, %s2544_s9  ;;  %v964_v3 = vmul.f32 %v2269_v1, %v948_v49 }
 0x3b8   : > { %v966_v5 = vsel %vm965_vm9, %v948_v49, %v964_v3 }
 0x3b9   : > { %v969_v7 = vsel %vm967_vm10, %v968_v4, %v966_v5 }
 0x3ba   : > { %977 = vrot.lane.b32.xlu1 %v969_v7, %s2544_s9 }
 0x428   : > { %v2230_v24 = vpop.permute.xlu1 %2229 }
 0x429   : > { %v2232_v28 = vunpack.i.h.bf16 %v2230_v24  ;;  %v2231_v29 = vunpack.i.l.bf16 %v2230_v24 }
 0x42b   : > { %v983_v34 = vsel %vm982_vm11, %v830_v25, %v2231_v29  ;;  %v984_v35 = vsel %vm982_vm11, %v831_v26, %v2232_v28 }
 0x42c   : > { %v986_v37 = vpack.c.bf16 %v984_v35, %v983_v34  ;;  %v978_v61 = vpop.permute.xlu1 %977 }
 0x42d   : > { %v985_v2 = vsel %vm982_vm11, %v832_v32, %v978_v61 }
 0x42e   : > { %v987_v38 = vpack.c.bf16 %v985_v2, %v985_v2  ;;  %2029 = vmatprep.mubr.msk.bf16.mxu1 %vm994_vm13, %v986_v37 }
 0x430   : > { %2030 = vmatmul.mubr.msk.bf16.vlgmr.msra.gmra.mrb[20].mxu1 %vm994_vm13, %v987_v38 }
 0x431   : > { %2034 = vmatpush3.bf16.msra.mxu1 %v1074_v57  ;;  %2035 = vmatprep.mubr.msk.bf16.mxu1 %vm2542_vm0, %v2541_v0 }
 0x438   : > { %2036 = vmatmul.mubr.msk.bf16.vlgmr.msra.gmra.mrb[24].mxu1 %vm839_vm4, %v1052_v9  ;;  %v1222_v9 = vpack.c.bf16 %v440_v8, %v440_v8 }
 0x439   : > { %2039 = vmatprep.mubr.msk.bf16.mxu1 %vm2542_vm0, %v2541_v0 }
 0x43a   : > { %v1239_v11 = vsel %vm855_vm12, %v1222_v9, 0 }
 0x43b   : > { %2056 = vmatpush3.bf16.msra.mxu0 %v1239_v11 }
 0x43c   : > { %2107 = vmatprep.subr.bf16.mxu0 %v2541_v0 }
 0x440   : > { %2040 = vmatmul.mubr.msk.bf16.gmra.mrb[28].mxu1 %vm839_vm4, %v1053_v16 }
 0x441   : > { %2043 = vmatprep.mubr.msk.bf16.mxu1 %vm2542_vm0, %v2541_v0 }
 0x448   : > { %2044 = vmatmul.mubr.msk.bf16.gmra.mrb[32].mxu1 %vm839_vm4, %v1054_v27 }
 0x449   : > { %2047 = vmatprep.mubr.msk.bf16.mxu1 %vm2542_vm0, %v2541_v0 }
 0x450   : > { %2048 = vmatmul.mubr.msk.bf16.gmra.mrb[36].mxu1 %vm839_vm4, %v1055_v36 }
 0x451   : > { %2051 = vmatprep.mubr.msk.bf16.mxu1 %vm2542_vm0, %v2541_v0 }
 0x458   : > { %2052 = vmatmul.mubr.msk.bf16.gmra.mrb[40].mxu1 %vm839_vm4, %v1056_v6 }
 0x503   : > { %v3077_v13 = vpop.f32.mrb[20].mxu1 }
 0x504   : > { %v3079_v16 = vpop.f32.mrb[21].mxu1 }
 0x505   : > { %v2032_v19 = vpop.f32.mrb[22].mxu1 }
 0x506   : > { %v3081_v23 = vpop.f32.mrb[23].mxu1 }
 0x50b   : > { %v3083_v27 = vpop.f32.mrb[24].mxu1 }
 0x50c   : > { %v2037_v30 = vpop.f32.mrb[25].mxu1  ;;  %v1148_v42 = vmul.f32 %v3083_v27, %v3083_v27 }
 0x50d   : > { %v3085_v33 = vpop.f32.mrb[26].mxu1 }
 0x50e   : > { %v2038_v36 = vpop.f32.mrb[27].mxu1  ;;  %v1149_v49 = vmul.f32 %v3085_v33, %v3085_v33 }
 0x513   : > { %v3087_v39 = vpop.f32.mrb[28].mxu1 }
 0x514   : > { %v2041_v40 = vpop.f32.mrb[29].mxu1  ;;  %v1150_v55 = vmul.f32 %v3087_v39, %v3087_v39 }
 0x515   : > { %v3089_v41 = vpop.f32.mrb[30].mxu1 }
 0x516   : > { %v1151_v43 = vmul.f32 %v3089_v41, %v3089_v41  ;;  %v2042_v44 = vpop.f32.mrb[31].mxu1 }
 0x518   : > { %v1154_v45 = vadd.f32 %v1151_v43, %v1148_v42 }
 0x51b   : > { %v3095_v47 = vpop.f32.mrb[32].mxu1 }
 0x51c   : > { %v1152_v51 = vmul.f32 %v3095_v47, %v3095_v47  ;;  %v2045_v53 = vpop.f32.mrb[33].mxu1 }
 0x51d   : > { %v3101_v54 = vpop.f32.mrb[34].mxu1 }
 0x51e   : > { %v1155_v56 = vadd.f32 %v1152_v51, %v1149_v49  ;;  %v1153_v58 = vmul.f32 %v3101_v54, %v3101_v54  ;;  %v2046_v59 = vpop.f32.mrb[35].mxu1 }
 0x520   : > { %v1156_v60 = vadd.f32 %v1153_v58, %v1150_v55 }
 0x523   : > { %v1134_v62 = vpop.f32.mrb[36].mxu1 }
 0x524   : > { %v1157_v46 = vmul.f32 %v1134_v62, %v1134_v62  ;;  %v2049_v52 = vpop.f32.mrb[37].mxu1 }
 0x525   : > { %v1137_v63 = vpop.f32.mrb[38].mxu1 }
 0x526   : > { %v1160_v48 = vadd.f32 %v1157_v46, %v1154_v45  ;;  %v1158_v50 = vmul.f32 %v1137_v63, %v1137_v63  ;;  %v2050_v1 = vpop.f32.mrb[39].mxu1 }
 0x528   : > { %v1163_v3 = vmax.f32 %v1160_v48, 1e-08  ;;  %v1161_v4 = vadd.f32 %v1158_v50, %v1155_v56 }
 0x52a   : > { %2270 = vrsqrt.f32 %v1163_v3  ;;  %v1164_v5 = vmax.f32 %v1161_v4, 1e-08  ;;  %vm1168_vm14 = vcmp.eq.f32.partialorder %v1163_v3, inf  ;;  %v1171_v25 = vand.u32 2147483648, %v1163_v3 }
 0x52b   : > { %v1142_v7 = vpop.f32.mrb[40].mxu1  ;;  %vm1170_vm15 = vcmp.eq.f32.partialorder %v1163_v3, 0.0 }
 0x52c   : > { %v1159_v10 = vmul.f32 %v1142_v7, %v1142_v7  ;;  %v2053_v15 = vpop.f32.mrb[41].mxu1  ;;  %2272 = vrsqrt.f32 %v1164_v5  ;;  %vm1175_vm1 = vcmp.eq.f32.partialorder %v1164_v5, inf  ;;  %v1178_v34 = vand.u32 2147483648, %v1164_v5 }
 0x52d   : > { %v1145_v17 = vpop.f32.mrb[42].mxu1  ;;  %vm1177_vm2 = vcmp.eq.f32.partialorder %v1164_v5, 0.0 }
 0x52e   : > { %v1162_v18 = vadd.f32 %v1159_v10, %v1156_v60  ;;  %v2054_v20 = vpop.f32.mrb[43].mxu1 }
 0x530   : > { %v1165_v21 = vmax.f32 %v1162_v18, 1e-08 }
 0x532   : > { %2274 = vrsqrt.f32 %v1165_v21  ;;  %vm1182_vm3 = vcmp.eq.f32.partialorder %v1165_v21, inf  ;;  %v1185_v57 = vand.u32 2147483648, %v1165_v21  ;;  %vm1184_vm5 = vcmp.eq.f32.partialorder %v1165_v21, 0.0 }
 0x534   : > { %v2271_v22 = vpop.eup %2270 }
 0x535   : > { %v1167_v24 = vmul.f32 %v2271_v22, %v1163_v3 }
 0x536   : > { %v2273_v26 = vpop.eup %2272 }
 0x537   : > { %v1169_v28 = vsel %vm1168_vm14, %v1163_v3, %v1167_v24  ;;  %v1174_v31 = vmul.f32 %v2273_v26, %v1164_v5 }
 0x538   : > { %v1172_v29 = vsel %vm1170_vm15, %v1171_v25, %v1169_v28  ;;  %vm1613_vm15 = vcmask 1043456  }
 0x539   : > { %v1871_v32 = vmul.f32 -1.442695, %v1172_v29  ;;  %v1176_v35 = vsel %vm1175_vm1, %v1164_v5, %v1174_v31 }
 0x53a   : > { %v1179_v37 = vsel %vm1177_vm2, %v1178_v34, %v1176_v35 }
 0x53b   : > { %2276 = vpow2.f32 %v1871_v32  ;;  %v1872_v2 = vmul.f32 -1.442695, %v1179_v37 }
 0x53c   : > { %v2275_v61 = vpop.eup %2274 }
 0x53d   : > { %v1181_v38 = vmul.f32 %v2275_v61, %v1165_v21  ;;  %2278 = vpow2.f32 %v1872_v2 }
 0x53f   : > { %v1183_v6 = vsel %vm1182_vm3, %v1165_v21, %v1181_v38 }
 0x540   : > { %v1186_v8 = vsel %vm1184_vm5, %v1185_v57, %v1183_v6 }
 0x541   : > { %v1873_v9 = vmul.f32 -1.442695, %v1186_v8 }
 0x543   : > { %2280 = vpow2.f32 %v1873_v9 }
 0x545   : > { %v2277_v11 = vpop.eup %2276 }
 0x546   : > { %v1196_v19 = vadd.f32 1.0, %v2277_v11 }
 0x547   : > { %v2279_v30 = vpop.eup %2278 }
 0x548   : > { %2282 = vrcp.f32 %v1196_v19  ;;  %v1197_v36 = vadd.f32 1.0, %v2279_v30 }
 0x54a   : > { %2284 = vrcp.f32 %v1197_v36 }
 0x54d   : > { %v2281_v40 = vpop.eup %2280 }
 0x54e   : > { %v1198_v42 = vadd.f32 1.0, %v2281_v40 }
 0x550   : > { %2286 = vrcp.f32 %v1198_v42 }
 0x552   : > { %v2283_v43 = vpop.eup %2282 }
 0x553   : > { %v1211_v44 = vmul.f32 %v2283_v43, %v1134_v62  ;;  %v1205_v45 = vmul.f32 %v2283_v43, %v3083_v27  ;;  %v1208_v49 = vmul.f32 %v2283_v43, %v3089_v41 }
 0x554   : > { %v2285_v51 = vpop.eup %2284 }
 0x555   : > { %v1212_v53 = vmul.f32 %v2285_v51, %v1137_v63  ;;  %v1206_v55 = vmul.f32 %v2285_v51, %v3085_v33  ;;  %v1209_v56 = vmul.f32 %v2285_v51, %v3095_v47  ;;  %v442_v47 = vld [vmem:[%s2866_s28 + $0xa0] sm:$0xff]  ;;  %v443_v51 = vld [vmem:[%s2866_s28 + $0xa8] sm:$0xff] }
 0x557   : > { %v1220_v58 = vpack.c.bf16 %v1212_v53, %v1211_v44  ;;  %v1217_v59 = vpack.c.bf16 %v1206_v55, %v1205_v45  ;;  %v1370_v53 = vpack.c.bf16 %v443_v51, %v443_v51 }
 0x559   : > { %2058 = vmatmul.mubr.msk.bf16.vlgmr.msra.gmra.mrb[44].mxu0 %vm839_vm4, %v1217_v59 }
 0x55a   : > { %v2287_v60 = vpop.eup %2286  ;;  %2061 = vmatprep.mubr.msk.bf16.mxu0 %vm2542_vm0, %v2541_v0 }
 0x55b   : > { %v1213_v46 = vmul.f32 %v2287_v60, %v1142_v7  ;;  %v1207_v27 = vmul.f32 %v2287_v60, %v3087_v39  ;;  %v1210_v41 = vmul.f32 %v2287_v60, %v3101_v54  ;;  %v441_v39 = vld [vmem:[%s2866_s28 + $0x98] sm:$0xff] }
 0x55c   : > { %v1369_v54 = vpack.c.bf16 %v442_v47, %v441_v39 }
 0x55d   : > { %v1218_v62 = vpack.c.bf16 %v1208_v49, %v1207_v27  ;;  %v1219_v52 = vpack.c.bf16 %v1210_v41, %v1209_v56  ;;  %v1221_v33 = vpack.c.bf16 %v1213_v46, %v1213_v46 }
 0x55e   : > { %2077 = vmatprep.subr.bf16.mxu1 %v1369_v54 }
 0x55f   : > { %2078 = vmatpush3.bf16.msra.mxu1 %v1369_v54 }
 0x560   : > { %2117 = vmatprep.subr.msk.bf16.mxu1 %vm855_vm12, %v1370_v53 }
 0x561   : > { %2062 = vmatmul.mubr.msk.bf16.gmra.mrb[48].mxu0 %vm839_vm4, %v1218_v62 }
 0x562   : > { %2065 = vmatprep.mubr.msk.bf16.mxu0 %vm2542_vm0, %v2541_v0 }
 0x569   : > { %2066 = vmatmul.mubr.msk.bf16.gmra.mrb[52].mxu0 %vm839_vm4, %v1219_v52 }
 0x56a   : > { %2069 = vmatprep.mubr.msk.bf16.mxu0 %vm2542_vm0, %v2541_v0 }
 0x571   : > { %2070 = vmatmul.mubr.msk.bf16.gmra.mrb[56].mxu0 %vm839_vm4, %v1220_v58  ;;  %v1382_v58 = vsel %vm855_vm12, %v1370_v53, 0 }
 0x572   : > { %2073 = vmatprep.mubr.msk.bf16.mxu0 %vm2542_vm0, %v2541_v0  ;;  %2080 = vmatpush3.bf16.msra.mxu1 %v1382_v58 }
 0x573   : > { %2085 = vmatprep.subr.bf16.mxu1 %v2541_v0 }
 0x579   : > { %2074 = vmatmul.mubr.msk.bf16.gmra.mrb[60].mxu0 %vm839_vm4, %v1221_v33 }
 0x57a   : > { %2111 = vmatprep.mubr.msk.bf16.mxu0 %vm2542_vm0, %v2541_v0 }
 0x62c   : > { %v3130_v63 = vpop.f32.mrb[44].mxu0 }
 0x62d   : > { %v2059_v48 = vpop.f32.mrb[45].mxu0  ;;  %v1313_v10 = vmul.f32 %v3130_v63, %v3130_v63 }
 0x62e   : > { %v3132_v50 = vpop.f32.mrb[46].mxu0 }
 0x62f   : > { %v1432_v1 = vpack.c.bf16 %v3132_v50, %v3130_v63  ;;  %v2060_v3 = vpop.f32.mrb[47].mxu0  ;;  %v1314_v22 = vmul.f32 %v3132_v50, %v3132_v50 }
 0x634   : > { %v3136_v4 = vpop.f32.mrb[48].mxu0 }
 0x635   : > { %v2063_v5 = vpop.f32.mrb[49].mxu0  ;;  %v1315_v28 = vmul.f32 %v3136_v4, %v3136_v4 }
 0x636   : > { %v3138_v7 = vpop.f32.mrb[50].mxu0 }
 0x637   : > { %v1316_v15 = vmul.f32 %v3138_v7, %v3138_v7  ;;  %v1433_v17 = vpack.c.bf16 %v3138_v7, %v3136_v4  ;;  %v2064_v18 = vpop.f32.mrb[51].mxu0 }
 0x638   : > { %v2545_v18 = vmov 0  }
 0x639   : > { %v1319_v20 = vadd.f32 %v1316_v15, %v1313_v10  ;;  %v1529_v10 = vld [vmem:[%s2853_s17 + $0x8] sm:$0xff]  ;;  %v1528_v15 = vld [vmem:[%s2853_s17] sm:$0xff]  ;;  %2239 = vset.pattern.permute.xlu1 %v2545_v18  ;;  %2238 = vset.pattern.permute.xlu0 %v2545_v18 }
 0x63c   : > { %v3146_v21 = vpop.f32.mrb[52].mxu0 }
 0x63d   : > { %v1317_v24 = vmul.f32 %v3146_v21, %v3146_v21  ;;  %v2067_v25 = vpop.f32.mrb[53].mxu0 }
 0x63e   : > { %v3152_v26 = vpop.f32.mrb[54].mxu0 }
 0x63f   : > { %v1320_v29 = vadd.f32 %v1317_v24, %v1314_v22  ;;  %v1318_v31 = vmul.f32 %v3152_v26, %v3152_v26  ;;  %v1434_v32 = vpack.c.bf16 %v3152_v26, %v3146_v21  ;;  %v2068_v34 = vpop.f32.mrb[55].mxu0  ;;  %v438_v22 = vld [vmem:[%s2866_s28 + $0x80] sm:$0xff] }
 0x640   : > { %v993_v24 = vrot.slane %v438_v22, %v3031_v14 }
 0x641   : > { %v1321_v35 = vadd.f32 %v1318_v31, %v1315_v28  ;;  %v445_v31 = vld [vmem:[%s2866_s28 + $0xb8] sm:$0xff] }
 0x642   : > { %v1039_v25 = vadd.f32 %v3079_v16, %v993_v24  ;;  %v1042_v28 = vadd.f32 %v3081_v23, %v993_v24 }
 0x644   : > { %v3160_v37 = vpop.f32.mrb[56].mxu0 }
 0x645   : > { %v1322_v61 = vmul.f32 %v3160_v37, %v3160_v37  ;;  %v2071_v2 = vpop.f32.mrb[57].mxu0 }
 0x646   : > { %v3164_v38 = vpop.f32.mrb[58].mxu0 }
 0x647   : > { %v1325_v57 = vadd.f32 %v1322_v61, %v1319_v20  ;;  %v1323_v6 = vmul.f32 %v3164_v38, %v3164_v38  ;;  %v1435_v8 = vpack.c.bf16 %v3164_v38, %v3160_v37  ;;  %v2072_v9 = vpop.f32.mrb[59].mxu0  ;;  %v1530_v20 = vld [vmem:[%s2853_s17 + $0x10] sm:$0xff]  ;;  %v1215_v61 = vmax.f32 %v1042_v28, 0.0 }
 0x648   : > { %v1600_v28 = vadd.s32 8, %v3028_v12 }
 0x649   : > { %v1328_v11 = vmax.f32 %v1325_v57, 1e-08  ;;  %v1326_v19 = vadd.f32 %v1323_v6, %v1320_v29  ;;  %v1047_v29 = vadd.f32 %v3077_v13, %v993_v24  ;;  %v1437_v6 = vpack.c.bf16 %v445_v31, %v445_v31 }
 0x64b   : > { %2288 = vrsqrt.f32 %v1328_v11  ;;  %v1329_v30 = vmax.f32 %v1326_v19, 1e-08  ;;  %vm1333_vm6 = vcmp.eq.f32.partialorder %v1328_v11, inf  ;;  %v1336_v27 = vand.u32 2147483648, %v1328_v11 }
 0x64c   : > { %v3170_v36 = vpop.f32.mrb[60].mxu0  ;;  %vm1335_vm8 = vcmp.eq.f32.partialorder %v1328_v11, 0.0  ;;  %v1216_v9 = vmax.f32 %v1047_v29, 0.0  ;;  %v1454_v13 = vsel %vm855_vm12, %v1437_v6, 0 }
 0x64d   : > { %2290 = vrsqrt.f32 %v1329_v30  ;;  %v1324_v40 = vmul.f32 %v3170_v36, %v3170_v36  ;;  %v2075_v42 = vpop.f32.mrb[61].mxu0  ;;  %vm1340_vm7 = vcmp.eq.f32.partialorder %v1329_v30, inf  ;;  %v1343_v41 = vand.u32 2147483648, %v1329_v30 }
 0x64e   : > { %v1310_v43 = vpop.f32.mrb[62].mxu0  ;;  %vm1342_vm9 = vcmp.eq.f32.partialorder %v1329_v30, 0.0  ;;  %v1436_v23 = vpack.c.bf16 %v3170_v36, %v3170_v36 }
 0x64f   : > { %v1327_v44 = vadd.f32 %v1324_v40, %v1321_v35  ;;  %v2076_v45 = vpop.f32.mrb[63].mxu0  ;;  %v1214_v35 = vmax.f32 %v1039_v25, 0.0 }
 0x651   : > { %v1330_v49 = vmax.f32 %v1327_v44, 1e-08 }
 0x653   : > { %2292 = vrsqrt.f32 %v1330_v49  ;;  %vm1347_vm10 = vcmp.eq.f32.partialorder %v1330_v49, inf  ;;  %v1350_v48 = vand.u32 2147483648, %v1330_v49  ;;  %vm1349_vm14 = vcmp.eq.f32.partialorder %v1330_v49, 0.0 }
 0x655   : > { %v2289_v55 = vpop.eup %2288 }
 0x656   : > { %v1332_v56 = vmul.f32 %v2289_v55, %v1328_v11 }
 0x657   : > { %v2291_v59 = vpop.eup %2290 }
 0x658   : > { %v1334_v60 = vsel %vm1333_vm6, %v1328_v11, %v1332_v56  ;;  %v1339_v46 = vmul.f32 %v2291_v59, %v1329_v30 }
 0x659   : > { %v1337_v52 = vsel %vm1335_vm8, %v1336_v27, %v1334_v60 }
 0x65a   : > { %v1341_v62 = vsel %vm1340_vm7, %v1329_v30, %v1339_v46 }
 0x65b   : > { %v1344_v33 = vsel %vm1342_vm9, %v1343_v41, %v1341_v62 }
 0x65c   : > { %v2233_v39 = vpack.i.bf16 %v1344_v33, %v1337_v52  ;;  %v444_v52 = vld [vmem:[%s2866_s28 + $0xb0] sm:$0xff] }
 0x65d   : > { %v2293_v47 = vpop.eup %2292 }
 0x65e   : > { %2234 = vrot.lane.b32.xlu0 %v2233_v39, %s2544_s9  ;;  %v1346_v54 = vmul.f32 %v2293_v47, %v1330_v49  ;;  %v1374_v39 = vrot.slane %v444_v52, %v3031_v14 }
 0x660   : > { %v1348_v3 = vsel %vm1347_vm10, %v1330_v49, %v1346_v54 }
 0x661   : > { %v1351_v5 = vsel %vm1349_vm14, %v1350_v48, %v1348_v3 }
 0x662   : > { %1359 = vrot.lane.b32.xlu1 %v1351_v5, %s2544_s9  ;;  %1579 = vperm.xlu0 %2238, %v1528_v15  }
 0x666   : > { %1584 = vperm.xlu1 %2239, %v1529_v10  }
 0x66a   : > { %1589 = vperm.xlu1 %2239, %v1530_v20  }
 0x6d0   : > { %v2235_v34 = vpop.permute.xlu0 %2234 }
 0x6d1   : > { %v2237_v2 = vunpack.i.h.bf16 %v2235_v34  ;;  %v2236_v57 = vunpack.i.l.bf16 %v2235_v34 }
 0x6d3   : > { %v1364_v11 = vsel %vm982_vm11, %v1214_v35, %v2236_v57  ;;  %v1365_v19 = vsel %vm982_vm11, %v1215_v61, %v2237_v2  ;;  %v1886_v35 = vld [vmem:[%s347_s10] ss:$0 sm:$0xff] }
 0x6d4   : > { %v1367_v30 = vpack.c.bf16 %v1365_v19, %v1364_v11  ;;  %v1360_v40 = vpop.permute.xlu1 %1359  ;;  %vm1605_vm12 = vcmp.eq.s32.totalorder %v3028_v12, %v1886_v35 }
 0x6d5   : > { %v1366_v16 = vsel %vm982_vm11, %v1216_v9, %v1360_v40 }
 0x6d6   : > { %v1368_v42 = vpack.c.bf16 %v1366_v16, %v1366_v16  ;;  %2081 = vmatprep.mubr.msk.bf16.mxu1 %vm994_vm13, %v1367_v30  ;;  %v1607_v30 = vsel %vm1605_vm12, 1.0, %v2541_v0 }
 0x6d8   : > { %2082 = vmatmul.mubr.msk.bf16.vlgmr.msra.gmra.mrb[44].mxu1 %vm994_vm13, %v1368_v42 }
 0x6d9   : > { %2086 = vmatpush3.bf16.msra.mxu1 %v1454_v13  ;;  %2087 = vmatprep.mubr.msk.bf16.mxu1 %vm2542_vm0, %v2541_v0 }
 0x6e0   : > { %2088 = vmatmul.mubr.msk.bf16.vlgmr.msra.gmra.mrb[48].mxu1 %vm839_vm4, %v1432_v1 }
 0x6e1   : > { %2091 = vmatprep.mubr.msk.bf16.mxu1 %vm2542_vm0, %v2541_v0  ;;  %v1580_v46 = vpop.permute.xlu0 %1579 }
 0x6e5   : > { %v1585_v27 = vpop.permute.xlu1 %1584 }
 0x6e8   : > { %2092 = vmatmul.mubr.msk.bf16.gmra.mrb[52].mxu1 %vm839_vm4, %v1433_v17 }
 0x6e9   : > { %2095 = vmatprep.mubr.msk.bf16.mxu1 %vm2542_vm0, %v2541_v0  ;;  %v1590_v62 = vpop.permute.xlu1 %1589 }
 0x6f0   : > { %2096 = vmatmul.mubr.msk.bf16.gmra.mrb[56].mxu1 %vm839_vm4, %v1434_v32 }
 0x6f1   : > { %2099 = vmatprep.mubr.msk.bf16.mxu1 %vm2542_vm0, %v2541_v0 }
 0x6f8   : > { %2100 = vmatmul.mubr.msk.bf16.gmra.mrb[60].mxu1 %vm839_vm4, %v1435_v8 }
 0x6f9   : > { %2103 = vmatprep.mubr.msk.bf16.mxu1 %vm2542_vm0, %v2541_v0  ;;  %vm1573_vm0 = vcmask 195584  }
 0x700   : > { %2104 = vmatmul.mubr.msk.bf16.gmra.mrb[64].mxu1 %vm839_vm4, %v1436_v23  ;;  %vm1606_vm4 = vcmp.eq.s32.totalorder %v1600_v28, %v1886_v35 }
 0x701   : > { %v1608_v40 = vsel %vm1606_vm4, 1.0, %v2541_v0 }
 0x702   : > { %v1609_v13 = vpack.c.bf16 %v1608_v40, %v1607_v30 }
 0x7ab   : > { %v2083_v63 = vpop.f32.mrb[44].mxu1 }
 0x7ac   : > { %v1418_v50 = vpop.f32.mrb[45].mxu1  ;;  %v1427_v29 = vadd.f32 %v2083_v63, %v1374_v39 }
 0x7ad   : > { %v2084_v1 = vpop.f32.mrb[46].mxu1  ;;  %v1419_v48 = vadd.f32 %v1418_v50, %v1374_v39 }
 0x7ae   : > { %v1421_v4 = vpop.f32.mrb[47].mxu1  ;;  %v2548_v1 = vmov (%p1658_p7), 0.0  }
 0x7af   : > { %v1422_v5 = vadd.f32 %v1421_v4, %v1374_v39 }
 0x7b3   : > { %v1490_v7 = vpop.f32.mrb[48].mxu1 }
 0x7b4   : > { %1534 = vrot.lane.b32.xlu0 %v1490_v7, %s2544_s9  ;;  %v2089_v17 = vpop.f32.mrb[49].mxu1 }
 0x7b5   : > { %v1493_v21 = vpop.f32.mrb[50].mxu1 }
 0x7b6   : > { %1536 = vrot.lane.b32.xlu1 %v1493_v21, %s2544_s9  ;;  %v2090_v26 = vpop.f32.mrb[51].mxu1 }
 0x7bb   : > { %v1498_v32 = vpop.f32.mrb[52].mxu1 }
 0x7bc   : > { %1538 = vrot.lane.b32.xlu0 %v1498_v32, %s2544_s9  ;;  %v2093_v37 = vpop.f32.mrb[53].mxu1 }
 0x7bd   : > { %v1501_v38 = vpop.f32.mrb[54].mxu1 }
 0x7be   : > { %v2094_v8 = vpop.f32.mrb[55].mxu1 }
 0x7c0   : > { %1546 = vrot.lane.b32.xlu0 %v1501_v38, %s2546_s27 }
 0x7c3   : > { %v1506_v36 = vpop.f32.mrb[56].mxu1 }
 0x7c4   : > { %1548 = vrot.lane.b32.xlu1 %v1506_v36, %s2546_s27  ;;  %v2097_v43 = vpop.f32.mrb[57].mxu1 }
 0x7c5   : > { %v1509_v44 = vpop.f32.mrb[58].mxu1 }
 0x7c6   : > { %v2098_v45 = vpop.f32.mrb[59].mxu1 }
 0x7cb   : > { %v1514_v49 = vpop.f32.mrb[60].mxu1 }
 0x7cc   : > { %1558 = vrot.lane.b32.xlu0 %v1514_v49, %s2547_s29  ;;  %v2101_v51 = vpop.f32.mrb[61].mxu1 }
 0x7cd   : > { %v1517_v53 = vpop.f32.mrb[62].mxu1 }
 0x7ce   : > { %1560 = vrot.lane.b32.xlu1 %v1517_v53, %s2547_s29  ;;  %v2102_v55 = vpop.f32.mrb[63].mxu1 }
 0x7d2   : > { %1550 = vrot.lane.b32.xlu1 %v1509_v44, %s2546_s27 }
 0x7d3   : > { %v1522_v56 = vpop.f32.mrb[64].mxu1 }
 0x7d4   : > { %1562 = vrot.lane.b32.xlu0 %v1522_v56, %s2547_s29  ;;  %v2105_v58 = vpop.f32.mrb[65].mxu1 }
 0x7d5   : > { %v1525_v59 = vpop.f32.mrb[66].mxu1 }
 0x7d6   : > { %v2106_v60 = vpop.f32.mrb[67].mxu1 }
 0x826   : > { %v1535_v41 = vpop.permute.xlu0 %1534 }
 0x827   : > { %v1567_v10 = vsel %vm982_vm11, %v1419_v48, %v1535_v41 }
 0x828   : > { %v1537_v47 = vpop.permute.xlu1 %1536 }
 0x829   : > { %v1568_v20 = vsel %vm982_vm11, %v1422_v5, %v1537_v47 }
 0x82e   : > { %v1539_v33 = vpop.permute.xlu0 %1538 }
 0x82f   : > { %v1569_v61 = vsel %vm982_vm11, %v1427_v29, %v1539_v33  ;;  %vm1664_vm11 = vcmask (%p1658_p7), 228352  }
 0x830   : > { %1665 = vst.msk [vmem:[#allocation11] sm:$0xff] (%p1658_p7), %vm1664_vm11, %v2548_v1  ;;  %1666 = vst.msk [vmem:[#allocation11 + $0x8] sm:$0xff] (%p1658_p7), %vm1664_vm11, %v2548_v1 }
 0x832   : > { %v1547_v54 = vpop.permute.xlu0 %1546 }
 0x833   : > { %v1570_v15 = vsel %vm994_vm13, %v1567_v10, %v1547_v54 }
 0x836   : > { %v1549_v3 = vpop.permute.xlu1 %1548 }
 0x837   : > { %v1571_v24 = vsel %vm994_vm13, %v1568_v20, %v1549_v3 }
 0x83e   : > { %v1559_v18 = vpop.permute.xlu0 %1558 }
 0x83f   : > { %v1574_v22 = vsel %vm1573_vm0, %v1570_v15, %v1559_v18 }
 0x840   : > { %v1561_v25 = vpop.permute.xlu1 %1560  ;;  %v1592_v31 = vmul.f32 %v1580_v46, %v1574_v22 }
 0x841   : > { %v1575_v14 = vsel %vm1573_vm0, %v1571_v24, %v1561_v25 }
 0x842   : > { %v1593_v34 = vmul.f32 %v1585_v27, %v1575_v14 }
 0x844   : > { %v1595_v2 = vpack.c.bf16 %v1593_v34, %v1592_v31  ;;  %v1551_v57 = vpop.permute.xlu1 %1550 }
 0x845   : > { %v1572_v6 = vsel %vm994_vm13, %v1569_v61, %v1551_v57 }
 0x846   : > { %v1563_v9 = vpop.permute.xlu0 %1562  ;;  %2108 = vmatpush3.bf16.msra.mxu0 %v1595_v2 }
 0x847   : > { %v1576_v11 = vsel %vm1573_vm0, %v1572_v6, %v1563_v9  ;;  %2109 = vmatprep.subr.bf16.mxu0 %v2541_v0 }
 0x848   : > { %v1594_v19 = vmul.f32 %v1590_v62, %v1576_v11 }
 0x84a   : > { %v1596_v16 = vpack.c.bf16 %v1594_v19, %v1594_v19 }
 0x84c   : > { %v1615_v42 = vsel %vm1613_vm15, %v1596_v16, 0 }
 0x84d   : > { %2110 = vmatpush3.bf16.msra.mxu0 %v1615_v42 }
 0x850   : > { %2112 = vmatmul.mubr.msk.bf16.vlgmr.msra.gmra.mrb[64].mxu0 %vm1573_vm0, %v1609_v13 }
 0x920   : > { %1663 = sbr.rel (!%p1658_p7) target bundleno = 2343 (0x927), region = 64 }
 0x923   : > { %v1651_v12 = vpop.f32.mrb[64].mxu0 }
 0x924   : > { %v2113_v23 = vpop.f32.mrb[65].mxu0 }
 0x925   : > { %v1654_v63 = vpop.f32.mrb[66].mxu0 }
 0x926   : > { %v2114_v50 = vpop.f32.mrb[67].mxu0 }
 0x927 PF: > { %v1667_v4 = vld [vmem:[#allocation11] sm:$0xff]  ;;  %vm1671_vm13 = vcmask 228352   ;;  %v1668_v0 = vld [vmem:[#allocation11 + $0x8] sm:$0xff]  ;;  %p2160_p2 = scmp.eq.s32.totalorder %s2611_s24, 1  ;;  %s2549_s12 = smov [#allocation11]  }
 0x928   : > { %v1669_v7 = vadd.f32 %v1667_v4, %v1651_v12  ;;  %v1670_v17 = vadd.f32 %v1668_v0, %v1654_v63  ;;  %s1680_s21 = sshll.u32 %s2549_s12, 4  ;;  %s1681_s21 = int_to_ptr.vmem [resolvable:$true] %s1680_s21 }
 0x929   : > { %s2444_s13 = scalar_lea.vmem %s1681_s21, 256  ;;  %p2451_p10 = scmp.lt.s32.totalorder %s1681_s21, %s1681_s21 }
 0x92a   : > { %1672 = vst.msk [vmem:[#allocation11] sm:$0xff] %vm1671_vm13, %v1669_v7  ;;  %1673 = vst.msk [vmem:[#allocation11 + $0x8] sm:$0xff] %vm1671_vm13, %v1670_v17  ;;  %p2445_p8 = scmp.ne.s32.totalorder %s1681_s21, %s2444_s13  ;;  %p2452_p1 = scmp.lt.s32.totalorder %s2444_s13, %s2444_s13 }
 0x92c   : > { %p2446_p11 = pnand %p2445_p8, %p2160_p2  ;;  %p2453_p4 = por %p2452_p1, %p2451_p10 }
 0x92e   : > { %p2447_p13 = pneg %p2446_p11 }
 0x930   : > { %p2454_p9 = pnand %p2453_p4, %p2447_p13 }
 0x932   : > { %2457 = shalt.err (!%p2454_p9)
}
 0x933   : > { %s2458_s18 = scalar_lea.hbm %s3293_s5, 256 }
 0x934   : > { %p2459_p3 = scmp.ne.s32.totalorder %s3293_s5, %s2458_s18  ;;  %p2464_p0 = scmp.lt.u32.totalorder %s2458_s18, %s3293_s5 }
 0x936   : > { %p2460_p5 = pnand %p2459_p3, %p2160_p2 }
 0x938   : > { %p2461_p6 = pneg %p2460_p5 }
 0x93a   : > { %p2466_p12 = pnand %p2464_p0, %p2461_p6 }
 0x93c   : > { %2469 = shalt.err (!%p2466_p12)
}
 0x93d   : > { %s2550_s6 = smov 128   ;;  %s2551_s15 = smov 8  }
 0x93e   : > { %2140 = dma.vmem_to_hbm [thread:$0]  (%p2160_p2), %s1681_s21, 256, %s3293_s5, [#allocation4], %s2550_s6, %s2550_s6, %s2551_s15  }
 0x93f   : > { %2507 = dma.done.wait (%p2160_p2), [#allocation4], 256  }
 0x940   : > { %2509 = vsyncadd (%p2160_p2), [#allocation4], 4294967040 }
 0x941 PF: > { %s25_s23 = sadd.s32 1, %s2532_s23   ;;  %s3318_s1 = sld [smem:[#allocation17_spill]] }
 0x942   : > { %p22_p7 = scmp.ge.s32.totalorder %s25_s23, 4   ;;  %s3319_s17 = sld [smem:[#allocation16_spill]] }
 0x943   : > { %s3320_s18 = smov %s2516_s19  ;;  %s3321_s19 = smov %s2520_s20 }
 0x944   : > { %s3323_s21 = smov %s2528_s22  ;;  %24 = sbr.rel (!%p22_p7) target bundleno = 12 (0xc), region = 129 }
 0x947   : > { %s3322_s20 = smov %s3318_s1 }
 0x948   : > { %s3324_s22 = smov %s3319_s17 }
 0x94b   :  { %1696 = vsyncpa [#allocation3], 1 }
 0x94c   :  { %1698 = vsyncpa [#allocation3 + $0x1], 1 }
 0x94d   :  { %1699 = vsyncpa [#allocation6], 1 }
 0x94e   :  { %1701 = vsyncpa [#allocation6 + $0x1], 1 }
 0x94f   :  { %1702 = vsyncpa [#allocation9], 1 }
 0x950   :  { %1704 = vsyncpa [#allocation9 + $0x1], 1 }
 0x951   :  { %1705 = vsyncpa [#allocation4], 1 }
 0x952   :  { %1707 = vsyncpa [#allocation4 + $0x1], 1 }

// kernel: mr_gvp_conv_layer_forward.3
= control target key start
LH: loop header
LB: loop body
LE: loop exit
PB: predicated region body
PF: predicated region fallthrough
CT: control target
= control target key end

     0   :  { %s2453_s0 = inlined_call_operand.hbm [shape: f32[16,16], index: 0, kind: input, shape index: {}]   ;;  %s2454_s1 = inlined_call_operand.hbm [shape: f32[3,16,4], index: 1, kind: input, shape index: {}]   ;;  %s2455_s2 = inlined_call_operand.hbm [shape: f32[16,28], index: 2, kind: input, shape index: {}]   ;;  %s2456_s3 = inlined_call_operand.hbm [shape: f32[1,16], index: 3, kind: input, shape index: {}]   ;;  %s2457_s4 = inlined_call_operand.hbm [shape: f32[1,16], index: 4, kind: input, shape index: {}]   ;;  %s2458_s5 = inlined_call_operand.hbm [shape: f32[144,64], index: 5, kind: input, shape index: {}]   ;;  %s2459_s6 = inlined_call_operand.hbm [shape: f32[1,16], index: 6, kind: input, shape index: {}]   ;;  %s2460_s7 = inlined_call_operand.hbm [shape: f32[1,16], index: 7, kind: input, shape index: {}]   ;;  %s2461_s8 = inlined_call_operand.hbm [shape: f32[16,16], index: 8, kind: output, shape index: {0}]   ;;  %s2462_s9 = inlined_call_operand.hbm [shape: f32[3,16,4], index: 9, kind: output, shape index: {1}]  }
   0x1   :  { %2484 = sst [smem:[#allocation32_spill]] %s2454_s1 }
   0x2   :  { %2485 = sst [smem:[#allocation33_spill]] %s2456_s3 }
   0x3   :  { %2486 = sst [smem:[#allocation34_spill]] %s2458_s5 }
   0x4   :  { %2487 = sst [smem:[#allocation35_spill]] %s2461_s8 }
   0x5   :  { %15 = vsyncpa [#allocation3], 0 }
   0x6   :  { %17 = vsyncpa [#allocation3 + $0x1], 0 }
   0x7   :  { %18 = vsyncpa [#allocation6], 0 }
   0x8   :  { %20 = vsyncpa [#allocation6 + $0x1], 0 }
   0x9   :  { %21 = vsyncpa [#allocation9], 0 }
   0xa   :  { %22 = vsyncpa [#allocation12], 0 }
   0xb   :  { %23 = vsyncpa [#allocation15], 0 }
   0xc   :  { %24 = vsyncpa [#allocation4], 0 }
   0xd   :  { %26 = vsyncpa [#allocation4 + $0x1], 0 }
   0xe   :  { %27 = vsyncpa [#allocation18], 0 }
   0xf   :  { %29 = vsyncpa [#allocation18 + $0x1], 0  ;;  %s1972_s30 = smov 0   ;;  %s1974_s10 = smov 0  }
  0x10   :  { %s1976_s11 = smov 0   ;;  %s1978_s12 = smov 0  }
  0x11 LB: > { %2488 = sst [smem:[#allocation26_spill]] %s1884_s30  ;;  %s1993_s13 = sadd.s32 4294967295, %s1896_s12   ;;  %s1896_s12 = sphi %s1978_s12, %s2528_s12   ;;  %s1892_s11 = sphi %s1976_s11, %s2530_s11   ;;  %s1888_s10 = sphi %s1974_s10, %s2532_s10   ;;  %s1884_s30 = sphi %s1972_s30, %s2531_s30  }
  0x12   : > { %2489 = sst [smem:[#allocation27_spill]] %s1892_s11  ;;  %s1290_s14 = sadd.s32 4294967294, %s1896_s12  }
  0x13   : > { %2490 = sst [smem:[#allocation28_spill]] %s1896_s12  ;;  %p55_p0 = scmp.ne.s32.totalorder %s1888_s10, %s1884_s30 }
  0x14   : > { %p2463_p1 = scmp.eq.s32.totalorder %s1993_s13, 0  ;;  %p242_p3 = scmp.eq.s32.totalorder %s1290_s14, 1 }
  0x15   : > { %p1291_p5 = scmp.ge.s32.totalorder %s1896_s12, 1  ;;  %p275_p7 = scmp.lt.s32.totalorder %s1896_s12, 3 }
  0x16   : > { %p2002_p4 = por %p2463_p1, %p55_p0  ;;  %p2007_p6 = por %p242_p3, %p55_p0 }
  0x17   : > { %p2012_p8 = pnand %p1291_p5, %p275_p7  ;;  %s1898_s18 = smov [#allocation8]  }
  0x18   : > { %s2491_s15 = scalar_select %p2002_p4, 1, 0 }
  0x19   : > { %s2492_s16 = scalar_select %p2007_p6, 1, 0 }
  0x1a   : > { %s2494_s17 = scalar_select %p2012_p8, 1, 0 }
  0x1b   : > { %2493 = sst [smem:[#allocation29_spill]] %s2492_s16  ;;  %s288_s19 = sshll.u32 %s1898_s18, 4  ;;  %s289_s19 = int_to_ptr.vmem [resolvable:$true] %s288_s19 }
  0x1c   : > { %p1437_p10 = pneg %p2012_p8  ;;  %s1899_s20 = smov [#allocation11]  }
  0x1d   : > { %s309_s21 = sshll.u32 %s1899_s20, 4  ;;  %s2496_s3 = sld [smem:[#allocation33_spill]]  ;;  %s2025_s21 = int_to_ptr.vmem [resolvable:$true] %s309_s21 }
  0x1e   : > { %p2021_p11 = pnand %p1437_p10, %p2463_p1 }
  0x20   : > { %s2495_s22 = scalar_select %p2021_p11, 1, 0 }
  0x21   : > { %p2035_p13 = pneg %p2021_p11 }
  0x23   : > { %s1552_s25 = scalar_lea.hbm %s2496_s3, 16 }
  0x24   : > { %p1553_p12 = scmp.ne.s32.totalorder %s2496_s3, %s1552_s25  ;;  %p1559_p5 = scmp.lt.u32.totalorder %s1552_s25, %s2496_s3 }
  0x25   : > { %s2497_s28 = scalar_select %p2035_p13, 1, 0 }
  0x26   : > { %p1555_p0 = pnand %p2035_p13, %p1553_p12 }
  0x28   : > { %p1556_p3 = pneg %p1555_p0 }
  0x2a   : > { %p1561_p7 = pnand %p1559_p5, %p1556_p3 }
  0x2c   : > { %1564 = shalt.err (!%p1561_p7)
}
  0x2d   : > { %s1565_s18 = scalar_lea.vmem %s289_s19, 16  ;;  %s1572_s20 = scalar_lea.vmem %s289_s19, 32 }
  0x2e   : > { %p1566_p10 = scmp.ne.s32.totalorder %s289_s19, %s1565_s18  ;;  %p1573_p2 = scmp.lt.s32.totalorder %s289_s19, %s289_s19 }
  0x2f   : > { %p1574_p6 = scmp.lt.s32.totalorder %s1572_s20, %s1565_s18 }
  0x30   : > { %p1568_p9 = pnand %p1566_p10, %p2035_p13 }
  0x31   : > { %p1575_p4 = por %p1574_p6, %p1573_p2 }
  0x32   : > { %p1569_p1 = pneg %p1568_p9 }
  0x34   : > { %p1576_p8 = pnand %p1575_p4, %p1569_p1 }
  0x36   : > { %1579 = shalt.err (!%p1576_p8)
}
  0x37   : > { %1440 = dma.hbm_to_vmem [thread:$0]  (!%p2021_p11), %s2496_s3, 16, %s289_s19, [#allocation9]  }
  0x38   : > { %s2498_s5 = sld [smem:[#allocation34_spill]] }
  0x3e   : > { %s1580_s27 = scalar_lea.hbm %s2498_s5, 2304 }
  0x3f   : > { %p1581_p9 = scmp.ne.s32.totalorder %s2498_s5, %s1580_s27  ;;  %p1587_p1 = scmp.lt.u32.totalorder %s1580_s27, %s2498_s5 }
  0x41   : > { %p1583_p12 = pnand %p1581_p9, %p2035_p13 }
  0x43   : > { %p1584_p2 = pneg %p1583_p12 }
  0x45   : > { %p1589_p4 = pnand %p1587_p1, %p1584_p2 }
  0x47   : > { %1592 = shalt.err (!%p1589_p4)
}
  0x48   : > { %s1593_s19 = scalar_lea.vmem %s2025_s21, 2304  ;;  %p1601_p3 = scmp.lt.s32.totalorder %s2025_s21, %s2025_s21 }
  0x49   : > { %p1594_p6 = scmp.ne.s32.totalorder %s2025_s21, %s1593_s19  ;;  %p1602_p5 = scmp.lt.s32.totalorder %s1593_s19, %s1593_s19 }
  0x4b   : > { %p1596_p8 = pnand %p1594_p6, %p2035_p13  ;;  %p1603_p7 = por %p1602_p5, %p1601_p3 }
  0x4d   : > { %p1597_p0 = pneg %p1596_p8 }
  0x4f   : > { %p1604_p10 = pnand %p1603_p7, %p1597_p0 }
  0x51   : > { %1607 = shalt.err (!%p1604_p10)
}
  0x52   : > { %s2466_s23 = smov 128   ;;  %s2467_s24 = smov 8  }
  0x53   : > { %1446 = dma.hbm_to_vmem [thread:$0]  (!%p2021_p11), %s2498_s5, 2304, %s2025_s21, [#allocation12], %s2466_s23, %s2466_s23, %s2467_s24  }
  0x54   : > { %s2078_s27 = sadd.s32 1, %s1896_s12   ;;  %s42_s29 = sadd.s32 1, %s1892_s11 }
  0x55   : > { %2499 = sst [smem:[#allocation30_spill]] %s2078_s27  ;;  %s39_s14 = ssub.s32 %s1896_s12, %s2078_s27 }
  0x56   : > { %p49_p9 = scmp.ne.s32.totalorder %s1892_s11, %s1888_s10  ;;  %p40_p12 = scmp.eq.s32.totalorder %s39_s14, 0 }
  0x57   : > { %p50_p2 = scmp.eq.s32.totalorder %s1896_s12, 0  ;;  %p2500_p1 = scmp.eq.s32.totalorder %s1993_s13, 1 }
  0x58   : > { %p1475_p6 = scmp.lt.s32.totalorder %s1896_s12, 2  ;;  %s2097_s19 = sand.u32 1, %s1892_s11  }
  0x59   : > { %p2088_p4 = por %p2500_p1, %p49_p9  ;;  %p51_p8 = por %p50_p2, %p49_p9 }
  0x5a   : > { %s2094_s20 = scalar_select %p40_p12, %s1892_s11, %s42_s29  }
  0x5b   : > { %s2501_s18 = scalar_select %p2088_p4, 1, 0 }
  0x5c   : > { %2502 = sst [smem:[#allocation31_spill]] %s2094_s20  ;;  %s2100_s21 = sshll.u32 %s1896_s12, 7 }
  0x5d   : > { %s363_s25 = sand.u32 1, %s1896_s12   ;;  %p2103_p0 = pnand %p1475_p6, %p51_p8 }
  0x5e   : > { %s1405_s14 = smul.u32 24, %s2097_s19  ;;  %s2504_s1 = sld [smem:[#allocation32_spill]] }
  0x5f   : > { %s2503_s26 = scalar_select %p2103_p0, 1, 0 }
  0x60   : > { %s367_s29 = scalar_lea.vmem [#allocation5], %s1405_s14  ;;  %s1902_s20 = smov [#allocation10]  }
  0x61   : > { %s373_s5 = sshll.u32 %s367_s29, 4  ;;  %s299_s11 = sshll.u32 %s1902_s20, 4  ;;  %s2114_s5 = int_to_ptr.vmem [resolvable:$true] %s373_s5  ;;  %s2116_s11 = int_to_ptr.vmem [resolvable:$true] %s299_s11 }
  0x62   : > { %s2118_s27 = scalar_lea.sflag [#allocation6], %s363_s25  ;;  %p2124_p5 = pneg %p2103_p0 }
  0x64   : > { %s2112_s3 = scalar_lea.hbm %s2504_s1, %s2100_s21  ;;  %s1613_s20 = scalar_lea.hbm %s2504_s1, 768 }
  0x65   : > { %s1608_s12 = scalar_lea.hbm %s2112_s3, 384  ;;  %p1614_p9 = scmp.lt.u32.totalorder %s2112_s3, %s2504_s1 }
  0x66   : > { %p1609_p3 = scmp.ne.s32.totalorder %s2112_s3, %s1608_s12  ;;  %p1615_p12 = scmp.lt.u32.totalorder %s1613_s20, %s1608_s12 }
  0x67   : > { %s2505_s23 = scalar_select %p2124_p5, 1, 0 }
  0x68   : > { %p1611_p7 = pnand %p2124_p5, %p1609_p3  ;;  %p1616_p2 = por %p1615_p12, %p1614_p9 }
  0x69   : > { %p1617_p1 = scmp.lt.u32.totalorder %s1608_s12, %s2112_s3 }
  0x6a   : > { %p1612_p10 = pneg %p1611_p7 }
  0x6b   : > { %p1618_p6 = por %p1617_p1, %p1616_p2 }
  0x6d   : > { %p1619_p8 = pnand %p1618_p6, %p1612_p10 }
  0x6f   : > { %1622 = shalt.err (!%p1619_p8)
}
  0x70   : > { %s1623_s25 = scalar_lea.vmem %s2114_s5, 384  ;;  %s1903_s24 = smov [#allocation5]  }
  0x71   : > { %p1624_p3 = scmp.ne.s32.totalorder %s2114_s5, %s1623_s25  ;;  %s1628_s14 = sshll.u32 %s1903_s24, 4  ;;  %s1629_s14 = int_to_ptr.vmem [resolvable:$false] %s1628_s14 }
  0x72   : > { %s1630_s16 = scalar_lea.vmem %s1629_s14, 768  ;;  %p1631_p11 = scmp.lt.s32.totalorder %s2114_s5, %s1629_s14 }
  0x73   : > { %p1626_p7 = pnand %p1624_p3, %p2124_p5  ;;  %p1632_p13 = scmp.lt.s32.totalorder %s1630_s16, %s1623_s25 }
  0x75   : > { %p1627_p4 = pneg %p1626_p7  ;;  %p1633_p9 = por %p1632_p13, %p1631_p11 }
  0x77   : > { %p1634_p12 = pnand %p1633_p9, %p1627_p4 }
  0x79   : > { %1637 = shalt.err (!%p1634_p12)
}
  0x7a   : > { %s1904_s12 = smov 256   ;;  %s2506_s20 = smov 8  }
  0x7b   : > { %s2507_s29 = smov 128   ;;  %s1638_s24 = scalar_lea.hbm %s2457_s4, 16 }
  0x7c   : > { %1459 = dma.hbm_to_vmem [thread:$0]  (!%p2103_p0), %s2112_s3, 384, %s2114_s5, %s2118_s27, %s1904_s12, %s2507_s29, %s2506_s20  }
  0x7d   : > { %p1639_p11 = scmp.ne.s32.totalorder %s2457_s4, %s1638_s24  ;;  %p2508_p13 = scmp.ne.s32.totalorder %s2497_s28, 0 }
  0x7e   : > { %p1645_p2 = scmp.lt.u32.totalorder %s1638_s24, %s2457_s4 }
  0x7f   : > { %p1641_p4 = pnand %p1639_p11, %p2508_p13 }
  0x81   : > { %p1642_p10 = pneg %p1641_p4 }
  0x83   : > { %p1647_p1 = pnand %p1645_p2, %p1642_p10 }
  0x85   : > { %1650 = shalt.err (!%p1647_p1)
}
  0x86   : > { %s1651_s1 = scalar_lea.vmem %s2116_s11, 16  ;;  %s1658_s3 = scalar_lea.vmem %s2116_s11, 32 }
  0x87   : > { %p1652_p6 = scmp.ne.s32.totalorder %s2116_s11, %s1651_s1  ;;  %p1659_p7 = scmp.lt.s32.totalorder %s2116_s11, %s2116_s11 }
  0x88   : > { %p1660_p9 = scmp.lt.s32.totalorder %s1658_s3, %s1651_s1 }
  0x89   : > { %p1654_p8 = pnand %p1652_p6, %p2508_p13 }
  0x8a   : > { %p1661_p12 = por %p1660_p9, %p1659_p7 }
  0x8b   : > { %p1655_p3 = pneg %p1654_p8 }
  0x8d   : > { %p1662_p11 = pnand %p1661_p12, %p1655_p3 }
  0x8f   : > { %1665 = shalt.err (!%p1662_p11)
}
  0x90   : > { %p2509_p4 = scmp.ne.s32.totalorder %s2495_s22, 0  ;;  %s1905_s30 = smov [#allocation13]  }
  0x91   : > { %s323_s12 = sshll.u32 %s1905_s30, 4  ;;  %s1906_s20 = smov [#allocation14]   ;;  %s324_s12 = int_to_ptr.vmem [resolvable:$true] %s323_s12 }
  0x92   : > { %1443 = dma.hbm_to_vmem [thread:$0]  (!%p2509_p4), %s2457_s4, 16, %s2116_s11, [#allocation9]  }
  0x93   : > { %s334_s29 = sshll.u32 %s1906_s20, 4  ;;  %s1666_s25 = scalar_lea.hbm %s2459_s6, 16  ;;  %s2174_s29 = int_to_ptr.vmem [resolvable:$true] %s334_s29 }
  0x94   : > { %p1667_p10 = scmp.ne.s32.totalorder %s2459_s6, %s1666_s25  ;;  %p1673_p6 = scmp.lt.u32.totalorder %s1666_s25, %s2459_s6 }
  0x96   : > { %p1669_p2 = pnand %p1667_p10, %p2508_p13 }
  0x98   : > { %p1670_p1 = pneg %p1669_p2 }
  0x9a   : > { %p1675_p8 = pnand %p1673_p6, %p1670_p1 }
  0x9c   : > { %1678 = shalt.err (!%p1675_p8)
}
  0x9d   : > { %s1679_s5 = scalar_lea.vmem %s324_s12, 16  ;;  %s1686_s8 = scalar_lea.vmem %s324_s12, 32 }
  0x9e   : > { %p1680_p3 = scmp.ne.s32.totalorder %s324_s12, %s1679_s5  ;;  %p1687_p12 = scmp.lt.s32.totalorder %s324_s12, %s324_s12 }
  0x9f   : > { %p1688_p11 = scmp.lt.s32.totalorder %s1686_s8, %s1679_s5 }
  0xa0   : > { %p1682_p7 = pnand %p1680_p3, %p2508_p13 }
  0xa1   : > { %p1689_p0 = por %p1688_p11, %p1687_p12 }
  0xa2   : > { %p1683_p9 = pneg %p1682_p7 }
  0xa4   : > { %p1690_p5 = pnand %p1689_p0, %p1683_p9 }
  0xa6   : > { %1693 = shalt.err (!%p1690_p5)
}
  0xa7   : > { %1449 = dma.hbm_to_vmem [thread:$0]  (!%p2509_p4), %s2459_s6, 16, %s324_s12, [#allocation12]  }
  0xa8   : > { %s1694_s25 = scalar_lea.hbm %s2460_s7, 16 }
  0xa9   : > { %p1695_p10 = scmp.ne.s32.totalorder %s2460_s7, %s1694_s25  ;;  %p1701_p0 = scmp.lt.u32.totalorder %s1694_s25, %s2460_s7 }
  0xab   : > { %p1697_p2 = pnand %p1695_p10, %p2508_p13 }
  0xad   : > { %p1698_p1 = pneg %p1697_p2 }
  0xaf   : > { %p1703_p5 = pnand %p1701_p0, %p1698_p1 }
  0xb1   : > { %1706 = shalt.err (!%p1703_p5)
}
  0xb2   : > { %s1707_s12 = scalar_lea.vmem %s2174_s29, 16  ;;  %s1714_s5 = scalar_lea.vmem %s2174_s29, 32 }
  0xb3   : > { %p1708_p6 = scmp.ne.s32.totalorder %s2174_s29, %s1707_s12  ;;  %p1715_p7 = scmp.lt.s32.totalorder %s2174_s29, %s2174_s29 }
  0xb4   : > { %p1716_p9 = scmp.lt.s32.totalorder %s1714_s5, %s1707_s12 }
  0xb5   : > { %p1710_p8 = pnand %p1708_p6, %p2508_p13 }
  0xb6   : > { %p1717_p12 = por %p1716_p9, %p1715_p7 }
  0xb7   : > { %p1711_p3 = pneg %p1710_p8 }
  0xb9   : > { %p1718_p11 = pnand %p1717_p12, %p1711_p3 }
  0xbb   : > { %1721 = shalt.err (!%p1718_p11)
}
  0xbc   : > { %1452 = dma.hbm_to_vmem [thread:$0]  (!%p2509_p4), %s2460_s7, 16, %s2174_s29, [#allocation15]  }
  0xbd   : > { %s1298_s28 = sshll.u32 %s2097_s19, 3  ;;  %s2223_s14 = scalar_lea.hbm %s2453_s0, %s2100_s21 }
  0xbe   : > { %s349_s22 = scalar_lea.vmem [#allocation2], %s1298_s28  ;;  %s2233_s3 = scalar_lea.hbm %s2455_s2, %s2100_s21 }
  0xbf   : > { %s356_s25 = sshll.u32 %s349_s22, 4  ;;  %s346_s29 = scalar_lea.sflag [#allocation3], %s2097_s19  ;;  %s2227_s25 = int_to_ptr.vmem [resolvable:$true] %s356_s25 }
  0xc0   : > { %s1722_s11 = scalar_lea.hbm %s2223_s14, 128  ;;  %p2510_p4 = scmp.ne.s32.totalorder %s2505_s23, 0 }
  0xc1   : > { %p1723_p13 = scmp.ne.s32.totalorder %s2223_s14, %s1722_s11  ;;  %s1727_s8 = scalar_lea.hbm %s2453_s0, 256 }
  0xc2   : > { %p1728_p1 = scmp.lt.u32.totalorder %s2223_s14, %s2453_s0  ;;  %p1729_p0 = scmp.lt.u32.totalorder %s1727_s8, %s1722_s11 }
  0xc3   : > { %p1725_p10 = pnand %p1723_p13, %p2510_p4  ;;  %p1731_p6 = scmp.lt.u32.totalorder %s1722_s11, %s2223_s14 }
  0xc4   : > { %p1730_p5 = por %p1729_p0, %p1728_p1 }
  0xc5   : > { %p1726_p2 = pneg %p1725_p10 }
  0xc6   : > { %p1732_p8 = por %p1731_p6, %p1730_p5 }
  0xc8   : > { %p1733_p3 = pnand %p1732_p8, %p1726_p2 }
  0xca   : > { %1736 = shalt.err (!%p1733_p3)
}
  0xcb   : > { %s1737_s21 = scalar_lea.vmem %s2227_s25, 128  ;;  %s1907_s24 = smov [#allocation2]  }
  0xcc   : > { %p1738_p7 = scmp.ne.s32.totalorder %s2227_s25, %s1737_s21  ;;  %s1742_s22 = sshll.u32 %s1907_s24, 4  ;;  %s1743_s22 = int_to_ptr.vmem [resolvable:$false] %s1742_s22 }
  0xcd   : > { %s1744_s16 = scalar_lea.vmem %s1743_s22, 256  ;;  %p1745_p11 = scmp.lt.s32.totalorder %s2227_s25, %s1743_s22 }
  0xce   : > { %p1740_p9 = pnand %p1738_p7, %p2510_p4  ;;  %p1746_p13 = scmp.lt.s32.totalorder %s1744_s16, %s1737_s21 }
  0xd0   : > { %p1741_p12 = pneg %p1740_p9  ;;  %p1747_p10 = por %p1746_p13, %p1745_p11 }
  0xd2   : > { %p1748_p1 = pnand %p1747_p10, %p1741_p12 }
  0xd4   : > { %1751 = shalt.err (!%p1748_p1)
}
  0xd5   : > { %p2511_p2 = scmp.ne.s32.totalorder %s2503_s26, 0  ;;  %s387_s1 = scalar_lea.vmem [#allocation7], %s1298_s28 }
  0xd6   : > { %s394_s11 = sshll.u32 %s387_s1, 4  ;;  %s1752_s12 = scalar_lea.hbm %s2233_s3, 128  ;;  %s395_s11 = int_to_ptr.vmem [resolvable:$true] %s394_s11 }
  0xd7   : > { %1456 = dma.hbm_to_vmem [thread:$0]  (!%p2511_p2), %s2223_s14, 128, %s2227_s25, %s346_s29  }
  0xd8   : > { %p1753_p0 = scmp.ne.s32.totalorder %s2233_s3, %s1752_s12  ;;  %s1757_s30 = scalar_lea.hbm %s2455_s2, 256 }
  0xd9   : > { %p1758_p8 = scmp.lt.u32.totalorder %s2233_s3, %s2455_s2  ;;  %p1759_p3 = scmp.lt.u32.totalorder %s1757_s30, %s1752_s12 }
  0xda   : > { %p1755_p5 = pnand %p1753_p0, %p2510_p4  ;;  %p1761_p9 = scmp.lt.u32.totalorder %s1752_s12, %s2233_s3 }
  0xdb   : > { %p1760_p7 = por %p1759_p3, %p1758_p8 }
  0xdc   : > { %p1756_p6 = pneg %p1755_p5 }
  0xdd   : > { %p1762_p12 = por %p1761_p9, %p1760_p7 }
  0xdf   : > { %p1763_p11 = pnand %p1762_p12, %p1756_p6 }
  0xe1   : > { %1766 = shalt.err (!%p1763_p11)
}
  0xe2   : > { %s1767_s19 = scalar_lea.vmem %s395_s11, 128  ;;  %s1908_s28 = smov [#allocation7]  }
  0xe3   : > { %p1768_p13 = scmp.ne.s32.totalorder %s395_s11, %s1767_s19  ;;  %s1772_s14 = sshll.u32 %s1908_s28, 4  ;;  %s1773_s14 = int_to_ptr.vmem [resolvable:$false] %s1772_s14 }
  0xe4   : > { %s1774_s25 = scalar_lea.vmem %s1773_s14, 256  ;;  %p1775_p0 = scmp.lt.s32.totalorder %s395_s11, %s1773_s14 }
  0xe5   : > { %p1770_p10 = pnand %p1768_p13, %p2510_p4  ;;  %p1776_p5 = scmp.lt.s32.totalorder %s1774_s25, %s1767_s19 }
  0xe7   : > { %p1771_p1 = pneg %p1770_p10  ;;  %p1777_p2 = por %p1776_p5, %p1775_p0 }
  0xe9   : > { %p1778_p3 = pnand %p1777_p2, %p1771_p1 }
  0xeb   : > { %1781 = shalt.err (!%p1778_p3)
}
  0xec   : > { %p2512_p8 = scmp.ne.s32.totalorder %s2503_s26, 0  ;;  %p2513_p6 = scmp.ne.s32.totalorder %s2494_s17, 0 }
  0xed   : > { %s2280_s23 = sand.u32 (!%p2513_p6), 1, %s1888_s10   ;;  %p2514_p4 = scmp.ne.s32.totalorder (!%p2513_p6), %s2491_s15, 0 }
  0xee   : > { %1462 = dma.hbm_to_vmem [thread:$0]  (!%p2512_p8), %s2233_s3, 128, %s395_s11, %s2118_s27  }
  0xef   : > { %403 = sbr.rel (%p2513_p6) target bundleno = 2178 (0x882), region = 52  ;;  %s2283_s29 = sshll.u32 (!%p2513_p6), %s2280_s23, 3 }
  0xf0   : > { %s406_s24 = scalar_lea.sflag (!%p2513_p6), [#allocation3], %s2280_s23  ;;  %s409_s22 = scalar_lea.vmem (!%p2513_p6), [#allocation2], %s2283_s29 }
  0xf6   : > { %1855 = dma.done.wait (%p2514_p4), %s406_s24, 128  }
  0xf7   : > { %1857 = vsyncadd (%p2514_p4), %s406_s24, 4294967168  ;;  %s414_s17 = sand.u32 1, %s1993_s13   ;;  %s1406_s27 = smul.u32 24, %s2280_s23 }
  0xf8   : > { %s415_s26 = scalar_lea.sflag [#allocation6], %s414_s17 }
  0xf9   : > { %s418_s3 = scalar_lea.vmem [#allocation5], %s1406_s27 }
  0xfa   : > { %1859 = dma.done.wait (%p2514_p4), %s415_s26, 512  }
  0xfb   : > { %1861 = vsyncadd (%p2514_p4), %s415_s26, 4294966784  ;;  %s427_s16 = scalar_lea.vmem [#allocation7], %s2283_s29  ;;  %p2515_p2 = scmp.eq.s32.totalorder %s1993_s13, 0 }
  0xfd   : > { %1863 = dma.done.wait (%p2515_p2), [#allocation9], 32   ;;  %p2516_p7 = pmov %p2515_p2 }
  0xfe   : > { %p2517_p9 = pmov %p2515_p2 }
  0xff   : > { %1865 = vsyncadd (%p2516_p7), [#allocation9], 4294967264 }
 0x100   : > { %1867 = dma.done.wait (%p2517_p9), [#allocation12], 2320   ;;  %p2518_p12 = pmov %p2515_p2 }
 0x101   : > { %p2519_p11 = pmov %p2515_p2 }
 0x102   : > { %1869 = vsyncadd (%p2518_p12), [#allocation12], 4294964976 }
 0x103   : > { %1871 = dma.done.wait (%p2519_p11), [#allocation15], 16   ;;  %p2520_p13 = pmov %p2515_p2 }
 0x104   : > { %v501_v0 = vld [vmem:[%s427_s16] sm:$0xff]  ;;  %s1909_s15 = smov 124   ;;  %s1910_s1 = smov 112   ;;  %v499_v5 = vld [vmem:[%s418_s3 + $0x8] sm:$0xff]  ;;  %vm558_vm0 = vcmask 31744   ;;  %v1912_v19 = vmov 0  }
 0x105   : > { %1873 = vsyncadd (%p2520_p13), [#allocation15], 4294967280  ;;  %503 = vrot.lane.b32.xlu0 %v501_v0, %s1909_s15  ;;  %509 = vrot.lane.b32.xlu1 %v501_v0, %s1910_s1  ;;  %s1911_s11 = smov 120   ;;  %v498_v4 = vld [vmem:[%s418_s3] sm:$0xff]  ;;  %v500_v9 = vld [vmem:[%s418_s3 + $0x10] sm:$0xff]  ;;  %vm600_vm1 = vcmask 1041408  }
 0x106   : > { %1533 = vset.pattern.permute.xlu0 %v1912_v19  ;;  %v573_v22 = vld [vmem:[#allocation11] sm:$0xff]  ;;  %v507_v26 = vld [vmem:[%s409_s22] sm:$0xff]  ;;  %vm523_vm2 = vcmask 130048   ;;  %vm681_vm3 = vcmask 1043456   ;;  %v1913_v45 = vmov 0.0   ;;  %vm728_vm4 = vcmask 64512  }
 0x107   : > { %v593_v24 = vpack.c.bf16 %v573_v22, %v573_v22  ;;  %v508_v27 = vadd.f32 %v507_v26, %v501_v0  ;;  %v578_v40 = vld [vmem:[#allocation11 + $0x28] sm:$0xff]  ;;  %v575_v44 = vld [vmem:[#allocation11 + $0x10] sm:$0xff]  ;;  %v576_v59 = vld [vmem:[#allocation11 + $0x18] sm:$0xff]  ;;  %vm1914_vm5 = vmmov 0   ;;  %s1915_s12 = smov 16   ;;  %vm677_vm8 = vcmask 195584  }
 0x108   : > { %v727_v41 = vpack.c.bf16 %v578_v40, %v578_v40  ;;  %v574_v43 = vld [vmem:[#allocation11 + $0x8] sm:$0xff]  ;;  %v672_v60 = vpack.c.bf16 %v576_v59, %v576_v59  ;;  %v584_v59 = vld [vmem:[#allocation11 + $0x58] sm:$0xff]  ;;  %s1916_s5 = smov 64   ;;  %vm886_vm13 = vcmask 523264   ;;  %vm898_vm14 = vcmask 588800   ;;  %s496_s8 = scalar_lea.vmem [#allocation17], %s1406_s27 }
 0x109   : > { %505 = vrot.lane.b32.xlu0 %v501_v0, %s1911_s11  ;;  %1401 = vmatprep.subr.msk.bf16.mxu1 %vm600_vm1, %v593_v24  ;;  %v602_v25 = vsel %vm600_vm1, %v593_v24, 0  ;;  %v524_v28 = vsel %vm523_vm2, %v508_v27, 0.0  ;;  %v671_v46 = vpack.c.bf16 %v575_v44, %v574_v43  ;;  %s1094_s30 = sshll.u32 %s496_s8, 4  ;;  %s1330_s20 = sshll.u32 %s1993_s13, 7  ;;  %s2369_s30 = int_to_ptr.vmem [resolvable:$true] %s1094_s30 }
 0x10a   : > { %1356 = vmatpush3.bf16.msra.mxu1 %v602_v25  ;;  %1402 = vmatprep.subr.msk.bf16.mxu0 %vm681_vm3, %v727_v41  ;;  %v736_v42 = vsel %vm681_vm3, %v727_v41, 0  ;;  %v683_v61 = vsel %vm681_vm3, %v672_v60, 0  ;;  %v585_v60 = vld [vmem:[#allocation11 + $0x60] sm:$0xff]  ;;  %s2376_s28 = scalar_lea.hbm %s2462_s9, %s1330_s20  ;;  %s1069_s14 = scalar_lea.sflag [#allocation18], %s2280_s23 }
 0x10b   : > { %1370 = vmatpush3.bf16.msra.mxu0 %v736_v42  ;;  %1361 = vmatprep.subr.bf16.mxu1 %v1913_v45  ;;  %s1782_s25 = scalar_lea.vmem %s2369_s30, 384  ;;  %p2521_p1 = scmp.ne.s32.totalorder %s2501_s18, 0 }
 0x10c   : > { %1381 = vmatprep.subr.bf16.mxu0 %v1913_v45  ;;  %p1783_p10 = scmp.ne.s32.totalorder %s2369_s30, %s1782_s25  ;;  %s1917_s24 = smov [#allocation17]  }
 0x10d   : > { %s1786_s22 = sshll.u32 %s1917_s24, 4  ;;  %s1787_s22 = int_to_ptr.vmem [resolvable:$false] %s1786_s22 }
 0x10e   : > { %p1784_p0 = pnand %p1783_p10, %p2521_p1  ;;  %s1788_s17 = scalar_lea.vmem %s1787_s22, 768 }
 0x10f   : > { %p1789_p3 = scmp.lt.s32.totalorder %s2369_s30, %s1787_s22  ;;  %p1790_p8 = scmp.lt.s32.totalorder %s1788_s17, %s1782_s25 }
 0x110   : > { %p1785_p5 = pneg %p1784_p0 }
 0x111   : > { %p1791_p6 = por %p1790_p8, %p1789_p3 }
 0x113   : > { %p1792_p4 = pnand %p1791_p6, %p1785_p5 }
 0x177   : > { %v504_v1 = vpop.permute.xlu0 %503  ;;  %v510_v3 = vpop.permute.xlu1 %509 }
 0x178   : > { %511 = vrot.lane.b32.xlu1 %v504_v1, %s1910_s1  ;;  %v518_v7 = vadd.f32 %v510_v3, %v498_v4 }
 0x17a   : > { %v552_v12 = vmul.f32 %v518_v7, %v518_v7 }
 0x17b   : > { %v506_v2 = vpop.permute.xlu0 %505 }
 0x17c   : > { %513 = vrot.lane.b32.xlu0 %v506_v2, %s1910_s1 }
 0x1ea   : > { %v512_v6 = vpop.permute.xlu1 %511 }
 0x1eb   : > { %v519_v8 = vadd.f32 %v512_v6, %v499_v5 }
 0x1ed   : > { %v553_v10 = vmul.f32 %v519_v8, %v519_v8 }
 0x1ee   : > { %v514_v11 = vpop.permute.xlu0 %513 }
 0x1ef   : > { %v520_v13 = vadd.f32 %v514_v11, %v500_v9  ;;  %v554_v14 = vadd.f32 %v553_v10, %v552_v12  ;;  %v1313_v10 = vld [vmem:[#allocation10] ss:$0 sm:$0xff] }
 0x1f1   : > { %v555_v15 = vmul.f32 %v520_v13, %v520_v13 }
 0x1f3   : > { %v556_v16 = vadd.f32 %v555_v15, %v554_v14 }
 0x1f5   : > { %v557_v17 = vmax.f32 %v556_v16, 1e-08 }
 0x1f7   : > { %v559_v18 = vsel %vm558_vm0, %v557_v17, 0.0 }
 0x1f8   : > { %560 = vadd.xlane.f32.xlu1 %v559_v18 }
 0x285   : > { %v561_v20 = vpop.xlane.xlu1 %560 }
 0x286   : > { %v563_v21 = vmul.f32 0.25, %v561_v20 }
 0x288   : > { %1534 = vrsqrt.f32 %v563_v21 }
 0x292   : > { %v1535_v23 = vpop.eup %1534 }
 0x293   : > { %567 = vperm.xlu0 %1533, %v1535_v23  }
 0x2b2   : > { %525 = vadd.xlane.f32.xlu0 %v524_v28 }
 0x312   : > { %v568_v29 = vpop.permute.xlu0 %567 }
 0x313   : > { %v2316_v30 = vmul.f32 %v568_v29, %v520_v13  ;;  %v2318_v31 = vmul.f32 %v568_v29, %v518_v7  ;;  %v2320_v32 = vmul.f32 %v568_v29, %v519_v8  ;;  %v1312_v8 = vld [vmem:[#allocation8] ss:$0 sm:$0xff]  ;;  %v579_v13 = vld [vmem:[#allocation11 + $0x30] sm:$0xff] }
 0x314   : > { %v811_v15 = vpack.c.bf16 %v579_v13, %v579_v13 }
 0x315   : > { %v592_v33 = vpack.c.bf16 %v2316_v30, %v2316_v30  ;;  %v591_v34 = vpack.c.bf16 %v2320_v32, %v2318_v31 }
 0x316   : > { %v819_v17 = vsel %vm681_vm3, %v811_v15, 0 }
 0x317   : > { %1357 = vmatprep.mubr.msk.bf16.mxu1 %vm558_vm0, %v591_v34 }
 0x318   : > { %1358 = vmatmul.mubr.msk.bf16.vlgmr.msra.gmra.mrb[0].mxu1 %vm558_vm0, %v592_v33 }
 0x319   : > { %1362 = vmatpush3.bf16.msra.mxu1 %v671_v46  ;;  %1365 = vmatprep.mubr.msk.bf16.mxu1 %vm1914_vm5, %v1913_v45 }
 0x31a   : > { %1363 = vmatprep.subr.bf16.mxu1 %v1913_v45 }
 0x31d   : > { %1364 = vmatpush3.bf16.msra.mxu1 %v683_v61  ;;  %v891_v61 = vpack.c.bf16 %v585_v60, %v584_v59 }
 0x31e   : > { %1403 = vmatprep.subr.msk.bf16.mxu1 %vm681_vm3, %v811_v15 }
 0x33f   : > { %v526_v35 = vpop.xlane.xlu0 %525 }
 0x340   : > { %v528_v36 = vmul.f32 0.0625, %v526_v35 }
 0x342   : > { %v529_v37 = vsub.f32 %v508_v27, %v528_v36 }
 0x344   : > { %v530_v38 = vmul.f32 %v529_v37, %v529_v37 }
 0x346   : > { %v531_v39 = vsel %vm523_vm2, %v530_v38, 0.0 }
 0x347   : > { %532 = vadd.xlane.f32.xlu1 %v531_v39 }
 0x3d4   : > { %v533_v3 = vpop.xlane.xlu1 %532 }
 0x3d5   : > { %v534_v4 = vmul.f32 0.0625, %v533_v3 }
 0x3d7   : > { %v535_v5 = vadd.f32 1e-05, %v534_v4 }
 0x3eb   : > { %v1359_v47 = vpop.f32.mrb[0].mxu1 }
 0x3ec   : > { %v638_v48 = vpop.f32.mrb[1].mxu1  ;;  %v726_v54 = vpack.c.bf16 %v1359_v47, %v1359_v47  ;;  %v655_v55 = vmul.f32 %v1359_v47, %v1359_v47 }
 0x3ed   : > { %v1360_v49 = vpop.f32.mrb[2].mxu1  ;;  %v652_v51 = vmul.f32 %v638_v48, %v638_v48 }
 0x3ee   : > { %v641_v50 = vpop.f32.mrb[3].mxu1 }
 0x3ef   : > { %v653_v52 = vmul.f32 %v641_v50, %v641_v50  ;;  %v725_v53 = vpack.c.bf16 %v641_v50, %v638_v48  ;;  %v590_v50 = vld [vmem:[#allocation11 + $0x88] sm:$0xff] }
 0x3f1   : > { %v654_v56 = vadd.f32 %v653_v52, %v652_v51  ;;  %1371 = vmatprep.mubr.msk.bf16.mxu0 %vm728_vm4, %v725_v53  ;;  %v947_v51 = vpack.c.bf16 %v590_v50, %v590_v50  ;;  %v580_v53 = vld [vmem:[#allocation11 + $0x38] sm:$0xff] }
 0x3f2   : > { %1372 = vmatmul.mubr.msk.bf16.vlgmr.msra.gmra.mrb[0].mxu0 %vm728_vm4, %v726_v54  ;;  %v581_v54 = vld [vmem:[#allocation11 + $0x40] sm:$0xff] }
 0x3f3   : > { %v656_v57 = vadd.f32 %v655_v55, %v654_v56  ;;  %1391 = vmatprep.mubr.msk.bf16.mxu0 %vm1914_vm5, %v1913_v45  ;;  %v955_v52 = vsel %vm681_vm3, %v947_v51, 0  ;;  %v582_v55 = vld [vmem:[#allocation11 + $0x48] sm:$0xff]  ;;  %v889_v56 = vpack.c.bf16 %v581_v54, %v580_v53 }
 0x3f5   : > { %v657_v58 = vmax.f32 %v656_v57, 1e-08  ;;  %v583_v57 = vld [vmem:[#allocation11 + $0x50] sm:$0xff]  ;;  %1382 = vmatpush3.bf16.msra.mxu0 %v889_v56 }
 0x3f6   : > { %1383 = vmatprep.subr.bf16.mxu0 %v1913_v45 }
 0x3f7   : > { %1536 = vrsqrt.f32 %v657_v58  ;;  %vm660_vm6 = vcmp.eq.f32.partialorder %v657_v58, inf  ;;  %v663_v0 = vand.u32 2147483648, %v657_v58  ;;  %vm662_vm7 = vcmp.eq.f32.partialorder %v657_v58, 0.0 }
 0x3f8   : > { %1538 = vrsqrt.f32 %v535_v5 }
 0x401   : > { %v1537_v62 = vpop.eup %1536 }
 0x402   : > { %v659_v63 = vmul.f32 %v1537_v62, %v657_v58  ;;  %v1539_v6 = vpop.eup %1538  ;;  %v586_v62 = vld [vmem:[#allocation11 + $0x68] sm:$0xff] }
 0x403   : > { %v537_v7 = vmul.f32 %v1539_v6, %v529_v37 }
 0x404   : > { %v661_v1 = vsel %vm660_vm6, %v657_v58, %v659_v63  ;;  %v890_v58 = vpack.c.bf16 %v583_v57, %v582_v55  ;;  %v587_v63 = vld [vmem:[#allocation11 + $0x70] sm:$0xff] }
 0x405   : > { %v664_v2 = vsel %vm662_vm7, %v663_v0, %v661_v1  ;;  %v544_v9 = vmul.f32 %v1312_v8, %v537_v7  ;;  %v892_v0 = vpack.c.bf16 %v587_v63, %v586_v62 }
 0x406   : > { %666 = vrot.lane.b32.xlu1 %v664_v2, %s1915_s12  ;;  %1384 = vmatpush3.bf16.msra.mxu0 %v890_v58 }
 0x407   : > { %v2339_v11 = vadd.f32 %v1313_v10, %v544_v9  ;;  %1385 = vmatprep.subr.bf16.mxu0 %v1913_v45 }
 0x40a   : > { %1386 = vmatpush3.bf16.msra.mxu0 %v891_v61 }
 0x40b   : > { %1387 = vmatprep.subr.bf16.mxu0 %v1913_v45 }
 0x40e   : > { %1388 = vmatpush3.bf16.msra.mxu0 %v892_v0 }
 0x40f   : > { %1389 = vmatprep.subr.bf16.mxu0 %v1913_v45 }
 0x478   : > { %v667_v12 = vpop.permute.xlu1 %666 }
 0x479   : > { %v669_v14 = vsel %vm523_vm2, %v2339_v11, %v667_v12 }
 0x47a   : > { %v670_v16 = vpack.c.bf16 %v669_v14, %v669_v14  ;;  %v588_v14 = vld [vmem:[#allocation11 + $0x78] sm:$0xff] }
 0x47b   : > { %v893_v15 = vpack.c.bf16 %v588_v14, %v588_v14 }
 0x47c   : > { %1366 = vmatmul.mubr.msk.bf16.vlgmr.msra.gmra.mrb[4].mxu1 %vm677_vm8, %v670_v16 }
 0x47d   : > { %1376 = vmatpush3.bf16.msra.mxu1 %v819_v17  ;;  %v903_v45 = vsel %vm681_vm3, %v893_v15, 0 }
 0x47e   : > { %1404 = vmatprep.subr.msk.bf16.mxu1 %vm681_vm3, %v947_v51  ;;  %1390 = vmatpush3.bf16.msra.mxu0 %v903_v45 }
 0x4c5   : > { %v1373_v18 = vpop.f32.mrb[0].mxu0 }
 0x4c6   : > { %v772_v19 = vpop.f32.mrb[1].mxu0  ;;  %v789_v24 = vmul.f32 %v1373_v18, %v1373_v18 }
 0x4c7   : > { %v1374_v20 = vpop.f32.mrb[2].mxu0  ;;  %v786_v22 = vmul.f32 %v772_v19, %v772_v19 }
 0x4c8   : > { %v775_v21 = vpop.f32.mrb[3].mxu0 }
 0x4c9   : > { %v787_v23 = vmul.f32 %v775_v21, %v775_v21 }
 0x4cb   : > { %v788_v25 = vadd.f32 %v787_v23, %v786_v22 }
 0x4cd   : > { %v790_v26 = vadd.f32 %v789_v24, %v788_v25  ;;  %v577_v24 = vld [vmem:[#allocation11 + $0x20] sm:$0xff] }
 0x4cf   : > { %v791_v27 = vmax.f32 %v790_v26, 1e-08 }
 0x4d1   : > { %1540 = vrsqrt.f32 %v791_v27  ;;  %vm794_vm9 = vcmp.eq.f32.partialorder %v791_v27, inf  ;;  %v797_v33 = vand.u32 2147483648, %v791_v27  ;;  %vm796_vm10 = vcmp.eq.f32.partialorder %v791_v27, 0.0 }
 0x4db   : > { %v1541_v28 = vpop.eup %1540 }
 0x4dc   : > { %v793_v29 = vmul.f32 %v1541_v28, %v791_v27 }
 0x4de   : > { %v795_v34 = vsel %vm794_vm9, %v791_v27, %v793_v29 }
 0x4df   : > { %v798_v35 = vsel %vm796_vm10, %v797_v33, %v795_v34 }
 0x4e0   : > { %v1319_v36 = vmul.f32 -1.442695, %v798_v35 }
 0x4e2   : > { %1542 = vpow2.f32 %v1319_v36 }
 0x4ec   : > { %v1543_v37 = vpop.eup %1542 }
 0x4ed   : > { %v802_v38 = vadd.f32 1.0, %v1543_v37 }
 0x4ef   : > { %1544 = vrcp.f32 %v802_v38 }
 0x4f9   : > { %v1545_v39 = vpop.eup %1544 }
 0x4fa   : > { %v805_v40 = vmul.f32 %v1545_v39, %v772_v19  ;;  %v806_v41 = vmul.f32 %v1545_v39, %v775_v21  ;;  %v807_v42 = vmul.f32 %v1545_v39, %v1373_v18  ;;  %v673_v21 = vlaneseq }
 0x4fc   : > { %v809_v43 = vpack.c.bf16 %v806_v41, %v805_v40  ;;  %v810_v44 = vpack.c.bf16 %v807_v42, %v807_v42  ;;  %v674_v22 = vshrl.u32 %v673_v21, 7 }
 0x4fe   : > { %1377 = vmatprep.mubr.msk.bf16.mxu1 %vm728_vm4, %v809_v43  ;;  %v675_v23 = vsub.s32 0, %v674_v22 }
 0x4ff   : > { %1378 = vmatmul.mubr.msk.bf16.vlgmr.msra.gmra.mrb[8].mxu1 %vm728_vm4, %v810_v44 }
 0x500   : > { %1396 = vmatpush3.bf16.msra.mxu1 %v955_v52  ;;  %v676_v25 = vrot.slane %v577_v24, %v675_v23 }
 0x54f   : > { %v719_v46 = vpop.f32.mrb[4].mxu1 }
 0x550   : > { %v1367_v47 = vpop.f32.mrb[5].mxu1  ;;  %v720_v26 = vadd.f32 %v719_v46, %v676_v25 }
 0x551   : > { %v722_v48 = vpop.f32.mrb[6].mxu1 }
 0x552   : > { %v1368_v49 = vpop.f32.mrb[7].mxu1  ;;  %v808_v27 = vmax.f32 %v720_v26, 0.0 }
 0x553   : > { %v589_v49 = vld [vmem:[#allocation11 + $0x80] sm:$0xff] }
 0x554   : > { %v897_v50 = vrot.slane %v589_v49, %v675_v23 }
 0x5d2   : > { %v1379_v1 = vpop.f32.mrb[8].mxu1 }
 0x5d3   : > { %v855_v2 = vpop.f32.mrb[9].mxu1  ;;  %v946_v8 = vpack.c.bf16 %v1379_v1, %v1379_v1  ;;  %v872_v9 = vmul.f32 %v1379_v1, %v1379_v1 }
 0x5d4   : > { %v1380_v3 = vpop.f32.mrb[10].mxu1  ;;  %v869_v5 = vmul.f32 %v855_v2, %v855_v2 }
 0x5d5   : > { %v858_v4 = vpop.f32.mrb[11].mxu1 }
 0x5d6   : > { %v870_v6 = vmul.f32 %v858_v4, %v858_v4  ;;  %v945_v7 = vpack.c.bf16 %v858_v4, %v855_v2 }
 0x5d8   : > { %v871_v10 = vadd.f32 %v870_v6, %v869_v5  ;;  %1397 = vmatprep.mubr.msk.bf16.mxu1 %vm728_vm4, %v945_v7 }
 0x5d9   : > { %1398 = vmatmul.mubr.msk.bf16.vlgmr.msra.gmra.mrb[12].mxu1 %vm728_vm4, %v946_v8 }
 0x5da   : > { %v873_v12 = vadd.f32 %v872_v9, %v871_v10 }
 0x5dc   : > { %v874_v13 = vmax.f32 %v873_v12, 1e-08 }
 0x5de   : > { %1546 = vrsqrt.f32 %v874_v13  ;;  %vm877_vm11 = vcmp.eq.f32.partialorder %v874_v13, inf  ;;  %v880_v18 = vand.u32 2147483648, %v874_v13  ;;  %vm879_vm12 = vcmp.eq.f32.partialorder %v874_v13, 0.0 }
 0x5e8   : > { %v1547_v16 = vpop.eup %1546 }
 0x5e9   : > { %v876_v17 = vmul.f32 %v1547_v16, %v874_v13 }
 0x5eb   : > { %v878_v19 = vsel %vm877_vm11, %v874_v13, %v876_v17 }
 0x5ec   : > { %v881_v20 = vsel %vm879_vm12, %v880_v18, %v878_v19 }
 0x5ed   : > { %883 = vrot.lane.b32.xlu0 %v881_v20, %s1916_s5 }
 0x65f   : > { %v884_v28 = vpop.permute.xlu0 %883 }
 0x660   : > { %v887_v29 = vsel %vm886_vm13, %v808_v27, %v884_v28 }
 0x661   : > { %v888_v33 = vpack.c.bf16 %v887_v29, %v887_v29 }
 0x663   : > { %1392 = vmatmul.mubr.msk.bf16.vlgmr.msra.gmra.mrb[4].mxu0 %vm898_vm14, %v888_v33 }
 0x6ac   : > { %v1399_v34 = vpop.f32.mrb[12].mxu1 }
 0x6ad   : > { %v991_v35 = vpop.f32.mrb[13].mxu1  ;;  %v1008_v39 = vadd.f32 %v1399_v34, %v2316_v30 }
 0x6ae   : > { %v1006_v36 = vadd.f32 %v991_v35, %v2318_v31  ;;  %v1400_v37 = vpop.f32.mrb[14].mxu1 }
 0x6af   : > { %v994_v38 = vpop.f32.mrb[15].mxu1  ;;  %v1041_v43 = vmul.f32 %v1008_v39, %v1008_v39 }
 0x6b0   : > { %v1007_v40 = vadd.f32 %v994_v38, %v2320_v32  ;;  %v1038_v41 = vmul.f32 %v1006_v36, %v1006_v36 }
 0x6b2   : > { %v1039_v42 = vmul.f32 %v1007_v40, %v1007_v40 }
 0x6b4   : > { %v1040_v44 = vadd.f32 %v1039_v42, %v1038_v41 }
 0x6b6   : > { %v1042_v46 = vadd.f32 %v1041_v43, %v1040_v44 }
 0x6b8   : > { %v1043_v47 = vmax.f32 %v1042_v46, 1e-08 }
 0x6ba   : > { %v1044_v48 = vsel %vm558_vm0, %v1043_v47, 0.0 }
 0x6bb   : > { %1045 = vadd.xlane.f32.xlu0 %v1044_v48 }
 0x736   : > { %v939_v51 = vpop.f32.mrb[4].mxu0 }
 0x737   : > { %v940_v52 = vadd.f32 %v939_v51, %v897_v50  ;;  %v1393_v31 = vpop.f32.mrb[5].mxu0 }
 0x738   : > { %v942_v53 = vpop.f32.mrb[6].mxu0 }
 0x739   : > { %v1394_v54 = vpop.f32.mrb[7].mxu0  ;;  %v1005_v30 = vadd.f32 %v940_v52, %v2339_v11 }
 0x73b   : > { %v1011_v32 = vsel %vm523_vm2, %v1005_v30, 0.0 }
 0x73c   : > { %1012 = vadd.xlane.f32.xlu1 %v1011_v32 }
 0x748   : > { %v1046_v55 = vpop.xlane.xlu0 %1045 }
 0x749   : > { %v1047_v56 = vmul.f32 0.25, %v1046_v55 }
 0x74b   : > { %1548 = vrsqrt.f32 %v1047_v56 }
 0x755   : > { %v1549_v57 = vpop.eup %1548 }
 0x756   : > { %1051 = vperm.xlu0 %1533, %v1549_v57  }
 0x7c9   : > { %v1013_v58 = vpop.xlane.xlu1 %1012 }
 0x7ca   : > { %v1014_v59 = vmul.f32 0.0625, %v1013_v58 }
 0x7cc   : > { %v1015_v60 = vsub.f32 %v1005_v30, %v1014_v59 }
 0x7ce   : > { %v1016_v61 = vmul.f32 %v1015_v60, %v1015_v60 }
 0x7d0   : > { %v1017_v62 = vsel %vm523_vm2, %v1016_v61, 0.0 }
 0x7d1   : > { %1018 = vadd.xlane.f32.xlu1 %v1017_v62 }
 0x7d5   : > { %v1052_v11 = vpop.permute.xlu0 %1051 }
 0x7d6   : > { %v1054_v63 = vmul.f32 %v1052_v11, %v1006_v36  ;;  %v1055_v0 = vmul.f32 %v1052_v11, %v1007_v40  ;;  %v1056_v1 = vmul.f32 %v1052_v11, %v1008_v39 }
 0x7d8   : > { %1058 = vst.msk [vmem:[%s496_s8] sm:$0xff] %vm558_vm0, %v1054_v63  ;;  %1327 = vst.msk [vmem:[%s496_s8 + $0x8] sm:$0xff] %vm558_vm0, %v1055_v0 }
 0x7d9   : > { %1328 = vst.msk [vmem:[%s496_s8 + $0x10] sm:$0xff] %vm558_vm0, %v1056_v1 }
 0x7da   : > { %1795 = shalt.err (!%p1792_p4)
}
 0x7db   : > { %s1796_s27 = scalar_lea.hbm %s2376_s28, 384  ;;  %s1800_s16 = scalar_lea.hbm %s2462_s9, 768 }
 0x7dc   : > { %p1797_p2 = scmp.ne.s32.totalorder %s2376_s28, %s1796_s27  ;;  %p1801_p12 = scmp.lt.u32.totalorder %s2376_s28, %s2462_s9 }
 0x7dd   : > { %p1802_p11 = scmp.lt.u32.totalorder %s1800_s16, %s1796_s27  ;;  %p1804_p10 = scmp.lt.u32.totalorder %s1796_s27, %s2376_s28 }
 0x7de   : > { %p1798_p7 = pnand %p1797_p2, %p2521_p1 }
 0x7df   : > { %p1803_p13 = por %p1802_p11, %p1801_p12 }
 0x7e0   : > { %p1799_p9 = pneg %p1798_p7 }
 0x7e1   : > { %p1805_p0 = por %p1804_p10, %p1803_p13 }
 0x7e3   : > { %p1806_p5 = pnand %p1805_p0, %p1799_p9 }
 0x7e5   : > { %1809 = shalt.err (!%p1806_p5)
}
 0x7e6   : > { %s1918_s11 = smov 128   ;;  %s1919_s12 = smov 256   ;;  %v1325_v6 = vld [vmem:[#allocation13] ss:$0 sm:$0xff]  ;;  %v1326_v8 = vld [vmem:[#allocation14] ss:$0 sm:$0xff] }
 0x7e7   : > { %s1920_s5 = smov 8   ;;  %s489_s8 = scalar_lea.vmem [#allocation16], %s2283_s29 }
 0x7e8   : > { %1434 = dma.vmem_to_hbm [thread:$0]  (%p2521_p1), %s2369_s30, 384, %s2376_s28, %s1069_s14, %s1918_s11, %s1919_s12, %s1920_s5  }
 0x7e9   : > { %s1082_s21 = sshll.u32 %s489_s8, 4  ;;  %s2522_s24 = sld [smem:[#allocation35_spill]]  ;;  %s2410_s21 = int_to_ptr.vmem [resolvable:$true] %s1082_s21 }
 0x7ea   : > { %s1064_s30 = scalar_lea.sflag [#allocation4], %s2280_s23  ;;  %s1810_s28 = scalar_lea.vmem %s2410_s21, 128 }
 0x7eb   : > { %p1811_p3 = scmp.ne.s32.totalorder %s2410_s21, %s1810_s28  ;;  %s1921_s29 = smov [#allocation16]  }
 0x7ec   : > { %s1814_s13 = sshll.u32 %s1921_s29, 4  ;;  %s1815_s13 = int_to_ptr.vmem [resolvable:$false] %s1814_s13 }
 0x7ed   : > { %p1812_p8 = pnand %p1811_p3, %p2521_p1  ;;  %s1816_s14 = scalar_lea.vmem %s1815_s13, 256 }
 0x7ee   : > { %p1817_p4 = scmp.lt.s32.totalorder %s2410_s21, %s1815_s13  ;;  %p1818_p2 = scmp.lt.s32.totalorder %s1816_s14, %s1810_s28 }
 0x7ef   : > { %s2408_s22 = scalar_lea.hbm %s2522_s24, %s1330_s20  ;;  %p1813_p6 = pneg %p1812_p8 }
 0x7f0   : > { %p1819_p7 = por %p1818_p2, %p1817_p4 }
 0x7f2   : > { %p1820_p9 = pnand %p1819_p7, %p1813_p6 }
 0x85e   : > { %v1019_v2 = vpop.xlane.xlu1 %1018 }
 0x85f   : > { %v1020_v3 = vmul.f32 0.0625, %v1019_v2 }
 0x861   : > { %v1021_v4 = vadd.f32 1e-05, %v1020_v3 }
 0x863   : > { %1550 = vrsqrt.f32 %v1021_v4 }
 0x86d   : > { %v1551_v5 = vpop.eup %1550 }
 0x86e   : > { %v1023_v7 = vmul.f32 %v1551_v5, %v1015_v60 }
 0x870   : > { %v1030_v9 = vmul.f32 %v1325_v6, %v1023_v7 }
 0x872   : > { %v1037_v10 = vadd.f32 %v1326_v8, %v1030_v9 }
 0x874   : > { %1057 = vst.msk [vmem:[%s489_s8] sm:$0xff] %vm523_vm2, %v1037_v10 }
 0x875   : > { %1823 = shalt.err (!%p1820_p9)
}
 0x876   : > { %s1824_s23 = scalar_lea.hbm %s2408_s22, 128  ;;  %s1828_s27 = scalar_lea.hbm %s2522_s24, 256 }
 0x877   : > { %p1825_p12 = scmp.ne.s32.totalorder %s2408_s22, %s1824_s23  ;;  %p1829_p10 = scmp.lt.u32.totalorder %s2408_s22, %s2522_s24 }
 0x878   : > { %p1830_p0 = scmp.lt.u32.totalorder %s1828_s27, %s1824_s23  ;;  %p1832_p3 = scmp.lt.u32.totalorder %s1824_s23, %s2408_s22 }
 0x879   : > { %p1826_p11 = pnand %p1825_p12, %p2521_p1 }
 0x87a   : > { %p1831_p5 = por %p1830_p0, %p1829_p10 }
 0x87b   : > { %p1827_p13 = pneg %p1826_p11 }
 0x87c   : > { %p1833_p8 = por %p1832_p3, %p1831_p5 }
 0x87e   : > { %p1834_p6 = pnand %p1833_p8, %p1827_p13 }
 0x880   : > { %1837 = shalt.err (!%p1834_p6)
}
 0x881   : > { %1433 = dma.vmem_to_hbm [thread:$0]  (%p2521_p1), %s2410_s21, 128, %s2408_s22, %s1064_s30  }
 0x882 PF: > { %s2523_s16 = sld [smem:[#allocation26_spill]]  ;;  %s2524_s15 = sld [smem:[#allocation29_spill]] }
 0x883   : > { %s2525_s1 = sld [smem:[#allocation28_spill]] }
 0x888   : > { %s1109_s11 = sand.u32 1, %s2523_s16   ;;  %p2526_p4 = scmp.ne.s32.totalorder %s2524_s15, 0 }
 0x889   : > { %p2527_p2 = scmp.ge.s32.totalorder %s2525_s1, 2  ;;  %s1110_s12 = scalar_lea.sflag [#allocation4], %s1109_s11 }
 0x88b   : > { %p1464_p7 = pnand %p2527_p2, %p2526_p4 }
 0x88d   : > { %1875 = dma.done.wait (!%p1464_p7), %s1110_s12, 128  }
 0x88e   : > { %1877 = vsyncadd (!%p1464_p7), %s1110_s12, 4294967168  ;;  %s1119_s5 = scalar_lea.sflag [#allocation18], %s1109_s11 }
 0x88f   : > { %1879 = dma.done.wait (!%p1464_p7), %s1119_s5, 384  }
 0x890   : > { %1881 = vsyncadd (!%p1464_p7), %s1119_s5, 4294966912  ;;  %s2528_s12 = sld [smem:[#allocation30_spill]]  ;;  %s2529_s18 = sld [smem:[#allocation27_spill]] }
 0x891   : > { %s2530_s11 = sld [smem:[#allocation31_spill]]  ;;  %s2531_s30 = smov %s1888_s10 }
 0x896   : > { %p32_p1 = scmp.ge.s32.totalorder %s2528_s12, 4   ;;  %s2532_s10 = smov %s2529_s18 }
 0x898   :  { %34 = sbr.rel (!%p32_p1) target bundleno = 17 (0x11), region = 160 }
 0x89f   :  { %1124 = vsyncpa [#allocation3], 1 }
 0x8a0   :  { %1126 = vsyncpa [#allocation3 + $0x1], 1 }
 0x8a1   :  { %1127 = vsyncpa [#allocation6], 1 }
 0x8a2   :  { %1129 = vsyncpa [#allocation6 + $0x1], 1 }
 0x8a3   :  { %1130 = vsyncpa [#allocation9], 1 }
 0x8a4   :  { %1131 = vsyncpa [#allocation12], 1 }
 0x8a5   :  { %1132 = vsyncpa [#allocation15], 1 }
 0x8a6   :  { %1133 = vsyncpa [#allocation4], 1 }
 0x8a7   :  { %1135 = vsyncpa [#allocation4 + $0x1], 1 }
 0x8a8   :  { %1136 = vsyncpa [#allocation18], 1 }
 0x8a9   :  { %1138 = vsyncpa [#allocation18 + $0x1], 1 }

</bundles_post_ra>
